<compile_context>
chip_gen: v7x
topology: tpu7x:2x2x1
jax: 0.10.0
libtpu: 0.0.40
codegen_flags: <defaults>
</compile_context>

<pallas_src>
import jax
import jax.numpy as jnp
from jax import lax
from jax.experimental import pallas as pl
from jax.experimental.pallas import tpu as pltpu


# ---------------------------------------------------------------------------
# Fused kernel:
#   static encoder MLP -> LSTM dynamic encoder (packed gates) -> combine +
#   basis projection + contrastive loss, all in one VMEM-resident pass.
# ---------------------------------------------------------------------------
def _fused_tts_kernel(x_ref, xd_ref, phis_ref,
                      w1_ref, b1_ref, w2_ref, b2_ref, w3_ref, b3_ref,
                      wih_ref, whh_ref, bg_ref, wfc_ref, bfc_ref, bias_ref,
                      out_ref, loss_ref):
    f32 = jnp.float32

    # ---------------- static Encoder (BN folded into the Linears) -----------
    x = x_ref[...]                                                   # (D, M)
    h = jnp.maximum(jnp.dot(x, w1_ref[...], preferred_element_type=f32)
                    + b1_ref[...], 0.0)
    h = jnp.maximum(jnp.dot(h, w2_ref[...], preferred_element_type=f32)
                    + b2_ref[...], 0.0)
    h_static = (jnp.dot(h, w3_ref[...], preferred_element_type=f32)
                + b3_ref[...])                                       # (D, L)

    # ---------------- DynamicEncoder: single-layer LSTM ---------------------
    xd = xd_ref[...]                                                 # (D, T, S)
    D, T, S = xd.shape
    H = whh_ref.shape[0]
    G = 4 * H                                                        # 128 lanes

    # permute(0,2,1) absorbed into the kernel; ONE hoisted input projection
    # against the concatenated (T, 4H) gate weight -> lane-dense (D*S, 4H).
    xp2 = jnp.transpose(xd, (0, 2, 1)).reshape(D * S, T)             # (D*S, T)
    gin = (jnp.dot(xp2, wih_ref[...], preferred_element_type=f32)
           + bg_ref[...]).reshape(D, S, G)                           # (D, S, 4H)

    whh = whh_ref[...]                                               # (H, 4H)
    h_t = None
    c_t = None
    # short static sequence -> unrolled (see TODO for fori_loop at larger S)
    for s in range(S):
        pre = gin[:, s, :]                                           # (D, 4H)
        if h_t is not None:   # h_0 = 0: skip the recurrent matmul on step 0
            pre = pre + jnp.dot(h_t, whh, preferred_element_type=f32)
        sg = jax.nn.sigmoid(pre)      # one full-vreg EUP pass
        th = jnp.tanh(pre)            # one full-vreg EUP pass
        i_t = sg[:, 0:H]
        f_t = sg[:, H:2 * H]
        g_t = th[:, 2 * H:3 * H]
        o_t = sg[:, 3 * H:4 * H]
        c_t = i_t * g_t if c_t is None else f_t * c_t + i_t * g_t
        h_t = o_t * jnp.tanh(c_t)

    # fc -> (folded) BN -> ReLU
    h_dyn = jnp.maximum(jnp.dot(h_t, wfc_ref[...], preferred_element_type=f32)
                        + bfc_ref[...], 0.0)                         # (D, L)

    # ---------------- combine + per-sample basis projection -----------------
    # phis is (D, B, N_pad): contract over B on the sublane path so the
    # (D, N_pad) output is produced/stored lane-dense.
    hc = h_static + h_dyn                                            # (D, L)
    bias = bias_ref[0]                                               # SMEM scalar
    out_ref[...] = jnp.sum(phis_ref[...] * hc[:, :, None], axis=1) + bias

    # ---------------- contrastive loss ---------------------------------------
    # torch.nn.functional.normalize(eps=1e-12): v / max(||v||, eps)
    #   == v * rsqrt(max(||v||^2, eps^2))
    eps2 = 1e-24
    inv_s = lax.rsqrt(jnp.maximum(jnp.sum(h_static * h_static, axis=-1,
                                          keepdims=True), eps2))
    inv_d = lax.rsqrt(jnp.maximum(jnp.sum(h_dyn * h_dyn, axis=-1,
                                          keepdims=True), eps2))
    hn = h_static * inv_s
    hdn = h_dyn * inv_d
    # A @ B^T without an explicit transpose/relayout of hdn.
    sim = lax.dot_general(hn, hdn, (((1,), (1,)), ((), ())),
                          preferred_element_type=f32) * (1.0 / 0.07)  # (D, D)

    m = jnp.max(sim, axis=-1, keepdims=True)
    lse = m + jnp.log(jnp.sum(jnp.exp(sim - m), axis=-1, keepdims=True))
    row = lax.broadcasted_iota(jnp.int32, sim.shape, 0)
    col = lax.broadcasted_iota(jnp.int32, sim.shape, 1)
    diag = jnp.sum(jnp.where(row == col, sim, 0.0), axis=-1, keepdims=True)
    loss_ref[...] = (jnp.sum(lse - diag) / D).reshape(1, 1)


_PARAM_ORDER = ("w1", "b1", "w2", "b2", "w3", "b3",
                "wih_cat", "whh_cat", "bg_cat", "wfc", "bfc")

_VMEM_SPEC = pl.BlockSpec(memory_space=pltpu.MemorySpace.VMEM)
_SMEM_SPEC = pl.BlockSpec(memory_space=pltpu.MemorySpace.SMEM)


# ---------------------------------------------------------------------------
# Full TTSDynamic forward (dataloader_type='tensor', dynamic_bias=False,
# contrastive=True)
# ---------------------------------------------------------------------------
@jax.jit
def tts_dynamic_forward(X, X_dynamic, Phis, params):
    # The PyTorch permute implicitly requires time_steps == n_features_dynamic.
    assert X_dynamic.shape[1] == params["wih_cat"].shape[0], (
        "TTSDynamic requires time_steps == n_features_dynamic (LSTM input size)")
    D, N, _ = Phis.shape

    # Lane-dense output: pad the trajectory axis N to a multiple of 128 lanes
    # and present Phis to the kernel as (D, B, N_pad).
    n_pad = max(128, ((N + 127) // 128) * 128)
    phis_t = jnp.transpose(Phis, (0, 2, 1))                       # (D, B, N)
    phis_t = jnp.pad(phis_t, ((0, 0), (0, 0), (0, n_pad - N)))

    tensor_args = [X, X_dynamic, phis_t] + [params[k] for k in _PARAM_ORDER]
    out_pad, loss = pl.pallas_call(
        _fused_tts_kernel,
        out_shape=(jax.ShapeDtypeStruct((D, n_pad), jnp.float32),
                   jax.ShapeDtypeStruct((1, 1), jnp.float32)),
        in_specs=[_VMEM_SPEC] * len(tensor_args) + [_SMEM_SPEC],
        out_specs=(_VMEM_SPEC, _VMEM_SPEC),
    )(*tensor_args, params["bias"])
    return out_pad[:, :N], loss[0, 0]


# ---------------------------------------------------------------------------
# Pure-JAX reference (same math, no Pallas) for a sanity check.
# ---------------------------------------------------------------------------
def reference_forward(X, X_dynamic, Phis, params):
    h = jnp.maximum(X @ params["w1"] + params["b1"], 0.0)
    h = jnp.maximum(h @ params["w2"] + params["b2"], 0.0)
    h_static = h @ params["w3"] + params["b3"]

    xp = jnp.transpose(X_dynamic, (0, 2, 1))
    D, S, _ = xp.shape
    H = params["whh_cat"].shape[0]
    wih, whh, bg = params["wih_cat"], params["whh_cat"], params["bg_cat"]
    hs = jnp.zeros((D, H), jnp.float32)
    cs = jnp.zeros((D, H), jnp.float32)
    for s in range(S):
        pre = xp[:, s, :] @ wih + hs @ whh + bg
        i_t = jax.nn.sigmoid(pre[:, 0:H])
        f_t = jax.nn.sigmoid(pre[:, H:2 * H])
        g_t = jnp.tanh(pre[:, 2 * H:3 * H])
        o_t = jax.nn.sigmoid(pre[:, 3 * H:4 * H])
        cs = f_t * cs + i_t * g_t
        hs = o_t * jnp.tanh(cs)
    h_dyn = jnp.maximum(hs @ params["wfc"] + params["bfc"], 0.0)

    hc = h_static + h_dyn
    out = jnp.einsum('dnb,db->dn', Phis, hc) + params["bias"][0]

    eps = 1e-12
    hn = h_static / jnp.maximum(jnp.linalg.norm(h_static, axis=-1, keepdims=True), eps)
    hdn = h_dyn / jnp.maximum(jnp.linalg.norm(h_dyn, axis=-1, keepdims=True), eps)
    sim = hn @ hdn.T * (1.0 / 0.07)
    lse = jax.scipy.special.logsumexp(sim, axis=-1)
    loss = jnp.mean(lse - jnp.diag(sim))
    return out, loss


# ---------------------------------------------------------------------------
# deterministic parameter construction (eval-mode BN folded into the Linears,
# b_ih + b_hh folded per LSTM gate; gate order i, f, g, o; gate weights stored
# concatenated along the 4H axis, input-major so x @ W works directly)
# ---------------------------------------------------------------------------
def make_params(key, M, hidden_sizes, n_basis, n_dyn_features, rnn_hidden):
    ks = jax.random.split(key, 24)
    eps = 1e-5
    bn_scale = 1.0 / jnp.sqrt(1.0 + eps)   # gamma=1, running mean=0, var=1, beta=0
    h1, h2 = hidden_sizes
    H = rnn_hidden
    L = n_basis

    def u(k, shape, fan_in):
        bound = 1.0 / jnp.sqrt(fan_in)
        return jax.random.uniform(k, shape, jnp.float32, -bound, bound)

    params = dict(
        # Encoder: Linear->BN->ReLU->Linear->BN->ReLU->Linear, BN folded in.
        w1=u(ks[0], (M, h1), M) * bn_scale,   b1=u(ks[1], (1, h1), M) * bn_scale,
        w2=u(ks[2], (h1, h2), h1) * bn_scale, b2=u(ks[3], (1, h2), h1) * bn_scale,
        w3=u(ks[4], (h2, L), h2),             b3=u(ks[5], (1, L), h2),
        # LSTM gate weights packed along the 4H axis (i, f, g, o).
        wih_cat=jnp.concatenate(
            [u(ks[6 + g], (n_dyn_features, H), H) for g in range(4)], axis=1),
        whh_cat=jnp.concatenate(
            [u(ks[10 + g], (H, H), H) for g in range(4)], axis=1),
        bg_cat=jnp.concatenate(
            [u(ks[14 + g], (1, H), H) + u(ks[18 + g], (1, H), H)
             for g in range(4)], axis=1),
        # fc -> BN -> ReLU of the dynamic encoder, BN folded in.
        wfc=u(ks[22], (H, L), H) * bn_scale,
        bfc=u(ks[23], (1, L), H) * bn_scale,
        # dynamic_bias disabled -> self.bias = nn.Parameter(torch.zeros(1))
        bias=jnp.zeros((1,), jnp.float32),
    )
    return params


if __name__ == "__main__":
    # small shapes consistent with the module
    D = 8            # batch (number of samples)
    M = 16           # n_features (static)
    hidden_sizes = (32, 32)
    n_basis = 16     # B
    F_dyn = 8        # n_features_dynamic
    T = 8            # time steps (must equal F_dyn because of the permute)
    rnn_hidden = 32  # H  (4H = 128 lanes)
    N_max = 16       # trajectory length

    key = jax.random.PRNGKey(0)
    kp, kx, kd, kphi = jax.random.split(key, 4)

    params = make_params(kp, M, hidden_sizes, n_basis, F_dyn, rnn_hidden)
    X = jax.random.normal(kx, (D, M), jnp.float32)
    X_dynamic = jax.random.normal(kd, (D, T, F_dyn), jnp.float32)
    Phis = jax.random.normal(kphi, (D, N_max, n_basis), jnp.float32)

    out, loss = tts_dynamic_forward(X, X_dynamic, Phis, params)
    jax.block_until_ready((out, loss))

    ref_out, ref_loss = reference_forward(X, X_dynamic, Phis, params)
    assert out.shape == (D, N_max) and loss.shape == ()
    assert bool(jnp.all(jnp.isfinite(out))) and bool(jnp.isfinite(loss))
    assert bool(jnp.allclose(out, ref_out, atol=1e-3, rtol=1e-3))
    assert bool(jnp.allclose(loss, ref_loss, atol=1e-2, rtol=1e-2))

    print("KERNEL_OK")
</pallas_src>

<mosaic_0001>
module attributes {stable_mosaic.version = 11 : i64} {
  func.func @_fused_tts_kernel(%arg0: memref<8x16xf32, #tpu.memory_space<vmem>>, %arg1: memref<8x8x8xf32, #tpu.memory_space<vmem>>, %arg2: memref<8x16x128xf32, #tpu.memory_space<vmem>>, %arg3: memref<16x32xf32, #tpu.memory_space<vmem>>, %arg4: memref<1x32xf32, #tpu.memory_space<vmem>>, %arg5: memref<32x32xf32, #tpu.memory_space<vmem>>, %arg6: memref<1x32xf32, #tpu.memory_space<vmem>>, %arg7: memref<32x16xf32, #tpu.memory_space<vmem>>, %arg8: memref<1x16xf32, #tpu.memory_space<vmem>>, %arg9: memref<8x128xf32, #tpu.memory_space<vmem>>, %arg10: memref<32x128xf32, #tpu.memory_space<vmem>>, %arg11: memref<1x128xf32, #tpu.memory_space<vmem>>, %arg12: memref<32x16xf32, #tpu.memory_space<vmem>>, %arg13: memref<1x16xf32, #tpu.memory_space<vmem>>, %arg14: memref<1xf32, #tpu.memory_space<smem>>, %arg15: memref<8x128xf32, #tpu.memory_space<vmem>>, %arg16: memref<1x1xf32, #tpu.memory_space<vmem>>) attributes {dimension_semantics = [], scalar_prefetch = 0 : i64, scratch_operands = 0 : i64, tpu.core_type = #tpu.core_type<tc>} {
    %c0 = arith.constant 0 : index
    %c0_0 = arith.constant 0 : index
    %0 = vector.load %arg0[%c0, %c0_0] : memref<8x16xf32, #tpu.memory_space<vmem>>, vector<8x16xf32>
    %c0_1 = arith.constant 0 : index
    %c0_2 = arith.constant 0 : index
    %1 = vector.load %arg3[%c0_1, %c0_2] : memref<16x32xf32, #tpu.memory_space<vmem>>, vector<16x32xf32>
    %cst = arith.constant dense<0.000000e+00> : vector<8x32xf32>
    %2 = tpu.matmul %0, %1, %cst {dimension_numbers = #tpu.dot_dimension_numbers<[1], [0], [0], [1], [0, 0, 1, 1], [], []>} : vector<8x16xf32>, vector<16x32xf32>, vector<8x32xf32> -> vector<8x32xf32>
    %c0_3 = arith.constant 0 : index
    %c0_4 = arith.constant 0 : index
    %3 = vector.load %arg4[%c0_3, %c0_4] : memref<1x32xf32, #tpu.memory_space<vmem>>, vector<1x32xf32>
    %4 = vector.broadcast %3 : vector<1x32xf32> to vector<8x32xf32>
    %5 = arith.addf %2, %4 : vector<8x32xf32>
    %cst_5 = arith.constant 0.000000e+00 : f32
    %6 = vector.broadcast %cst_5 : f32 to vector<8x32xf32>
    %7 = arith.maximumf %5, %6 : vector<8x32xf32>
    %c0_6 = arith.constant 0 : index
    %c0_7 = arith.constant 0 : index
    %8 = vector.load %arg5[%c0_6, %c0_7] : memref<32x32xf32, #tpu.memory_space<vmem>>, vector<32x32xf32>
    %cst_8 = arith.constant dense<0.000000e+00> : vector<8x32xf32>
    %9 = tpu.matmul %7, %8, %cst_8 {dimension_numbers = #tpu.dot_dimension_numbers<[1], [0], [0], [1], [0, 0, 1, 1], [], []>} : vector<8x32xf32>, vector<32x32xf32>, vector<8x32xf32> -> vector<8x32xf32>
    %c0_9 = arith.constant 0 : index
    %c0_10 = arith.constant 0 : index
    %10 = vector.load %arg6[%c0_9, %c0_10] : memref<1x32xf32, #tpu.memory_space<vmem>>, vector<1x32xf32>
    %11 = vector.broadcast %10 : vector<1x32xf32> to vector<8x32xf32>
    %12 = arith.addf %9, %11 : vector<8x32xf32>
    %cst_11 = arith.constant 0.000000e+00 : f32
    %13 = vector.broadcast %cst_11 : f32 to vector<8x32xf32>
    %14 = arith.maximumf %12, %13 : vector<8x32xf32>
    %c0_12 = arith.constant 0 : index
    %c0_13 = arith.constant 0 : index
    %15 = vector.load %arg7[%c0_12, %c0_13] : memref<32x16xf32, #tpu.memory_space<vmem>>, vector<32x16xf32>
    %cst_14 = arith.constant dense<0.000000e+00> : vector<8x16xf32>
    %16 = tpu.matmul %14, %15, %cst_14 {dimension_numbers = #tpu.dot_dimension_numbers<[1], [0], [0], [1], [0, 0, 1, 1], [], []>} : vector<8x32xf32>, vector<32x16xf32>, vector<8x16xf32> -> vector<8x16xf32>
    %c0_15 = arith.constant 0 : index
    %c0_16 = arith.constant 0 : index
    %17 = vector.load %arg8[%c0_15, %c0_16] : memref<1x16xf32, #tpu.memory_space<vmem>>, vector<1x16xf32>
    %18 = vector.broadcast %17 : vector<1x16xf32> to vector<8x16xf32>
    %19 = arith.addf %16, %18 : vector<8x16xf32>
    %c0_17 = arith.constant 0 : index
    %c0_18 = arith.constant 0 : index
    %c0_19 = arith.constant 0 : index
    %20 = vector.load %arg1[%c0_17, %c0_18, %c0_19] : memref<8x8x8xf32, #tpu.memory_space<vmem>>, vector<8x8x8xf32>
    %21 = tpu.transpose %20, [0, 2, 1] : vector<8x8x8xf32> -> vector<8x8x8xf32>
    %22 = vector.shape_cast %21 : vector<8x8x8xf32> to vector<64x8xf32>
    %c0_20 = arith.constant 0 : index
    %c0_21 = arith.constant 0 : index
    %23 = vector.load %arg9[%c0_20, %c0_21] : memref<8x128xf32, #tpu.memory_space<vmem>>, vector<8x128xf32>
    %cst_22 = arith.constant dense<0.000000e+00> : vector<64x128xf32>
    %24 = tpu.matmul %22, %23, %cst_22 {dimension_numbers = #tpu.dot_dimension_numbers<[1], [0], [0], [1], [0, 0, 1, 1], [], []>} : vector<64x8xf32>, vector<8x128xf32>, vector<64x128xf32> -> vector<64x128xf32>
    %c0_23 = arith.constant 0 : index
    %c0_24 = arith.constant 0 : index
    %25 = vector.load %arg11[%c0_23, %c0_24] : memref<1x128xf32, #tpu.memory_space<vmem>>, vector<1x128xf32>
    %26 = vector.broadcast %25 : vector<1x128xf32> to vector<64x128xf32>
    %27 = arith.addf %24, %26 : vector<64x128xf32>
    %28 = vector.shape_cast %27 : vector<64x128xf32> to vector<8x8x128xf32>
    %c0_25 = arith.constant 0 : index
    %c0_26 = arith.constant 0 : index
    %29 = vector.load %arg10[%c0_25, %c0_26] : memref<32x128xf32, #tpu.memory_space<vmem>>, vector<32x128xf32>
    %30 = vector.extract_strided_slice %28 {offsets = [0, 0, 0], sizes = [8, 1, 128], strides = [1, 1, 1]} : vector<8x8x128xf32> to vector<8x1x128xf32>
    %31 = vector.shape_cast %30 : vector<8x1x128xf32> to vector<8x128xf32>
    %32 = arith.negf %31 : vector<8x128xf32>
    %33 = math.exp %32 : vector<8x128xf32>
    %cst_27 = arith.constant 1.000000e+00 : f32
    %34 = vector.broadcast %cst_27 : f32 to vector<8x128xf32>
    %35 = arith.addf %34, %33 : vector<8x128xf32>
    %36 = arith.divf %34, %35 : vector<8x128xf32>
    %37 = math.tanh %31 : vector<8x128xf32>
    %38 = vector.extract_strided_slice %36 {offsets = [0, 0], sizes = [8, 32], strides = [1, 1]} : vector<8x128xf32> to vector<8x32xf32>
    %39 = vector.extract_strided_slice %37 {offsets = [0, 64], sizes = [8, 32], strides = [1, 1]} : vector<8x128xf32> to vector<8x32xf32>
    %40 = vector.extract_strided_slice %36 {offsets = [0, 96], sizes = [8, 32], strides = [1, 1]} : vector<8x128xf32> to vector<8x32xf32>
    %41 = arith.mulf %38, %39 : vector<8x32xf32>
    %42 = math.tanh %41 : vector<8x32xf32>
    %43 = arith.mulf %40, %42 : vector<8x32xf32>
    %44 = vector.extract_strided_slice %28 {offsets = [0, 1, 0], sizes = [8, 1, 128], strides = [1, 1, 1]} : vector<8x8x128xf32> to vector<8x1x128xf32>
    %45 = vector.shape_cast %44 : vector<8x1x128xf32> to vector<8x128xf32>
    %cst_28 = arith.constant dense<0.000000e+00> : vector<8x128xf32>
    %46 = tpu.matmul %43, %29, %cst_28 {dimension_numbers = #tpu.dot_dimension_numbers<[1], [0], [0], [1], [0, 0, 1, 1], [], []>} : vector<8x32xf32>, vector<32x128xf32>, vector<8x128xf32> -> vector<8x128xf32>
    %47 = arith.addf %45, %46 : vector<8x128xf32>
    %48 = arith.negf %47 : vector<8x128xf32>
    %49 = math.exp %48 : vector<8x128xf32>
    %cst_29 = arith.constant 1.000000e+00 : f32
    %50 = vector.broadcast %cst_29 : f32 to vector<8x128xf32>
    %51 = arith.addf %50, %49 : vector<8x128xf32>
    %52 = arith.divf %50, %51 : vector<8x128xf32>
    %53 = math.tanh %47 : vector<8x128xf32>
    %54 = vector.extract_strided_slice %52 {offsets = [0, 0], sizes = [8, 32], strides = [1, 1]} : vector<8x128xf32> to vector<8x32xf32>
    %55 = vector.extract_strided_slice %52 {offsets = [0, 32], sizes = [8, 32], strides = [1, 1]} : vector<8x128xf32> to vector<8x32xf32>
    %56 = vector.extract_strided_slice %53 {offsets = [0, 64], sizes = [8, 32], strides = [1, 1]} : vector<8x128xf32> to vector<8x32xf32>
    %57 = vector.extract_strided_slice %52 {offsets = [0, 96], sizes = [8, 32], strides = [1, 1]} : vector<8x128xf32> to vector<8x32xf32>
    %58 = arith.mulf %55, %41 : vector<8x32xf32>
    %59 = arith.mulf %54, %56 : vector<8x32xf32>
    %60 = arith.addf %58, %59 : vector<8x32xf32>
    %61 = math.tanh %60 : vector<8x32xf32>
    %62 = arith.mulf %57, %61 : vector<8x32xf32>
    %63 = vector.extract_strided_slice %28 {offsets = [0, 2, 0], sizes = [8, 1, 128], strides = [1, 1, 1]} : vector<8x8x128xf32> to vector<8x1x128xf32>
    %64 = vector.shape_cast %63 : vector<8x1x128xf32> to vector<8x128xf32>
    %cst_30 = arith.constant dense<0.000000e+00> : vector<8x128xf32>
    %65 = tpu.matmul %62, %29, %cst_30 {dimension_numbers = #tpu.dot_dimension_numbers<[1], [0], [0], [1], [0, 0, 1, 1], [], []>} : vector<8x32xf32>, vector<32x128xf32>, vector<8x128xf32> -> vector<8x128xf32>
    %66 = arith.addf %64, %65 : vector<8x128xf32>
    %67 = arith.negf %66 : vector<8x128xf32>
    %68 = math.exp %67 : vector<8x128xf32>
    %cst_31 = arith.constant 1.000000e+00 : f32
    %69 = vector.broadcast %cst_31 : f32 to vector<8x128xf32>
    %70 = arith.addf %69, %68 : vector<8x128xf32>
    %71 = arith.divf %69, %70 : vector<8x128xf32>
    %72 = math.tanh %66 : vector<8x128xf32>
    %73 = vector.extract_strided_slice %71 {offsets = [0, 0], sizes = [8, 32], strides = [1, 1]} : vector<8x128xf32> to vector<8x32xf32>
    %74 = vector.extract_strided_slice %71 {offsets = [0, 32], sizes = [8, 32], strides = [1, 1]} : vector<8x128xf32> to vector<8x32xf32>
    %75 = vector.extract_strided_slice %72 {offsets = [0, 64], sizes = [8, 32], strides = [1, 1]} : vector<8x128xf32> to vector<8x32xf32>
    %76 = vector.extract_strided_slice %71 {offsets = [0, 96], sizes = [8, 32], strides = [1, 1]} : vector<8x128xf32> to vector<8x32xf32>
    %77 = arith.mulf %74, %60 : vector<8x32xf32>
    %78 = arith.mulf %73, %75 : vector<8x32xf32>
    %79 = arith.addf %77, %78 : vector<8x32xf32>
    %80 = math.tanh %79 : vector<8x32xf32>
    %81 = arith.mulf %76, %80 : vector<8x32xf32>
    %82 = vector.extract_strided_slice %28 {offsets = [0, 3, 0], sizes = [8, 1, 128], strides = [1, 1, 1]} : vector<8x8x128xf32> to vector<8x1x128xf32>
    %83 = vector.shape_cast %82 : vector<8x1x128xf32> to vector<8x128xf32>
    %cst_32 = arith.constant dense<0.000000e+00> : vector<8x128xf32>
    %84 = tpu.matmul %81, %29, %cst_32 {dimension_numbers = #tpu.dot_dimension_numbers<[1], [0], [0], [1], [0, 0, 1, 1], [], []>} : vector<8x32xf32>, vector<32x128xf32>, vector<8x128xf32> -> vector<8x128xf32>
    %85 = arith.addf %83, %84 : vector<8x128xf32>
    %86 = arith.negf %85 : vector<8x128xf32>
    %87 = math.exp %86 : vector<8x128xf32>
    %cst_33 = arith.constant 1.000000e+00 : f32
    %88 = vector.broadcast %cst_33 : f32 to vector<8x128xf32>
    %89 = arith.addf %88, %87 : vector<8x128xf32>
    %90 = arith.divf %88, %89 : vector<8x128xf32>
    %91 = math.tanh %85 : vector<8x128xf32>
    %92 = vector.extract_strided_slice %90 {offsets = [0, 0], sizes = [8, 32], strides = [1, 1]} : vector<8x128xf32> to vector<8x32xf32>
    %93 = vector.extract_strided_slice %90 {offsets = [0, 32], sizes = [8, 32], strides = [1, 1]} : vector<8x128xf32> to vector<8x32xf32>
    %94 = vector.extract_strided_slice %91 {offsets = [0, 64], sizes = [8, 32], strides = [1, 1]} : vector<8x128xf32> to vector<8x32xf32>
    %95 = vector.extract_strided_slice %90 {offsets = [0, 96], sizes = [8, 32], strides = [1, 1]} : vector<8x128xf32> to vector<8x32xf32>
    %96 = arith.mulf %93, %79 : vector<8x32xf32>
    %97 = arith.mulf %92, %94 : vector<8x32xf32>
    %98 = arith.addf %96, %97 : vector<8x32xf32>
    %99 = math.tanh %98 : vector<8x32xf32>
    %100 = arith.mulf %95, %99 : vector<8x32xf32>
    %101 = vector.extract_strided_slice %28 {offsets = [0, 4, 0], sizes = [8, 1, 128], strides = [1, 1, 1]} : vector<8x8x128xf32> to vector<8x1x128xf32>
    %102 = vector.shape_cast %101 : vector<8x1x128xf32> to vector<8x128xf32>
    %cst_34 = arith.constant dense<0.000000e+00> : vector<8x128xf32>
    %103 = tpu.matmul %100, %29, %cst_34 {dimension_numbers = #tpu.dot_dimension_numbers<[1], [0], [0], [1], [0, 0, 1, 1], [], []>} : vector<8x32xf32>, vector<32x128xf32>, vector<8x128xf32> -> vector<8x128xf32>
    %104 = arith.addf %102, %103 : vector<8x128xf32>
    %105 = arith.negf %104 : vector<8x128xf32>
    %106 = math.exp %105 : vector<8x128xf32>
    %cst_35 = arith.constant 1.000000e+00 : f32
    %107 = vector.broadcast %cst_35 : f32 to vector<8x128xf32>
    %108 = arith.addf %107, %106 : vector<8x128xf32>
    %109 = arith.divf %107, %108 : vector<8x128xf32>
    %110 = math.tanh %104 : vector<8x128xf32>
    %111 = vector.extract_strided_slice %109 {offsets = [0, 0], sizes = [8, 32], strides = [1, 1]} : vector<8x128xf32> to vector<8x32xf32>
    %112 = vector.extract_strided_slice %109 {offsets = [0, 32], sizes = [8, 32], strides = [1, 1]} : vector<8x128xf32> to vector<8x32xf32>
    %113 = vector.extract_strided_slice %110 {offsets = [0, 64], sizes = [8, 32], strides = [1, 1]} : vector<8x128xf32> to vector<8x32xf32>
    %114 = vector.extract_strided_slice %109 {offsets = [0, 96], sizes = [8, 32], strides = [1, 1]} : vector<8x128xf32> to vector<8x32xf32>
    %115 = arith.mulf %112, %98 : vector<8x32xf32>
    %116 = arith.mulf %111, %113 : vector<8x32xf32>
    %117 = arith.addf %115, %116 : vector<8x32xf32>
    %118 = math.tanh %117 : vector<8x32xf32>
    %119 = arith.mulf %114, %118 : vector<8x32xf32>
    %120 = vector.extract_strided_slice %28 {offsets = [0, 5, 0], sizes = [8, 1, 128], strides = [1, 1, 1]} : vector<8x8x128xf32> to vector<8x1x128xf32>
    %121 = vector.shape_cast %120 : vector<8x1x128xf32> to vector<8x128xf32>
    %cst_36 = arith.constant dense<0.000000e+00> : vector<8x128xf32>
    %122 = tpu.matmul %119, %29, %cst_36 {dimension_numbers = #tpu.dot_dimension_numbers<[1], [0], [0], [1], [0, 0, 1, 1], [], []>} : vector<8x32xf32>, vector<32x128xf32>, vector<8x128xf32> -> vector<8x128xf32>
    %123 = arith.addf %121, %122 : vector<8x128xf32>
    %124 = arith.negf %123 : vector<8x128xf32>
    %125 = math.exp %124 : vector<8x128xf32>
    %cst_37 = arith.constant 1.000000e+00 : f32
    %126 = vector.broadcast %cst_37 : f32 to vector<8x128xf32>
    %127 = arith.addf %126, %125 : vector<8x128xf32>
    %128 = arith.divf %126, %127 : vector<8x128xf32>
    %129 = math.tanh %123 : vector<8x128xf32>
    %130 = vector.extract_strided_slice %128 {offsets = [0, 0], sizes = [8, 32], strides = [1, 1]} : vector<8x128xf32> to vector<8x32xf32>
    %131 = vector.extract_strided_slice %128 {offsets = [0, 32], sizes = [8, 32], strides = [1, 1]} : vector<8x128xf32> to vector<8x32xf32>
    %132 = vector.extract_strided_slice %129 {offsets = [0, 64], sizes = [8, 32], strides = [1, 1]} : vector<8x128xf32> to vector<8x32xf32>
    %133 = vector.extract_strided_slice %128 {offsets = [0, 96], sizes = [8, 32], strides = [1, 1]} : vector<8x128xf32> to vector<8x32xf32>
    %134 = arith.mulf %131, %117 : vector<8x32xf32>
    %135 = arith.mulf %130, %132 : vector<8x32xf32>
    %136 = arith.addf %134, %135 : vector<8x32xf32>
    %137 = math.tanh %136 : vector<8x32xf32>
    %138 = arith.mulf %133, %137 : vector<8x32xf32>
    %139 = vector.extract_strided_slice %28 {offsets = [0, 6, 0], sizes = [8, 1, 128], strides = [1, 1, 1]} : vector<8x8x128xf32> to vector<8x1x128xf32>
    %140 = vector.shape_cast %139 : vector<8x1x128xf32> to vector<8x128xf32>
    %cst_38 = arith.constant dense<0.000000e+00> : vector<8x128xf32>
    %141 = tpu.matmul %138, %29, %cst_38 {dimension_numbers = #tpu.dot_dimension_numbers<[1], [0], [0], [1], [0, 0, 1, 1], [], []>} : vector<8x32xf32>, vector<32x128xf32>, vector<8x128xf32> -> vector<8x128xf32>
    %142 = arith.addf %140, %141 : vector<8x128xf32>
    %143 = arith.negf %142 : vector<8x128xf32>
    %144 = math.exp %143 : vector<8x128xf32>
    %cst_39 = arith.constant 1.000000e+00 : f32
    %145 = vector.broadcast %cst_39 : f32 to vector<8x128xf32>
    %146 = arith.addf %145, %144 : vector<8x128xf32>
    %147 = arith.divf %145, %146 : vector<8x128xf32>
    %148 = math.tanh %142 : vector<8x128xf32>
    %149 = vector.extract_strided_slice %147 {offsets = [0, 0], sizes = [8, 32], strides = [1, 1]} : vector<8x128xf32> to vector<8x32xf32>
    %150 = vector.extract_strided_slice %147 {offsets = [0, 32], sizes = [8, 32], strides = [1, 1]} : vector<8x128xf32> to vector<8x32xf32>
    %151 = vector.extract_strided_slice %148 {offsets = [0, 64], sizes = [8, 32], strides = [1, 1]} : vector<8x128xf32> to vector<8x32xf32>
    %152 = vector.extract_strided_slice %147 {offsets = [0, 96], sizes = [8, 32], strides = [1, 1]} : vector<8x128xf32> to vector<8x32xf32>
    %153 = arith.mulf %150, %136 : vector<8x32xf32>
    %154 = arith.mulf %149, %151 : vector<8x32xf32>
    %155 = arith.addf %153, %154 : vector<8x32xf32>
    %156 = math.tanh %155 : vector<8x32xf32>
    %157 = arith.mulf %152, %156 : vector<8x32xf32>
    %158 = vector.extract_strided_slice %28 {offsets = [0, 7, 0], sizes = [8, 1, 128], strides = [1, 1, 1]} : vector<8x8x128xf32> to vector<8x1x128xf32>
    %159 = vector.shape_cast %158 : vector<8x1x128xf32> to vector<8x128xf32>
    %cst_40 = arith.constant dense<0.000000e+00> : vector<8x128xf32>
    %160 = tpu.matmul %157, %29, %cst_40 {dimension_numbers = #tpu.dot_dimension_numbers<[1], [0], [0], [1], [0, 0, 1, 1], [], []>} : vector<8x32xf32>, vector<32x128xf32>, vector<8x128xf32> -> vector<8x128xf32>
    %161 = arith.addf %159, %160 : vector<8x128xf32>
    %162 = arith.negf %161 : vector<8x128xf32>
    %163 = math.exp %162 : vector<8x128xf32>
    %cst_41 = arith.constant 1.000000e+00 : f32
    %164 = vector.broadcast %cst_41 : f32 to vector<8x128xf32>
    %165 = arith.addf %164, %163 : vector<8x128xf32>
    %166 = arith.divf %164, %165 : vector<8x128xf32>
    %167 = math.tanh %161 : vector<8x128xf32>
    %168 = vector.extract_strided_slice %166 {offsets = [0, 0], sizes = [8, 32], strides = [1, 1]} : vector<8x128xf32> to vector<8x32xf32>
    %169 = vector.extract_strided_slice %166 {offsets = [0, 32], sizes = [8, 32], strides = [1, 1]} : vector<8x128xf32> to vector<8x32xf32>
    %170 = vector.extract_strided_slice %167 {offsets = [0, 64], sizes = [8, 32], strides = [1, 1]} : vector<8x128xf32> to vector<8x32xf32>
    %171 = vector.extract_strided_slice %166 {offsets = [0, 96], sizes = [8, 32], strides = [1, 1]} : vector<8x128xf32> to vector<8x32xf32>
    %172 = arith.mulf %169, %155 : vector<8x32xf32>
    %173 = arith.mulf %168, %170 : vector<8x32xf32>
    %174 = arith.addf %172, %173 : vector<8x32xf32>
    %175 = math.tanh %174 : vector<8x32xf32>
    %176 = arith.mulf %171, %175 : vector<8x32xf32>
    %c0_42 = arith.constant 0 : index
    %c0_43 = arith.constant 0 : index
    %177 = vector.load %arg12[%c0_42, %c0_43] : memref<32x16xf32, #tpu.memory_space<vmem>>, vector<32x16xf32>
    %cst_44 = arith.constant dense<0.000000e+00> : vector<8x16xf32>
    %178 = tpu.matmul %176, %177, %cst_44 {dimension_numbers = #tpu.dot_dimension_numbers<[1], [0], [0], [1], [0, 0, 1, 1], [], []>} : vector<8x32xf32>, vector<32x16xf32>, vector<8x16xf32> -> vector<8x16xf32>
    %c0_45 = arith.constant 0 : index
    %c0_46 = arith.constant 0 : index
    %179 = vector.load %arg13[%c0_45, %c0_46] : memref<1x16xf32, #tpu.memory_space<vmem>>, vector<1x16xf32>
    %180 = vector.broadcast %179 : vector<1x16xf32> to vector<8x16xf32>
    %181 = arith.addf %178, %180 : vector<8x16xf32>
    %cst_47 = arith.constant 0.000000e+00 : f32
    %182 = vector.broadcast %cst_47 : f32 to vector<8x16xf32>
    %183 = arith.maximumf %181, %182 : vector<8x16xf32>
    %184 = arith.addf %19, %183 : vector<8x16xf32>
    %c0_48 = arith.constant 0 : index
    %185 = memref.load %arg14[%c0_48] : memref<1xf32, #tpu.memory_space<smem>>
    %c0_49 = arith.constant 0 : index
    %c0_50 = arith.constant 0 : index
    %c0_51 = arith.constant 0 : index
    %186 = vector.load %arg2[%c0_49, %c0_50, %c0_51] : memref<8x16x128xf32, #tpu.memory_space<vmem>>, vector<8x16x128xf32>
    %187 = vector.shape_cast %184 : vector<8x16xf32> to vector<8x16x1xf32>
    %188 = vector.broadcast %187 : vector<8x16x1xf32> to vector<8x16x128xf32>
    %189 = arith.mulf %186, %188 : vector<8x16x128xf32>
    %cst_52 = arith.constant dense<0.000000e+00> : vector<8x128xf32>
    %190 = vector.multi_reduction <add>, %189, %cst_52 [1] : vector<8x16x128xf32> to vector<8x128xf32>
    %191 = vector.broadcast %185 : f32 to vector<8x128xf32>
    %192 = arith.addf %190, %191 : vector<8x128xf32>
    %c0_53 = arith.constant 0 : index
    %c0_54 = arith.constant 0 : index
    %193 = vector.load %arg15[%c0_53, %c0_54] : memref<8x128xf32, #tpu.memory_space<vmem>>, vector<8x128xf32>
    tpu.vector_store %arg15[%c0_53, %c0_54], %192 {strides = array<i32>} : memref<8x128xf32, #tpu.memory_space<vmem>>, vector<8x128xf32>,
    %194 = arith.mulf %19, %19 : vector<8x16xf32>
    %cst_55 = arith.constant dense<0.000000e+00> : vector<8xf32>
    %195 = vector.multi_reduction <add>, %194, %cst_55 [1] : vector<8x16xf32> to vector<8xf32>
    %196 = vector.shape_cast %195 : vector<8xf32> to vector<8x1xf32>
    %cst_56 = arith.constant 1.000000e-24 : f32
    %197 = vector.broadcast %cst_56 : f32 to vector<8x1xf32>
    %198 = arith.maximumf %196, %197 : vector<8x1xf32>
    %199 = math.rsqrt %198 : vector<8x1xf32>
    %200 = arith.mulf %183, %183 : vector<8x16xf32>
    %cst_57 = arith.constant dense<0.000000e+00> : vector<8xf32>
    %201 = vector.multi_reduction <add>, %200, %cst_57 [1] : vector<8x16xf32> to vector<8xf32>
    %202 = vector.shape_cast %201 : vector<8xf32> to vector<8x1xf32>
    %cst_58 = arith.constant 1.000000e-24 : f32
    %203 = vector.broadcast %cst_58 : f32 to vector<8x1xf32>
    %204 = arith.maximumf %202, %203 : vector<8x1xf32>
    %205 = math.rsqrt %204 : vector<8x1xf32>
    %206 = vector.broadcast %199 : vector<8x1xf32> to vector<8x16xf32>
    %207 = arith.mulf %19, %206 : vector<8x16xf32>
    %208 = vector.broadcast %205 : vector<8x1xf32> to vector<8x16xf32>
    %209 = arith.mulf %183, %208 : vector<8x16xf32>
    %cst_59 = arith.constant dense<0.000000e+00> : vector<8x8xf32>
    %210 = tpu.matmul %207, %209, %cst_59 {dimension_numbers = #tpu.dot_dimension_numbers<[1], [1], [0], [0], [0, 0, 1, 0], [], []>} : vector<8x16xf32>, vector<8x16xf32>, vector<8x8xf32> -> vector<8x8xf32>
    %cst_60 = arith.constant 14.2857141 : f32
    %211 = vector.broadcast %cst_60 : f32 to vector<8x8xf32>
    %212 = arith.mulf %210, %211 : vector<8x8xf32>
    %cst_61 = arith.constant dense<0xFF800000> : vector<8xf32>
    %213 = vector.multi_reduction <maximumf>, %212, %cst_61 [1] : vector<8x8xf32> to vector<8xf32>
    %214 = vector.shape_cast %213 : vector<8xf32> to vector<8x1xf32>
    %215 = vector.broadcast %214 : vector<8x1xf32> to vector<8x8xf32>
    %216 = arith.subf %212, %215 : vector<8x8xf32>
    %217 = math.exp %216 : vector<8x8xf32>
    %cst_62 = arith.constant dense<0.000000e+00> : vector<8xf32>
    %218 = vector.multi_reduction <add>, %217, %cst_62 [1] : vector<8x8xf32> to vector<8xf32>
    %219 = vector.shape_cast %218 : vector<8xf32> to vector<8x1xf32>
    %220 = math.log %219 : vector<8x1xf32>
    %221 = arith.addf %214, %220 : vector<8x1xf32>
    %222 = tpu.iota {dimensions = array<i32: 0>} : vector<8x8xi32>
    %223 = tpu.iota {dimensions = array<i32: 1>} : vector<8x8xi32>
    %224 = arith.cmpi eq, %222, %223 : vector<8x8xi32>
    %cst_63 = arith.constant 0.000000e+00 : f32
    %225 = vector.broadcast %cst_63 : f32 to vector<8x8xf32>
    %226 = arith.select %224, %212, %225 : vector<8x8xi1>, vector<8x8xf32>
    %cst_64 = arith.constant dense<0.000000e+00> : vector<8xf32>
    %227 = vector.multi_reduction <add>, %226, %cst_64 [1] : vector<8x8xf32> to vector<8xf32>
    %228 = vector.shape_cast %227 : vector<8xf32> to vector<8x1xf32>
    %229 = arith.subf %221, %228 : vector<8x1xf32>
    %230 = vector.shape_cast %229 : vector<8x1xf32> to vector<1x8x1xf32>
    %cst_65 = arith.constant dense<0.000000e+00> : vector<1xf32>
    %231 = vector.multi_reduction <add>, %230, %cst_65 [1, 2] : vector<1x8x1xf32> to vector<1xf32>
    %232 = vector.shape_cast %231 : vector<1xf32> to vector<1x1x1xf32>
    %233 = vector.extract %232[0, 0, 0] : f32 from vector<1x1x1xf32>
    %cst_66 = arith.constant 8.000000e+00 : f32
    %234 = arith.divf %233, %cst_66 : f32
    %235 = vector.broadcast %234 : f32 to vector<1x1xf32>
    %c0_67 = arith.constant 0 : index
    %c0_68 = arith.constant 0 : index
    %236 = vector.load %arg16[%c0_67, %c0_68] : memref<1x1xf32, #tpu.memory_space<vmem>>, vector<1x1xf32>
    tpu.vector_store %arg16[%c0_67, %c0_68], %235 {strides = array<i32>} : memref<1x1xf32, #tpu.memory_space<vmem>>, vector<1x1xf32>,
    return
  }
}

</mosaic_0001>

<bundles_post_ra>
// kernel: tts_dynamic_forward.1
= control target key start
LH: loop header
LB: loop body
LE: loop exit
PB: predicated region body
PF: predicated region fallthrough
CT: control target
= control target key end

     0   :  { %s5879_s0 = inlined_call_operand.vmem [shape: f32[8,16], index: 0, kind: input, shape index: {}]   ;;  %s5880_s1 = inlined_call_operand.vmem [shape: f32[8,8,8], index: 1, kind: input, shape index: {}]   ;;  %s5881_s2 = inlined_call_operand.vmem [shape: f32[8,16,128], index: 2, kind: input, shape index: {}]   ;;  %s5882_s3 = inlined_call_operand.vmem [shape: f32[16,32], index: 3, kind: input, shape index: {}]   ;;  %s5883_s4 = inlined_call_operand.vmem [shape: f32[1,32], index: 4, kind: input, shape index: {}]   ;;  %s5884_s5 = inlined_call_operand.vmem [shape: f32[32,32], index: 5, kind: input, shape index: {}]   ;;  %s5885_s6 = inlined_call_operand.vmem [shape: f32[1,32], index: 6, kind: input, shape index: {}]   ;;  %s5886_s7 = inlined_call_operand.vmem [shape: f32[32,16], index: 7, kind: input, shape index: {}]   ;;  %s5887_s8 = inlined_call_operand.vmem [shape: f32[1,16], index: 8, kind: input, shape index: {}]   ;;  %s5888_s9 = inlined_call_operand.vmem [shape: f32[8,128], index: 9, kind: input, shape index: {}]   ;;  %s5889_s10 = inlined_call_operand.vmem [shape: f32[32,128], index: 10, kind: input, shape index: {}]   ;;  %s5890_s11 = inlined_call_operand.vmem [shape: f32[1,128], index: 11, kind: input, shape index: {}]   ;;  %s5891_s12 = inlined_call_operand.vmem [shape: f32[32,16], index: 12, kind: input, shape index: {}]   ;;  %s5892_s13 = inlined_call_operand.vmem [shape: f32[1,16], index: 13, kind: input, shape index: {}]   ;;  %s5893_s14 = inlined_call_operand.<no memory space> [shape: f32[1], index: 14, kind: input, shape index: {}]   ;;  %s5894_s15 = inlined_call_operand.hbm [shape: f32[8,128], index: 15, kind: output, shape index: {0}]   ;;  %s5895_s16 = inlined_call_operand.hbm [shape: f32[1,1], index: 16, kind: output, shape index: {1}]  }
   0x1   :  { %5896 = sst [smem:[#allocation9_spill]] %s5879_s0 }
   0x2   :  { %23 = vsyncpa [#allocation4], 0  ;;  %v56_v0 = vld [vmem:[%s5882_s3] sm:$0xff]  ;;  %v57_v1 = vld [vmem:[%s5882_s3 + $0x8] sm:$0xff]  ;;  %v4636_v2 = vmov 0.0|0.0   ;;  %vm4637_vm0 = vmmov 0  }
   0x3   :  { %3995 = vmatprep.subr.bf16.mxu0 %v4636_v2  ;;  %v3996_v3 = vpack.c.bf16 %v57_v1, %v56_v0  ;;  %v4638_v4 = vmov 0.0   ;;  %v310_v5 = vld [vmem:[%s5880_s1] sm:$0xff]  ;;  %v312_v6 = vld [vmem:[%s5880_s1 + $0x10] sm:$0xff]  ;;  %s5897_s30 = sld [smem:[#allocation9_spill]]  ;;  %vm65_vm1 = vcmask 130048   ;;  %v311_v8 = vld [vmem:[%s5880_s1 + $0x8] sm:$0xff]  ;;  %3998 = vmatprep.subr.bf16.mxu1 %v4636_v2 }
   0x4   :  { %3863 = vmatprep.mubr.msk.f32.mxu0 %vm4637_vm0, %v4638_v4  ;;  %318 = vxpose.xlu0.b32.start.end [1/1] (short) (narrow) %v310_v5, 8  ;;  %v140_v9 = vld [vmem:[%s5884_s5] sm:$0xff]  ;;  %v313_v10 = vld [vmem:[%s5880_s1 + $0x18] sm:$0xff]  ;;  %v141_v11 = vld [vmem:[%s5884_s5 + $0x8] sm:$0xff] }
   0x5   :  { %382 = vxpose.xlu1.b32.start.end [1/1] (short) (narrow) %v312_v6, 8  ;;  %3997 = vmatpush3.bf16.msra.mxu0 %v3996_v3 }
   0x6   :  { %3874 = vmatprep.mubr.msk.f32.mxu1 %vm4637_vm0, %v4638_v4  ;;  %4004 = vmatprep.subr.bf16.mxu0 %v4636_v2 }
   0x9   :  { %v55_v7 = vld [vmem:[%s5897_s30] sm:$0xff] }
   0xa   :  { %24 = vsyncpa [#allocation6], 0  ;;  %v3999_v12 = vpack.c.bf16 %v141_v11, %v140_v9  ;;  %3864 = vmatmul.mubr.msk.f32.vlgmr.msra.gmra.mrb[0].mxu0 %vm65_vm1, %v55_v7  ;;  %350 = vxpose.xlu0.b32.start.end [1/1] (short) (narrow) %v311_v8, 8  ;;  %v314_v13 = vld [vmem:[%s5880_s1 + $0x20] sm:$0xff]  ;;  %v315_v14 = vld [vmem:[%s5880_s1 + $0x28] sm:$0xff]  ;;  %vm151_vm2 = vcmask 261120  }
   0xb   :  { %414 = vxpose.xlu1.b32.start.end [1/1] (short) (narrow) %v313_v10, 8  ;;  %3885 = vmatprep.mubr.msk.f32.mxu0 %vm4637_vm0, %v4638_v4  ;;  %v316_v15 = vld [vmem:[%s5880_s1 + $0x30] sm:$0xff]  ;;  %v317_v16 = vld [vmem:[%s5880_s1 + $0x38] sm:$0xff]  ;;  %v574_v20 = vld [vmem:[%s5888_s9] sm:$0xff]  ;;  %vm582_vm3 = vcmask 64512   ;;  %vm869_vm4 = vcmask 1041409  }
   0xc   :  { %4000 = vmatpush3.bf16.msra.mxu1 %v3999_v12  ;;  %v142_v17 = vld [vmem:[%s5884_s5 + $0x10] sm:$0xff]  ;;  %v143_v18 = vld [vmem:[%s5884_s5 + $0x18] sm:$0xff]  ;;  %v226_v21 = vld [vmem:[%s5886_s7] sm:$0xff]  ;;  %vm872_vm5 = vcmask 1042434   ;;  %vm875_vm6 = vcmask 1043459   ;;  %vm878_vm7 = vcmask 1044484  }
   0xd   :  { %4001 = vmatprep.subr.bf16.mxu1 %v4636_v2  ;;  %v4002_v19 = vpack.c.bf16 %v143_v18, %v142_v17  ;;  %v227_v22 = vld [vmem:[%s5886_s7 + $0x8] sm:$0xff]  ;;  %v3705_v24 = vld [vmem:[%s5883_s4] ss:$0 sm:$0xff]  ;;  %v228_v37 = vld [vmem:[%s5886_s7 + $0x10] sm:$0xff]  ;;  %vm881_vm8 = vcmask 1045509   ;;  %vm884_vm9 = vcmask 1046534  }
   0xe   :  { %446 = vxpose.xlu0.b32.start.end [1/1] (short) (narrow) %v314_v13, 8  ;;  %v4005_v23 = vpack.c.bf16 %v227_v22, %v226_v21  ;;  %v229_v38 = vld [vmem:[%s5886_s7 + $0x18] sm:$0xff]  ;;  %v3707_v40 = vld [vmem:[%s5885_s6] ss:$0 sm:$0xff]  ;;  %s4639_s6 = smov 64   ;;  %s4640_s7 = smov 96  }
   0xf   :  { %478 = vxpose.xlu1.b32.start.end [1/1] (short) (narrow) %v315_v14, 8  ;;  %v4008_v39 = vpack.c.bf16 %v229_v38, %v228_v37  ;;  %v3711_v44 = vld [vmem:[%s5890_s11] ss:$0 sm:$0xff]  ;;  %vm887_vm10 = vcmask 1047559   ;;  %vm3660_vm12 = vcmask 7168  }
  0x10   :  { %4003 = vmatpush3.bf16.msra.mxu1 %v4002_v19  ;;  %4006 = vmatpush3.bf16.msra.mxu0 %v4005_v23 }
  0x11   :  { %3888 = vmatprep.subr.mxu1 %v574_v20  ;;  %4007 = vmatprep.subr.bf16.mxu0 %v4636_v2 }
  0x12   :  { %510 = vxpose.xlu0.b32.start.end [1/1] (short) (narrow) %v316_v15, 8 }
  0x13   :  { %542 = vxpose.xlu1.b32.start.end [1/1] (short) (narrow) %v317_v16, 8 }
  0x14   :  { %4009 = vmatpush3.bf16.msra.mxu0 %v4008_v39 }
  0x15   :  { %4010 = vmatprep.subr.bf16.mxu0 %v4636_v2 }
  0x84   :  { %v334_v25 = vpop.trf.xlu0 }
  0x85   :  { %v398_v27 = vpop.trf.xlu1 }
  0x8a   :  { %v366_v31 = vpop.trf.xlu0 }
  0x8b   :  { %v430_v32 = vpop.trf.xlu1 }
  0x8e   :  { %v462_v33 = vpop.trf.xlu0 }
  0x8f   :  { %v494_v34 = vpop.trf.xlu1 }
  0x92   :  { %v526_v35 = vpop.trf.xlu0 }
  0x93   :  { %v558_v36 = vpop.trf.xlu1 }
  0xdd   :  { %v135_v26 = vpop.f32.mrb[0].mxu0 }
  0xde   :  { %v136_v28 = vadd.f32 %v3705_v24, %v135_v26  ;;  %v3865_v29 = vpop.f32.mrb[1].mxu0 }
  0xe0   :  { %v139_v30 = vmax.f32 %v136_v28, 0.0 }
  0xe2   :  { %3875 = vmatmul.mubr.msk.f32.vlgmr.msra.gmra.mrb[0].mxu1 %vm151_vm2, %v139_v30 }
  0xe3   :  { %3889 = vmatpush3.msra.mxu1 %v574_v20  ;;  %3890 = vmatprep.mubr.msk.f32.mxu1 %vm582_vm3, %v334_v25 }
  0xe4   :  { %4022 = vmatprep.subr.bf16.mxu1 %v4636_v2 }
  0xe6   :  { %3891 = vmatmul.mubr.msk.f32.vlgmr.msra.gmra.mrb[2].mxu1 %vm582_vm3, %v366_v31 }
  0xe7   :  { %3893 = vmatprep.mubr.msk.f32.mxu1 %vm582_vm3, %v398_v27 }
  0xea   :  { %3894 = vmatmul.mubr.msk.f32.gmra.mrb[4].mxu1 %vm582_vm3, %v430_v32 }
  0xeb   :  { %3896 = vmatprep.mubr.msk.f32.mxu1 %vm582_vm3, %v462_v33 }
  0xee   :  { %3897 = vmatmul.mubr.msk.f32.gmra.mrb[6].mxu1 %vm582_vm3, %v494_v34 }
  0xef   :  { %3899 = vmatprep.mubr.msk.f32.mxu1 %vm582_vm3, %v526_v35 }
  0xf2   :  { %3900 = vmatmul.mubr.msk.f32.gmra.mrb[8].mxu1 %vm582_vm3, %v558_v36 }
  0xf3   :  { %3932 = vmatprep.mubr.msk.f32.mxu1 %vm4637_vm0, %v4638_v4 }
 0x1b5   :  { %v221_v41 = vpop.f32.mrb[0].mxu1 }
 0x1b6   :  { %v222_v42 = vadd.f32 %v3707_v40, %v221_v41  ;;  %v3876_v43 = vpop.f32.mrb[1].mxu1 }
 0x1b8   :  { %v225_v45 = vmax.f32 %v222_v42, 0.0 }
 0x1b9   :  { %v3892_v46 = vpop.f32.mrb[2].mxu1 }
 0x1ba   :  { %v4823_v47 = vadd.f32 %v3892_v46, %v3711_v44  ;;  %3886 = vmatmul.mubr.msk.f32.vlgmr.msra.gmra.mrb[2].mxu0 %vm151_vm2, %v225_v45  ;;  %v673_v48 = vpop.f32.mrb[3].mxu1 }
 0x1bb   :  { %v4826_v49 = vadd.f32 %v3711_v44, %v673_v48  ;;  %3910 = vmatprep.mubr.msk.f32.mxu0 %vm4637_vm0, %v4638_v4 }
 0x1bc   :  { %4068 = vtanh.f32 %v4823_v47  ;;  %v3721_v8 = vmul.f32 -1.442695, %v4823_v47 }
 0x1bd   :  { %v3895_v50 = vpop.f32.mrb[4].mxu1  ;;  %4070 = vtanh.f32 %v4826_v49  ;;  %v3720_v9 = vmul.f32 -1.442695, %v4826_v49 }
 0x1be   :  { %v4832_v51 = vadd.f32 %v3895_v50, %v3711_v44  ;;  %v683_v52 = vpop.f32.mrb[5].mxu1 }
 0x1bf   :  { %v4835_v53 = vadd.f32 %v3711_v44, %v683_v52 }
 0x1c0   :  { %4072 = vtanh.f32 %v4832_v51  ;;  %v3723_v10 = vmul.f32 -1.442695, %v4832_v51 }
 0x1c1   :  { %v3898_v54 = vpop.f32.mrb[6].mxu1  ;;  %v3722_v11 = vmul.f32 -1.442695, %v4835_v53 }
 0x1c2   :  { %v4837_v55 = vadd.f32 %v3898_v54, %v3711_v44  ;;  %v693_v56 = vpop.f32.mrb[7].mxu1 }
 0x1c3   :  { %v4839_v57 = vadd.f32 %v3711_v44, %v693_v56 }
 0x1c4   :  { %4074 = vtanh.f32 %v4837_v55  ;;  %v3725_v12 = vmul.f32 -1.442695, %v4837_v55 }
 0x1c5   :  { %v3901_v58 = vpop.f32.mrb[8].mxu1  ;;  %4076 = vtanh.f32 %v4835_v53  ;;  %v3724_v13 = vmul.f32 -1.442695, %v4839_v57 }
 0x1c6   :  { %v4069_v59 = vpop.eup %4068  ;;  %v4843_v60 = vadd.f32 %v3901_v58, %v3711_v44  ;;  %v703_v61 = vpop.f32.mrb[9].mxu1  ;;  %4078 = vtanh.f32 %v4839_v57 }
 0x1c7   :  { %v4071_v62 = vpop.eup %4070  ;;  %782 = vrot.lane.b32.xlu0 %v4069_v59, %s4639_s6  ;;  %v4846_v63 = vadd.f32 %v3711_v44, %v703_v61 }
 0x1c8   :  { %780 = vrot.lane.b32.xlu1 %v4071_v62, %s4639_s6  ;;  %4080 = vtanh.f32 %v4843_v60  ;;  %v3727_v15 = vmul.f32 -1.442695, %v4843_v60 }
 0x1c9   :  { %4082 = vtanh.f32 %v4846_v63  ;;  %v3726_v17 = vmul.f32 -1.442695, %v4846_v63 }
 0x1ca   :  { %v4073_v0 = vpop.eup %4072  ;;  %4084 = vpow2.f32 %v3721_v8 }
 0x1cb   :  { %4086 = vpow2.f32 %v3720_v9 }
 0x1cc   :  { %786 = vrot.lane.b32.xlu1 %v4073_v0, %s4639_s6  ;;  %4088 = vpow2.f32 %v3723_v10  ;;  %v714_v10 = vld [vmem:[%s5889_s10 + $0x10] sm:$0xff] }
 0x1cd   :  { %4090 = vpow2.f32 %v3722_v11  ;;  %v715_v11 = vld [vmem:[%s5889_s10 + $0x18] sm:$0xff] }
 0x1ce   :  { %v4075_v1 = vpop.eup %4074  ;;  %4092 = vpow2.f32 %v3725_v12 }
 0x1cf   :  { %v4077_v3 = vpop.eup %4076  ;;  %790 = vrot.lane.b32.xlu0 %v4075_v1, %s4639_s6  ;;  %4094 = vpow2.f32 %v3724_v13  ;;  %v4932_v13 = vpack.c.bf16 %v715_v11, %v714_v10 }
 0x1d0   :  { %784 = vrot.lane.b32.xlu1 %v4077_v3, %s4639_s6  ;;  %v4079_v5 = vpop.eup %4078  ;;  %4096 = vpow2.f32 %v3727_v15 }
 0x1d1   :  { %4098 = vpow2.f32 %v3726_v17 }
 0x1d2   :  { %v4081_v6 = vpop.eup %4080 }
 0x1d3   :  { %794 = vrot.lane.b32.xlu0 %v4081_v6, %s4639_s6  ;;  %v4083_v7 = vpop.eup %4082  ;;  %v712_v6 = vld [vmem:[%s5889_s10] sm:$0xff] }
 0x1d4   :  { %788 = vrot.lane.b32.xlu1 %v4079_v5, %s4639_s6  ;;  %v4085_v14 = vpop.eup %4084 }
 0x1d5   :  { %v4087_v16 = vpop.eup %4086  ;;  %v741_v18 = vadd.f32 1.0, %v4085_v14 }
 0x1d6   :  { %v4089_v19 = vpop.eup %4088  ;;  %v740_v20 = vadd.f32 1.0, %v4087_v16 }
 0x1d7   :  { %4100 = vrcp.f32 %v741_v18  ;;  %v743_v21 = vadd.f32 1.0, %v4089_v19  ;;  %v4091_v22 = vpop.eup %4090 }
 0x1d8   :  { %792 = vrot.lane.b32.xlu1 %v4083_v7, %s4639_s6  ;;  %4102 = vrcp.f32 %v740_v20  ;;  %v4093_v23 = vpop.eup %4092  ;;  %v742_v25 = vadd.f32 1.0, %v4091_v22  ;;  %v713_v7 = vld [vmem:[%s5889_s10 + $0x8] sm:$0xff]  ;;  %s4641_s10 = smov 32  }
 0x1d9   :  { %v4095_v24 = vpop.eup %4094  ;;  %4104 = vrcp.f32 %v743_v21  ;;  %v745_v26 = vadd.f32 1.0, %v4093_v23  ;;  %v4921_v9 = vpack.c.bf16 %v713_v7, %v712_v6 }
 0x1da   :  { %v4097_v27 = vpop.eup %4096  ;;  %v744_v28 = vadd.f32 1.0, %v4095_v24  ;;  %4106 = vrcp.f32 %v742_v25 }
 0x1db   :  { %v4099_v29 = vpop.eup %4098  ;;  %4108 = vrcp.f32 %v745_v26  ;;  %v747_v32 = vadd.f32 1.0, %v4097_v27  ;;  %4012 = vmatpush3.bf16.msra.mxu0 %v4921_v9  ;;  %4024 = vmatpush3.bf16.msra.mxu1 %v4921_v9 }
 0x1dc   :  { %4110 = vrcp.f32 %v744_v28  ;;  %v746_v36 = vadd.f32 1.0, %v4099_v29  ;;  %4013 = vmatprep.subr.bf16.mxu0 %v4636_v2  ;;  %4025 = vmatprep.subr.bf16.mxu1 %v4636_v2 }
 0x1df   :  { %4015 = vmatpush3.bf16.msra.mxu0 %v4932_v13  ;;  %4027 = vmatpush3.bf16.msra.mxu1 %v4932_v13 }
 0x1e0   :  { %4016 = vmatprep.subr.bf16.mxu0 %v4636_v2  ;;  %4034 = vmatprep.subr.bf16.mxu1 %v4636_v2 }
 0x1e1   :  { %v4866_v30 = vpop.eup %4100 }
 0x1e2   :  { %v4871_v35 = vpop.eup %4102 }
 0x1e3   :  { %v4877_v38 = vpop.eup %4104 }
 0x1e4   :  { %v4107_v42 = vpop.eup %4106 }
 0x1e5   :  { %v4884_v44 = vpop.eup %4108 }
 0x1e6   :  { %v4891_v48 = vpop.eup %4110 }
 0x239   :  { %v783_v31 = vpop.permute.xlu0 %782 }
 0x23a   :  { %v4869_v33 = vmul.f32 %v4866_v30, %v783_v31  ;;  %v781_v34 = vpop.permute.xlu1 %780 }
 0x23b   :  { %v4875_v37 = vmul.f32 %v4871_v35, %v781_v34 }
 0x23c   :  { %4112 = vtanh.f32 %v4869_v33 }
 0x23d   :  { %4114 = vrcp.f32 %v747_v32 }
 0x23e   :  { %v787_v39 = vpop.permute.xlu1 %786  ;;  %4116 = vrcp.f32 %v746_v36 }
 0x23f   :  { %v4880_v40 = vmul.f32 %v4877_v38, %v787_v39  ;;  %4118 = vtanh.f32 %v4875_v37 }
 0x241   :  { %4120 = vtanh.f32 %v4880_v40  ;;  %v791_v41 = vpop.permute.xlu0 %790 }
 0x242   :  { %v785_v43 = vpop.permute.xlu1 %784  ;;  %v4889_v46 = vmul.f32 %v4884_v44, %v791_v41 }
 0x243   :  { %v4886_v45 = vmul.f32 %v4107_v42, %v785_v43 }
 0x245   :  { %4122 = vtanh.f32 %v4886_v45  ;;  %v795_v50 = vpop.permute.xlu0 %794 }
 0x246   :  { %v4113_v52 = vpop.eup %4112  ;;  %v789_v54 = vpop.permute.xlu1 %788  ;;  %4124 = vtanh.f32 %v4889_v46 }
 0x247   :  { %v4894_v56 = vpop.eup %4114  ;;  %v4897_v58 = vmul.f32 %v4891_v48, %v789_v54  ;;  %830 = vrot.lane.b32.xlu1 %v4113_v52, %s4640_s7 }
 0x248   :  { %v4902_v59 = vmul.f32 %v4894_v56, %v795_v50  ;;  %v4904_v61 = vpop.eup %4116 }
 0x249   :  { %4126 = vtanh.f32 %v4897_v58  ;;  %v4119_v62 = vpop.eup %4118 }
 0x24a   :  { %v793_v0 = vpop.permute.xlu1 %792  ;;  %4128 = vtanh.f32 %v4902_v59 }
 0x24b   :  { %v4121_v1 = vpop.eup %4120  ;;  %v4908_v3 = vmul.f32 %v4904_v61, %v793_v0  ;;  %828 = vrot.lane.b32.xlu1 %v4119_v62, %s4640_s7 }
 0x24c   :  { %834 = vrot.lane.b32.xlu0 %v4121_v1, %s4640_s7 }
 0x24d   :  { %4130 = vtanh.f32 %v4908_v3 }
 0x24f   :  { %v4123_v5 = vpop.eup %4122 }
 0x250   :  { %832 = vrot.lane.b32.xlu0 %v4123_v5, %s4640_s7  ;;  %v4125_v8 = vpop.eup %4124 }
 0x253   :  { %v4127_v12 = vpop.eup %4126 }
 0x254   :  { %838 = vrot.lane.b32.xlu0 %v4125_v8, %s4640_s7  ;;  %836 = vrot.lane.b32.xlu1 %v4127_v12, %s4640_s7  ;;  %v4129_v14 = vpop.eup %4128 }
 0x257   :  { %v4131_v15 = vpop.eup %4130 }
 0x258   :  { %842 = vrot.lane.b32.xlu0 %v4129_v14, %s4640_s7  ;;  %840 = vrot.lane.b32.xlu1 %v4131_v15, %s4640_s7 }
 0x28d   :  { %v4943_v16 = vpop.f32.mrb[2].mxu0 }
 0x28e   :  { %v3887_v17 = vpop.f32.mrb[3].mxu0 }
 0x2b9   :  { %v831_v18 = vpop.permute.xlu1 %830 }
 0x2ba   :  { %v853_v21 = vmul.f32 %v4866_v30, %v831_v18 }
 0x2bc   :  { %v868_v25 = vrot.slane %v853_v21, 7 }
 0x2bd   :  { %v829_v20 = vpop.permute.xlu1 %828 }
 0x2be   :  { %v835_v19 = vpop.permute.xlu0 %834  ;;  %v852_v22 = vmul.f32 %v4871_v35, %v829_v20 }
 0x2bf   :  { %v855_v26 = vmul.f32 %v4877_v38, %v835_v19 }
 0x2c0   :  { %v870_v28 = vsel %vm869_vm4, %v868_v25, %v852_v22 }
 0x2c1   :  { %v874_v35 = vrot.slane %v855_v26, 5 }
 0x2c2   :  { %v833_v23 = vpop.permute.xlu0 %832 }
 0x2c3   :  { %v854_v24 = vmul.f32 %v4107_v42, %v833_v23 }
 0x2c5   :  { %v871_v27 = vrot.slane %v854_v24, 6 }
 0x2c6   :  { %v839_v29 = vpop.permute.xlu0 %838  ;;  %v837_v31 = vpop.permute.xlu1 %836 }
 0x2c7   :  { %v873_v32 = vsel %vm872_vm5, %v871_v27, %v870_v28  ;;  %v857_v34 = vmul.f32 %v4884_v44, %v839_v29  ;;  %v856_v30 = vmul.f32 %v4891_v48, %v837_v31 }
 0x2c8   :  { %v876_v41 = vsel %vm875_vm6, %v874_v35, %v873_v32  ;;  %v1051_v32 = vrot.slane %v4875_v37, 7  ;;  %v1054_v35 = vrot.slane %v4880_v40, 7  ;;  %v1058_v37 = vrot.slane %v4902_v59, 7 }
 0x2c9   :  { %v877_v36 = vrot.slane %v856_v30, 4  ;;  %v880_v39 = vrot.slane %v857_v34, 3  ;;  %v1053_v34 = vrot.slane %v4886_v45, 7  ;;  %v1052_v30 = vrot.slane %v4869_v33, 7 }
 0x2ca   :  { %v843_v38 = vpop.permute.xlu0 %842  ;;  %v841_v42 = vpop.permute.xlu1 %840  ;;  %v1056_v45 = vrot.slane %v4889_v46, 7 }
 0x2cb   :  { %v879_v43 = vsel %vm878_vm7, %v877_v36, %v876_v41  ;;  %v859_v50 = vmul.f32 %v4894_v56, %v843_v38  ;;  %v858_v52 = vmul.f32 %v4904_v61, %v841_v42  ;;  %v1057_v36 = vrot.slane %v4908_v3, 7 }
 0x2cc   :  { %v882_v48 = vsel %vm881_vm8, %v880_v39, %v879_v43  ;;  %v1055_v39 = vrot.slane %v4897_v58, 7 }
 0x2cd   :  { %v886_v44 = vrot.slane %v859_v50, 1  ;;  %v883_v54 = vrot.slane %v858_v52, 2 }
 0x2cf   :  { %v885_v62 = vsel %vm884_vm9, %v883_v54, %v882_v48 }
 0x2d0   :  { %v888_v0 = vsel %vm887_vm10, %v886_v44, %v885_v62 }
 0x2d1   :  { %889 = vrot.lane.b32.xlu1 %v888_v0, %s4641_s10 }
 0x343   :  { %v890_v1 = vpop.permute.xlu1 %889 }
 0x344   :  { %3911 = vmatmul.mubr.msk.f32.vlgmr.msra.gmra.mrb[4].mxu0 %vm151_vm2, %v890_v1 }
 0x345   :  { %4018 = vmatpush3.bf16.msra.mxu0 %v4921_v9  ;;  %3921 = vmatprep.mubr.msk.f32.mxu0 %vm4637_vm0, %v4638_v4 }
 0x346   :  { %4019 = vmatprep.subr.bf16.mxu0 %v4636_v2 }
 0x349   :  { %4021 = vmatpush3.bf16.msra.mxu0 %v4932_v13 }
 0x34a   :  { %4028 = vmatprep.subr.bf16.mxu0 %v4636_v2 }
 0x417   :  { %v959_v56 = vpop.f32.mrb[4].mxu0 }
 0x418   :  { %v3912_v61 = vpop.f32.mrb[5].mxu0  ;;  %v965_v5 = vrot.slane %v959_v56, 1  ;;  %v964_v6 = vrot.slane %v959_v56, 7  ;;  %v980_v7 = vadd.f32 %v959_v56, %v4823_v47  ;;  %v966_v8 = vrot.slane %v959_v56, 2 }
 0x419   :  { %v967_v11 = vrot.slane %v959_v56, 3  ;;  %v968_v14 = vrot.slane %v959_v56, 4  ;;  %v969_v17 = vrot.slane %v959_v56, 5  ;;  %v970_v19 = vrot.slane %v959_v56, 6 }
 0x41a   :  { %v981_v10 = vadd.f32 %v965_v5, %v4835_v53  ;;  %v979_v12 = vadd.f32 %v964_v6, %v4826_v49  ;;  %4132 = vtanh.f32 %v980_v7  ;;  %v982_v15 = vadd.f32 %v966_v8, %v4832_v51 }
 0x41b   :  { %v983_v18 = vadd.f32 %v967_v11, %v4839_v57  ;;  %v984_v20 = vadd.f32 %v968_v14, %v4837_v55  ;;  %v985_v21 = vadd.f32 %v969_v17, %v4846_v63  ;;  %v986_v22 = vadd.f32 %v970_v19, %v4843_v60 }
 0x41c   :  { %4134 = vtanh.f32 %v981_v10  ;;  %v3730_v33 = vmul.f32 -1.442695, %v980_v7  ;;  %v3729_v40 = vmul.f32 -1.442695, %v979_v12  ;;  %v3732_v41 = vmul.f32 -1.442695, %v982_v15 }
 0x41d   :  { %4136 = vtanh.f32 %v979_v12  ;;  %v3731_v3 = vmul.f32 -1.442695, %v981_v10  ;;  %v3733_v58 = vmul.f32 -1.442695, %v983_v18  ;;  %v3735_v38 = vmul.f32 -1.442695, %v985_v21 }
 0x41e   :  { %4138 = vtanh.f32 %v982_v15  ;;  %v3734_v42 = vmul.f32 -1.442695, %v984_v20  ;;  %v3736_v59 = vmul.f32 -1.442695, %v986_v22 }
 0x41f   :  { %4140 = vtanh.f32 %v983_v18 }
 0x420   :  { %4142 = vtanh.f32 %v984_v20 }
 0x421   :  { %4144 = vtanh.f32 %v985_v21 }
 0x422   :  { %4146 = vtanh.f32 %v986_v22 }
 0x423   :  { %4148 = vpow2.f32 %v3730_v33 }
 0x424   :  { %v4133_v23 = vpop.eup %4132  ;;  %4150 = vpow2.f32 %v3729_v40 }
 0x425   :  { %1101 = vrot.lane.b32.xlu0 %v4133_v23, %s4639_s6  ;;  %4152 = vpow2.f32 %v3732_v41 }
 0x426   :  { %v4135_v24 = vpop.eup %4134  ;;  %4154 = vpow2.f32 %v3731_v3 }
 0x427   :  { %1103 = vrot.lane.b32.xlu1 %v4135_v24, %s4639_s6  ;;  %v4137_v25 = vpop.eup %4136  ;;  %4156 = vpow2.f32 %v3733_v58 }
 0x428   :  { %v4139_v26 = vpop.eup %4138  ;;  %4158 = vpow2.f32 %v3735_v38 }
 0x429   :  { %1099 = vrot.lane.b32.xlu0 %v4137_v25, %s4639_s6  ;;  %v4141_v27 = vpop.eup %4140  ;;  %4160 = vpow2.f32 %v3734_v42 }
 0x42a   :  { %v4143_v28 = vpop.eup %4142  ;;  %4162 = vpow2.f32 %v3736_v59 }
 0x42b   :  { %1105 = vrot.lane.b32.xlu1 %v4139_v26, %s4639_s6  ;;  %v4145_v29 = vpop.eup %4144 }
 0x42c   :  { %v4147_v31 = vpop.eup %4146 }
 0x42d   :  { %1107 = vrot.lane.b32.xlu0 %v4141_v27, %s4639_s6  ;;  %v4149_v43 = vpop.eup %4148 }
 0x42e   :  { %v1012_v46 = vadd.f32 1.0, %v4149_v43  ;;  %v4151_v50 = vpop.eup %4150 }
 0x42f   :  { %1109 = vrot.lane.b32.xlu1 %v4143_v28, %s4639_s6  ;;  %v4153_v52 = vpop.eup %4152  ;;  %v1011_v44 = vadd.f32 1.0, %v4151_v50 }
 0x430   :  { %4164 = vrcp.f32 %v1012_v46  ;;  %v4155_v54 = vpop.eup %4154  ;;  %v1014_v48 = vadd.f32 1.0, %v4153_v52 }
 0x431   :  { %1111 = vrot.lane.b32.xlu0 %v4145_v29, %s4639_s6  ;;  %v4157_v62 = vpop.eup %4156  ;;  %v1013_v0 = vadd.f32 1.0, %v4155_v54  ;;  %4166 = vrcp.f32 %v1011_v44 }
 0x432   :  { %v4159_v1 = vpop.eup %4158  ;;  %4168 = vrcp.f32 %v1014_v48  ;;  %v1015_v56 = vadd.f32 1.0, %v4157_v62 }
 0x433   :  { %1113 = vrot.lane.b32.xlu1 %v4147_v31, %s4639_s6  ;;  %v4161_v61 = vpop.eup %4160  ;;  %4170 = vrcp.f32 %v1013_v0  ;;  %v1017_v5 = vadd.f32 1.0, %v4159_v1 }
 0x434   :  { %v4163_v6 = vpop.eup %4162  ;;  %4172 = vrcp.f32 %v1015_v56  ;;  %v1016_v7 = vadd.f32 1.0, %v4161_v61 }
 0x435   :  { %1059 = vrot.lane.b32.xlu0 %v1051_v32, %s4641_s10  ;;  %4174 = vrcp.f32 %v1017_v5  ;;  %v1018_v14 = vadd.f32 1.0, %v4163_v6 }
 0x436   :  { %4176 = vrcp.f32 %v1016_v7 }
 0x437   :  { %1063 = vrot.lane.b32.xlu1 %v1053_v34, %s4641_s10  ;;  %4178 = vrcp.f32 %v1018_v14 }
 0x439   :  { %1061 = vrot.lane.b32.xlu0 %v1052_v30, %s4641_s10 }
 0x43a   :  { %v4999_v8 = vpop.eup %4164 }
 0x43b   :  { %1065 = vrot.lane.b32.xlu1 %v1054_v35, %s4641_s10  ;;  %v5003_v15 = vpop.eup %4166 }
 0x43c   :  { %v5005_v18 = vpop.eup %4168 }
 0x43d   :  { %1071 = vrot.lane.b32.xlu0 %v1057_v36, %s4641_s10  ;;  %v5010_v22 = vpop.eup %4170 }
 0x43e   :  { %v5013_v24 = vpop.eup %4172 }
 0x43f   :  { %1067 = vrot.lane.b32.xlu1 %v1055_v39, %s4641_s10  ;;  %v5018_v28 = vpop.eup %4174 }
 0x440   :  { %v5021_v31 = vpop.eup %4176 }
 0x441   :  { %1073 = vrot.lane.b32.xlu0 %v1058_v37, %s4641_s10  ;;  %v5027_v35 = vpop.eup %4178 }
 0x443   :  { %1069 = vrot.lane.b32.xlu1 %v1056_v45, %s4641_s10 }
 0x497   :  { %v1102_v10 = vpop.permute.xlu0 %1101 }
 0x498   :  { %v1124_v11 = vmul.f32 %v4999_v8, %v1102_v10 }
 0x499   :  { %v1104_v12 = vpop.permute.xlu1 %1103 }
 0x49a   :  { %1141 = vrot.lane.b32.xlu0 %v1124_v11, %s4641_s10  ;;  %v1125_v25 = vmul.f32 %v5010_v22, %v1104_v12 }
 0x49b   :  { %v1100_v17 = vpop.permute.xlu0 %1099 }
 0x49c   :  { %v1123_v19 = vmul.f32 %v5003_v15, %v1100_v17 }
 0x49d   :  { %v1106_v20 = vpop.permute.xlu1 %1105 }
 0x49e   :  { %v1126_v21 = vmul.f32 %v5005_v18, %v1106_v20  ;;  %1139 = vrot.lane.b32.xlu0 %v1123_v19, %s4641_s10 }
 0x49f   :  { %v1108_v23 = vpop.permute.xlu0 %1107 }
 0x4a0   :  { %1145 = vrot.lane.b32.xlu1 %v1126_v21, %s4641_s10  ;;  %v1127_v27 = vmul.f32 %v5013_v24, %v1108_v23 }
 0x4a1   :  { %v1110_v26 = vpop.permute.xlu1 %1109 }
 0x4a2   :  { %1143 = vrot.lane.b32.xlu0 %v1125_v25, %s4641_s10  ;;  %v1128_v34 = vmul.f32 %v5021_v31, %v1110_v26 }
 0x4a3   :  { %v1112_v29 = vpop.permute.xlu0 %1111 }
 0x4a4   :  { %1147 = vrot.lane.b32.xlu1 %v1127_v27, %s4641_s10  ;;  %v1129_v32 = vmul.f32 %v5018_v28, %v1112_v29 }
 0x4a5   :  { %v1114_v30 = vpop.permute.xlu1 %1113 }
 0x4a6   :  { %1151 = vrot.lane.b32.xlu0 %v1129_v32, %s4641_s10  ;;  %v1130_v36 = vmul.f32 %v5027_v35, %v1114_v30 }
 0x4a7   :  { %v1060_v39 = vpop.permute.xlu0 %1059 }
 0x4a8   :  { %1149 = vrot.lane.b32.xlu1 %v1128_v34, %s4641_s10  ;;  %v1083_v59 = vmul.f32 %v5003_v15, %v1060_v39 }
 0x4a9   :  { %v1064_v37 = vpop.permute.xlu1 %1063 }
 0x4aa   :  { %v1085_v44 = vmul.f32 %v5010_v22, %v1064_v37 }
 0x4ab   :  { %v1062_v45 = vpop.permute.xlu0 %1061 }
 0x4ac   :  { %1153 = vrot.lane.b32.xlu1 %v1130_v36, %s4641_s10  ;;  %v1084_v58 = vmul.f32 %v4999_v8, %v1062_v45 }
 0x4ad   :  { %v1066_v33 = vpop.permute.xlu1 %1065 }
 0x4ae   :  { %v1086_v62 = vmul.f32 %v5005_v18, %v1066_v33 }
 0x4af   :  { %v1072_v40 = vpop.permute.xlu0 %1071 }
 0x4b0   :  { %v1089_v61 = vmul.f32 %v5018_v28, %v1072_v40 }
 0x4b1   :  { %v1068_v41 = vpop.permute.xlu1 %1067 }
 0x4b2   :  { %v1087_v54 = vmul.f32 %v5013_v24, %v1068_v41 }
 0x4b3   :  { %v1074_v3 = vpop.permute.xlu0 %1073 }
 0x4b4   :  { %v1090_v19 = vmul.f32 %v5027_v35, %v1074_v3 }
 0x4b5   :  { %v1070_v42 = vpop.permute.xlu1 %1069 }
 0x4b6   :  { %v1088_v10 = vmul.f32 %v5021_v31, %v1070_v42 }
 0x50c   :  { %v1142_v38 = vpop.permute.xlu0 %1141 }
 0x50d   :  { %v5032_v43 = vadd.f32 %v1142_v38, %v1084_v58 }
 0x50f   :  { %4180 = vtanh.f32 %v5032_v43 }
 0x510   :  { %v1140_v46 = vpop.permute.xlu0 %1139 }
 0x511   :  { %v5036_v50 = vadd.f32 %v1140_v46, %v1083_v59 }
 0x512   :  { %v1146_v52 = vpop.permute.xlu1 %1145 }
 0x513   :  { %4182 = vtanh.f32 %v5036_v50  ;;  %v5047_v5 = vadd.f32 %v1146_v52, %v1086_v62 }
 0x514   :  { %v1144_v48 = vpop.permute.xlu0 %1143 }
 0x515   :  { %v5042_v0 = vadd.f32 %v1144_v48, %v1085_v44 }
 0x516   :  { %v1148_v1 = vpop.permute.xlu1 %1147 }
 0x517   :  { %v5044_v56 = vadd.f32 %v1148_v1, %v1087_v54  ;;  %4184 = vtanh.f32 %v5042_v0 }
 0x518   :  { %v1152_v6 = vpop.permute.xlu0 %1151 }
 0x519   :  { %4186 = vtanh.f32 %v5044_v56  ;;  %v4181_v7 = vpop.eup %4180  ;;  %v5052_v11 = vadd.f32 %v1152_v6, %v1089_v61 }
 0x51a   :  { %v1150_v12 = vpop.permute.xlu1 %1149  ;;  %1189 = vrot.lane.b32.xlu0 %v4181_v7, %s4639_s6  ;;  %4188 = vtanh.f32 %v5047_v5 }
 0x51b   :  { %v5056_v14 = vadd.f32 %v1150_v12, %v1088_v10  ;;  %4190 = vtanh.f32 %v5052_v11 }
 0x51d   :  { %v4183_v17 = vpop.eup %4182  ;;  %4192 = vtanh.f32 %v5056_v14 }
 0x51e   :  { %v1154_v20 = vpop.permute.xlu1 %1153  ;;  %1187 = vrot.lane.b32.xlu0 %v4183_v17, %s4639_s6 }
 0x51f   :  { %v5062_v21 = vadd.f32 %v1154_v20, %v1090_v19 }
 0x521   :  { %v4185_v23 = vpop.eup %4184  ;;  %4194 = vtanh.f32 %v5062_v21 }
 0x522   :  { %1191 = vrot.lane.b32.xlu1 %v4185_v23, %s4639_s6 }
 0x523   :  { %v4187_v25 = vpop.eup %4186 }
 0x524   :  { %1195 = vrot.lane.b32.xlu0 %v4187_v25, %s4639_s6  ;;  %v4189_v26 = vpop.eup %4188 }
 0x525   :  { %v4191_v27 = vpop.eup %4190 }
 0x526   :  { %1193 = vrot.lane.b32.xlu1 %v4189_v26, %s4639_s6 }
 0x527   :  { %v4193_v29 = vpop.eup %4192 }
 0x528   :  { %1199 = vrot.lane.b32.xlu0 %v4191_v27, %s4639_s6 }
 0x52a   :  { %1197 = vrot.lane.b32.xlu1 %v4193_v29, %s4639_s6 }
 0x52b   :  { %v4195_v32 = vpop.eup %4194 }
 0x52e   :  { %1201 = vrot.lane.b32.xlu1 %v4195_v32, %s4639_s6 }
 0x58c   :  { %v1190_v34 = vpop.permute.xlu0 %1189 }
 0x58d   :  { %v1212_v3 = vmul.f32 %v4999_v8, %v1190_v34 }
 0x590   :  { %v1188_v30 = vpop.permute.xlu0 %1187 }
 0x591   :  { %v1211_v36 = vmul.f32 %v5003_v15, %v1188_v30 }
 0x593   :  { %v1227_v33 = vrot.slane %v1211_v36, 1 }
 0x594   :  { %v1192_v39 = vpop.permute.xlu1 %1191 }
 0x595   :  { %v1213_v37 = vmul.f32 %v5010_v22, %v1192_v39  ;;  %v1228_v42 = vsel %vm869_vm4, %v1212_v3, %v1227_v33 }
 0x596   :  { %v1196_v45 = vpop.permute.xlu0 %1195 }
 0x597   :  { %v1229_v40 = vrot.slane %v1213_v37, 7  ;;  %v1215_v38 = vmul.f32 %v5013_v24, %v1196_v45 }
 0x598   :  { %v1194_v41 = vpop.permute.xlu1 %1193 }
 0x599   :  { %v1214_v58 = vmul.f32 %v5005_v18, %v1194_v41  ;;  %v1230_v52 = vsel %vm872_vm5, %v1229_v40, %v1228_v42  ;;  %v1233_v54 = vrot.slane %v1215_v38, 5 }
 0x59a   :  { %v1200_v46 = vpop.permute.xlu0 %1199 }
 0x59b   :  { %v1231_v59 = vrot.slane %v1214_v58, 6  ;;  %v1217_v48 = vmul.f32 %v5018_v28, %v1200_v46 }
 0x59c   :  { %v1198_v15 = vpop.permute.xlu1 %1197 }
 0x59d   :  { %v1232_v44 = vsel %vm875_vm6, %v1231_v59, %v1230_v52  ;;  %v1216_v22 = vmul.f32 %v5021_v31, %v1198_v15  ;;  %v1237_v61 = vrot.slane %v1217_v48, 3 }
 0x59e   :  { %v1234_v18 = vsel %vm878_vm7, %v1233_v54, %v1232_v44 }
 0x59f   :  { %v1235_v62 = vrot.slane %v1216_v22, 4 }
 0x5a0   :  { %v1202_v8 = vpop.permute.xlu1 %1201 }
 0x5a1   :  { %v1218_v24 = vmul.f32 %v5027_v35, %v1202_v8  ;;  %v1236_v1 = vsel %vm881_vm8, %v1235_v62, %v1234_v18 }
 0x5a2   :  { %v1238_v7 = vsel %vm884_vm9, %v1237_v61, %v1236_v1 }
 0x5a3   :  { %v1239_v6 = vrot.slane %v1218_v24, 2 }
 0x5a5   :  { %v1240_v10 = vsel %vm887_vm10, %v1239_v6, %v1238_v7 }
 0x5a6   :  { %1241 = vrot.lane.b32.xlu0 %v1240_v10, %s4641_s10 }
 0x618   :  { %v1242_v31 = vpop.permute.xlu0 %1241 }
 0x619   :  { %3922 = vmatmul.mubr.msk.f32.vlgmr.msra.gmra.mrb[6].mxu0 %vm151_vm2, %v1242_v31 }
 0x61a   :  { %4030 = vmatpush3.bf16.msra.mxu0 %v4921_v9  ;;  %3943 = vmatprep.mubr.msk.f32.mxu0 %vm4637_vm0, %v4638_v4 }
 0x61b   :  { %4031 = vmatprep.subr.bf16.mxu0 %v4636_v2 }
 0x61e   :  { %4033 = vmatpush3.bf16.msra.mxu0 %v4932_v13 }
 0x61f   :  { %4040 = vmatprep.subr.bf16.mxu0 %v4636_v2 }
 0x6ec   :  { %v1311_v28 = vpop.f32.mrb[6].mxu0 }
 0x6ed   :  { %v1316_v35 = vrot.slane %v1311_v28, 6  ;;  %v3923_v12 = vpop.f32.mrb[7].mxu0  ;;  %v1318_v19 = vrot.slane %v1311_v28, 1  ;;  %v1317_v20 = vrot.slane %v1311_v28, 7  ;;  %v1333_v23 = vadd.f32 %v1311_v28, %v4835_v53 }
 0x6ee   :  { %v1319_v25 = vrot.slane %v1311_v28, 2  ;;  %v1320_v29 = vrot.slane %v1311_v28, 3  ;;  %v1321_v34 = vrot.slane %v1311_v28, 4  ;;  %v1322_v36 = vrot.slane %v1311_v28, 5 }
 0x6ef   :  { %v1331_v17 = vadd.f32 %v1316_v35, %v4826_v49  ;;  %v1334_v26 = vadd.f32 %v1318_v19, %v4832_v51  ;;  %v1332_v32 = vadd.f32 %v1317_v20, %v4823_v47  ;;  %v3740_v46 = vmul.f32 -1.442695, %v1333_v23 }
 0x6f0   :  { %v1335_v30 = vadd.f32 %v1319_v25, %v4839_v57  ;;  %v1336_v39 = vadd.f32 %v1320_v29, %v4837_v55  ;;  %v1337_v37 = vadd.f32 %v1321_v34, %v4846_v63  ;;  %v1338_v45 = vadd.f32 %v1322_v36, %v4843_v60 }
 0x6f1   :  { %4196 = vtanh.f32 %v1331_v17  ;;  %v3738_v59 = vmul.f32 -1.442695, %v1331_v17  ;;  %v3741_v52 = vmul.f32 -1.442695, %v1334_v26  ;;  %v3739_v44 = vmul.f32 -1.442695, %v1332_v32 }
 0x6f2   :  { %4198 = vtanh.f32 %v1333_v23  ;;  %v3742_v22 = vmul.f32 -1.442695, %v1335_v30  ;;  %v3743_v48 = vmul.f32 -1.442695, %v1336_v39  ;;  %v3744_v62 = vmul.f32 -1.442695, %v1337_v37 }
 0x6f3   :  { %4200 = vtanh.f32 %v1334_v26  ;;  %v3745_v8 = vmul.f32 -1.442695, %v1338_v45 }
 0x6f4   :  { %4202 = vtanh.f32 %v1332_v32 }
 0x6f5   :  { %4204 = vtanh.f32 %v1335_v30 }
 0x6f6   :  { %4206 = vtanh.f32 %v1336_v39 }
 0x6f7   :  { %4208 = vtanh.f32 %v1337_v37 }
 0x6f8   :  { %4210 = vtanh.f32 %v1338_v45 }
 0x6f9   :  { %4212 = vpow2.f32 %v3738_v59 }
 0x6fa   :  { %4214 = vpow2.f32 %v3740_v46 }
 0x6fb   :  { %v4197_v27 = vpop.eup %4196  ;;  %4216 = vpow2.f32 %v3741_v52 }
 0x6fc   :  { %1435 = vrot.lane.b32.xlu1 %v4197_v27, %s4639_s6  ;;  %v4199_v33 = vpop.eup %4198  ;;  %4218 = vpow2.f32 %v3739_v44 }
 0x6fd   :  { %v4201_v40 = vpop.eup %4200  ;;  %1439 = vrot.lane.b32.xlu0 %v4199_v33, %s4639_s6  ;;  %4220 = vpow2.f32 %v3742_v22  ;;  %v1403_v22 = vrot.slane %v5036_v50, 7 }
 0x6fe   :  { %v4203_v41 = vpop.eup %4202 }
 0x6ff   :  { %v4205_v3 = vpop.eup %4204 }
 0x700   :  { %1441 = vrot.lane.b32.xlu1 %v4201_v40, %s4639_s6  ;;  %v4207_v58 = vpop.eup %4206 }
 0x701   :  { %1437 = vrot.lane.b32.xlu0 %v4203_v41, %s4639_s6  ;;  %v4209_v38 = vpop.eup %4208 }
 0x702   :  { %v4211_v42 = vpop.eup %4210 }
 0x703   :  { %v4213_v15 = vpop.eup %4212 }
 0x704   :  { %1443 = vrot.lane.b32.xlu1 %v4205_v3, %s4639_s6  ;;  %v1363_v54 = vadd.f32 1.0, %v4213_v15  ;;  %v4215_v18 = vpop.eup %4214 }
 0x705   :  { %1445 = vrot.lane.b32.xlu0 %v4207_v58, %s4639_s6  ;;  %v4217_v24 = vpop.eup %4216  ;;  %v1365_v1 = vadd.f32 1.0, %v4215_v18  ;;  %v1406_v18 = vrot.slane %v5047_v5, 7 }
 0x706   :  { %4222 = vrcp.f32 %v1363_v54  ;;  %v4219_v61 = vpop.eup %4218  ;;  %v1366_v6 = vadd.f32 1.0, %v4217_v24 }
 0x707   :  { %4224 = vpow2.f32 %v3743_v48  ;;  %v4221_v7 = vpop.eup %4220  ;;  %v1364_v28 = vadd.f32 1.0, %v4219_v61 }
 0x708   :  { %1447 = vrot.lane.b32.xlu1 %v4209_v38, %s4639_s6  ;;  %4226 = vpow2.f32 %v3744_v62  ;;  %v1367_v17 = vadd.f32 1.0, %v4221_v7 }
 0x709   :  { %1449 = vrot.lane.b32.xlu0 %v4211_v42, %s4639_s6  ;;  %4228 = vpow2.f32 %v3745_v8  ;;  %v1405_v8 = vrot.slane %v5042_v0, 7 }
 0x70a   :  { %4230 = vrcp.f32 %v1365_v1 }
 0x70b   :  { %4232 = vrcp.f32 %v1366_v6  ;;  %v1404_v6 = vrot.slane %v5032_v43, 7  ;;  %v1408_v43 = vrot.slane %v5056_v14, 7 }
 0x70c   :  { %4234 = vrcp.f32 %v1364_v28 }
 0x70d   :  { %4236 = vrcp.f32 %v1367_v17 }
 0x710   :  { %v5110_v10 = vpop.eup %4222 }
 0x711   :  { %v4225_v35 = vpop.eup %4224  ;;  %v1419_v54 = vmul.f32 %v5110_v10, %v1403_v22 }
 0x712   :  { %v4227_v19 = vpop.eup %4226  ;;  %v1368_v20 = vadd.f32 1.0, %v4225_v35 }
 0x713   :  { %v4229_v23 = vpop.eup %4228  ;;  %v1369_v25 = vadd.f32 1.0, %v4227_v19 }
 0x714   :  { %4238 = vrcp.f32 %v1368_v20  ;;  %v1370_v26 = vadd.f32 1.0, %v4229_v23  ;;  %v5114_v27 = vpop.eup %4230 }
 0x715   :  { %4240 = vrcp.f32 %v1369_v25  ;;  %v5116_v32 = vpop.eup %4232  ;;  %v1421_v24 = vmul.f32 %v5114_v27, %v1405_v8 }
 0x716   :  { %4242 = vrcp.f32 %v1370_v26  ;;  %v5121_v39 = vpop.eup %4234  ;;  %v1422_v61 = vmul.f32 %v5116_v32, %v1406_v18 }
 0x717   :  { %v5124_v45 = vpop.eup %4236  ;;  %v1420_v0 = vmul.f32 %v5121_v39, %v1404_v6 }
 0x71e   :  { %v5129_v3 = vpop.eup %4238 }
 0x71f   :  { %v5132_v38 = vpop.eup %4240  ;;  %v1424_v23 = vmul.f32 %v5129_v3, %v1408_v43 }
 0x720   :  { %v5137_v52 = vpop.eup %4242 }
 0x76e   :  { %v1436_v31 = vpop.permute.xlu1 %1435 }
 0x76f   :  { %v1459_v12 = vmul.f32 %v5110_v10, %v1436_v31  ;;  %v1440_v29 = vpop.permute.xlu0 %1439  ;;  %v1407_v31 = vrot.slane %v5044_v56, 7  ;;  %v1409_v56 = vrot.slane %v5052_v11, 7 }
 0x770   :  { %v1461_v34 = vmul.f32 %v5114_v27, %v1440_v29  ;;  %v1410_v29 = vrot.slane %v5062_v21, 7 }
 0x771   :  { %1475 = vrot.lane.b32.xlu1 %v1459_v12, %s4641_s10  ;;  %v1423_v12 = vmul.f32 %v5124_v45, %v1407_v31  ;;  %v1425_v26 = vmul.f32 %v5132_v38, %v1409_v56 }
 0x772   :  { %v1442_v30 = vpop.permute.xlu1 %1441  ;;  %1479 = vrot.lane.b32.xlu0 %v1461_v34, %s4641_s10  ;;  %v1426_v11 = vmul.f32 %v5137_v52, %v1410_v29 }
 0x773   :  { %v1462_v36 = vmul.f32 %v5116_v32, %v1442_v30  ;;  %v1438_v37 = vpop.permute.xlu0 %1437 }
 0x774   :  { %v1460_v33 = vmul.f32 %v5121_v39, %v1438_v37 }
 0x775   :  { %1481 = vrot.lane.b32.xlu1 %v1462_v36, %s4641_s10 }
 0x776   :  { %v1444_v40 = vpop.permute.xlu1 %1443  ;;  %1477 = vrot.lane.b32.xlu0 %v1460_v33, %s4641_s10 }
 0x777   :  { %v1463_v41 = vmul.f32 %v5124_v45, %v1444_v40  ;;  %v1446_v58 = vpop.permute.xlu0 %1445 }
 0x778   :  { %v1464_v42 = vmul.f32 %v5129_v3, %v1446_v58 }
 0x779   :  { %1483 = vrot.lane.b32.xlu1 %v1463_v41, %s4641_s10 }
 0x77a   :  { %v1448_v59 = vpop.permute.xlu1 %1447  ;;  %1485 = vrot.lane.b32.xlu0 %v1464_v42, %s4641_s10 }
 0x77b   :  { %v1465_v46 = vmul.f32 %v5132_v38, %v1448_v59  ;;  %v1450_v15 = vpop.permute.xlu0 %1449 }
 0x77c   :  { %v1466_v44 = vmul.f32 %v5137_v52, %v1450_v15 }
 0x77d   :  { %1487 = vrot.lane.b32.xlu1 %v1465_v46, %s4641_s10 }
 0x77e   :  { %1489 = vrot.lane.b32.xlu0 %v1466_v44, %s4641_s10 }
 0x7e3   :  { %v1476_v48 = vpop.permute.xlu1 %1475 }
 0x7e4   :  { %v5144_v62 = vadd.f32 %v1476_v48, %v1419_v54  ;;  %v1480_v1 = vpop.permute.xlu0 %1479 }
 0x7e5   :  { %v5152_v7 = vadd.f32 %v1480_v1, %v1421_v24 }
 0x7e6   :  { %4244 = vtanh.f32 %v5144_v62 }
 0x7e7   :  { %v1482_v50 = vpop.permute.xlu1 %1481  ;;  %4246 = vtanh.f32 %v5152_v7 }
 0x7e8   :  { %v5155_v28 = vadd.f32 %v1482_v50, %v1422_v61  ;;  %v1478_v5 = vpop.permute.xlu0 %1477 }
 0x7e9   :  { %v5163_v17 = vadd.f32 %v1478_v5, %v1420_v0 }
 0x7ea   :  { %4248 = vtanh.f32 %v5155_v28 }
 0x7eb   :  { %v1484_v19 = vpop.permute.xlu1 %1483  ;;  %4250 = vtanh.f32 %v5163_v17 }
 0x7ec   :  { %v5166_v20 = vadd.f32 %v1484_v19, %v1423_v12  ;;  %v1486_v25 = vpop.permute.xlu0 %1485 }
 0x7ed   :  { %v5173_v34 = vadd.f32 %v1486_v25, %v1424_v23 }
 0x7ee   :  { %4252 = vtanh.f32 %v5166_v20 }
 0x7ef   :  { %v1488_v14 = vpop.permute.xlu1 %1487  ;;  %4254 = vtanh.f32 %v5173_v34 }
 0x7f0   :  { %v4245_v35 = vpop.eup %4244  ;;  %v5175_v30 = vadd.f32 %v1488_v14, %v1425_v26  ;;  %v1490_v36 = vpop.permute.xlu0 %1489 }
 0x7f1   :  { %1523 = vrot.lane.b32.xlu1 %v4245_v35, %s4639_s6  ;;  %v4247_v37 = vpop.eup %4246  ;;  %v5180_v33 = vadd.f32 %v1490_v36, %v1426_v11 }
 0x7f2   :  { %4256 = vtanh.f32 %v5175_v30  ;;  %1527 = vrot.lane.b32.xlu0 %v4247_v37, %s4639_s6 }
 0x7f3   :  { %4258 = vtanh.f32 %v5180_v33 }
 0x7f4   :  { %v4249_v40 = vpop.eup %4248 }
 0x7f5   :  { %1529 = vrot.lane.b32.xlu1 %v4249_v40, %s4639_s6  ;;  %v4251_v21 = vpop.eup %4250 }
 0x7f6   :  { %1525 = vrot.lane.b32.xlu0 %v4251_v21, %s4639_s6 }
 0x7f8   :  { %v4253_v41 = vpop.eup %4252 }
 0x7f9   :  { %1531 = vrot.lane.b32.xlu1 %v4253_v41, %s4639_s6  ;;  %v4255_v58 = vpop.eup %4254 }
 0x7fa   :  { %1533 = vrot.lane.b32.xlu0 %v4255_v58, %s4639_s6 }
 0x7fc   :  { %v4257_v42 = vpop.eup %4256 }
 0x7fd   :  { %1535 = vrot.lane.b32.xlu1 %v4257_v42, %s4639_s6  ;;  %v4259_v59 = vpop.eup %4258 }
 0x7fe   :  { %1537 = vrot.lane.b32.xlu0 %v4259_v59, %s4639_s6 }
 0x863   :  { %v1524_v46 = vpop.permute.xlu1 %1523 }
 0x864   :  { %v1528_v15 = vpop.permute.xlu0 %1527  ;;  %v1547_v22 = vmul.f32 %v5110_v10, %v1524_v46 }
 0x865   :  { %v1549_v50 = vmul.f32 %v5114_v27, %v1528_v15 }
 0x866   :  { %v1563_v1 = vrot.slane %v1547_v22, 2 }
 0x867   :  { %v1530_v44 = vpop.permute.xlu1 %1529 }
 0x868   :  { %v1550_v54 = vmul.f32 %v5116_v32, %v1530_v44  ;;  %v1526_v48 = vpop.permute.xlu0 %1525 }
 0x869   :  { %v1548_v8 = vmul.f32 %v5121_v39, %v1526_v48 }
 0x86a   :  { %v1567_v6 = vrot.slane %v1550_v54, 7 }
 0x86b   :  { %v1532_v18 = vpop.permute.xlu1 %1531  ;;  %v1564_v61 = vrot.slane %v1548_v8, 1 }
 0x86c   :  { %v1551_v24 = vmul.f32 %v5124_v45, %v1532_v18  ;;  %v1534_v31 = vpop.permute.xlu0 %1533 }
 0x86d   :  { %v1565_v0 = vsel %vm869_vm4, %v1564_v61, %v1563_v1  ;;  %v1552_v5 = vmul.f32 %v5129_v3, %v1534_v31 }
 0x86e   :  { %v1569_v35 = vrot.slane %v1551_v24, 6  ;;  %v1566_v32 = vsel %vm872_vm5, %v1549_v50, %v1565_v0 }
 0x86f   :  { %v1536_v10 = vpop.permute.xlu1 %1535  ;;  %v1568_v39 = vsel %vm875_vm6, %v1567_v6, %v1566_v32  ;;  %v1571_v43 = vrot.slane %v1552_v5, 5 }
 0x870   :  { %v1553_v12 = vmul.f32 %v5132_v38, %v1536_v10  ;;  %v1570_v45 = vsel %vm878_vm7, %v1569_v35, %v1568_v39  ;;  %v1538_v19 = vpop.permute.xlu0 %1537 }
 0x871   :  { %v1554_v27 = vmul.f32 %v5137_v52, %v1538_v19  ;;  %v1572_v23 = vsel %vm881_vm8, %v1571_v43, %v1570_v45 }
 0x872   :  { %v1573_v56 = vrot.slane %v1553_v12, 4 }
 0x873   :  { %v1575_v26 = vrot.slane %v1554_v27, 3 }
 0x874   :  { %v1574_v25 = vsel %vm884_vm9, %v1573_v56, %v1572_v23 }
 0x875   :  { %v1576_v3 = vsel %vm887_vm10, %v1575_v26, %v1574_v25 }
 0x876   :  { %1577 = vrot.lane.b32.xlu1 %v1576_v3, %s4641_s10 }
 0x8e8   :  { %v1578_v29 = vpop.permute.xlu1 %1577 }
 0x8e9   :  { %3933 = vmatmul.mubr.msk.f32.vlgmr.msra.gmra.mrb[10].mxu1 %vm151_vm2, %v1578_v29 }
 0x8ea   :  { %4036 = vmatpush3.bf16.msra.mxu1 %v4921_v9  ;;  %3954 = vmatprep.mubr.msk.f32.mxu1 %vm4637_vm0, %v4638_v4 }
 0x8eb   :  { %4037 = vmatprep.subr.bf16.mxu1 %v4636_v2 }
 0x8ee   :  { %4039 = vmatpush3.bf16.msra.mxu1 %v4932_v13 }
 0x8ef   :  { %4046 = vmatprep.subr.bf16.mxu1 %v4636_v2 }
 0x9bc   :  { %v1647_v38 = vpop.f32.mrb[10].mxu1 }
 0x9bd   :  { %v3934_v52 = vpop.f32.mrb[11].mxu1  ;;  %v1653_v14 = vrot.slane %v1647_v38, 6  ;;  %v1655_v11 = vrot.slane %v1647_v38, 1  ;;  %v1652_v37 = vrot.slane %v1647_v38, 5  ;;  %v1670_v40 = vadd.f32 %v1647_v38, %v4832_v51 }
 0x9be   :  { %v1656_v21 = vrot.slane %v1647_v38, 2  ;;  %v1654_v58 = vrot.slane %v1647_v38, 7  ;;  %v1658_v59 = vrot.slane %v1647_v38, 4  ;;  %v1657_v15 = vrot.slane %v1647_v38, 3 }
 0x9bf   :  { %v1668_v36 = vadd.f32 %v1653_v14, %v4823_v47  ;;  %v1671_v41 = vadd.f32 %v1655_v11, %v4839_v57  ;;  %v1667_v42 = vadd.f32 %v1652_v37, %v4826_v49  ;;  %v3750_v35 = vmul.f32 -1.442695, %v1670_v40 }
 0x9c0   :  { %v1672_v46 = vadd.f32 %v1656_v21, %v4837_v55  ;;  %v1669_v44 = vadd.f32 %v1654_v58, %v4835_v53  ;;  %v1674_v22 = vadd.f32 %v1658_v59, %v4843_v60  ;;  %v1673_v48 = vadd.f32 %v1657_v15, %v4846_v63 }
 0x9c1   :  { %4260 = vtanh.f32 %v1668_v36  ;;  %v3748_v31 = vmul.f32 -1.442695, %v1668_v36  ;;  %v3751_v0 = vmul.f32 -1.442695, %v1671_v41  ;;  %v3747_v5 = vmul.f32 -1.442695, %v1667_v42 }
 0x9c2   :  { %4262 = vtanh.f32 %v1670_v40  ;;  %v3752_v10 = vmul.f32 -1.442695, %v1672_v46  ;;  %v3749_v32 = vmul.f32 -1.442695, %v1669_v44  ;;  %v3754_v12 = vmul.f32 -1.442695, %v1674_v22 }
 0x9c3   :  { %4264 = vtanh.f32 %v1671_v41  ;;  %v3753_v43 = vmul.f32 -1.442695, %v1673_v48 }
 0x9c4   :  { %4266 = vtanh.f32 %v1667_v42 }
 0x9c5   :  { %4268 = vtanh.f32 %v1672_v46 }
 0x9c6   :  { %4270 = vtanh.f32 %v1669_v44 }
 0x9c7   :  { %4272 = vtanh.f32 %v1674_v22 }
 0x9c8   :  { %4274 = vtanh.f32 %v1673_v48 }
 0x9c9   :  { %4276 = vpow2.f32 %v3748_v31 }
 0x9ca   :  { %4278 = vpow2.f32 %v3750_v35 }
 0x9cb   :  { %v4261_v54 = vpop.eup %4260  ;;  %4280 = vpow2.f32 %v3751_v0 }
 0x9cc   :  { %1773 = vrot.lane.b32.xlu1 %v4261_v54, %s4639_s6  ;;  %v4263_v8 = vpop.eup %4262  ;;  %4282 = vpow2.f32 %v3747_v5 }
 0x9cd   :  { %1777 = vrot.lane.b32.xlu0 %v4263_v8, %s4639_s6  ;;  %v4265_v18 = vpop.eup %4264  ;;  %4284 = vpow2.f32 %v3752_v10 }
 0x9ce   :  { %v4267_v24 = vpop.eup %4266  ;;  %4286 = vpow2.f32 %v3749_v32  ;;  %v1740_v32 = vrot.slane %v5163_v17, 7 }
 0x9cf   :  { %v4269_v1 = vpop.eup %4268  ;;  %4288 = vpow2.f32 %v3754_v12  ;;  %v1742_v12 = vrot.slane %v5155_v28, 7  ;;  %v1744_v28 = vrot.slane %v5173_v34, 7 }
 0x9d0   :  { %1779 = vrot.lane.b32.xlu1 %v4265_v18, %s4639_s6  ;;  %v4271_v61 = vpop.eup %4270  ;;  %4290 = vpow2.f32 %v3753_v43 }
 0x9d1   :  { %1771 = vrot.lane.b32.xlu0 %v4267_v24, %s4639_s6  ;;  %v4273_v6 = vpop.eup %4272 }
 0x9d2   :  { %v4275_v50 = vpop.eup %4274 }
 0x9d3   :  { %v4277_v39 = vpop.eup %4276 }
 0x9d4   :  { %1781 = vrot.lane.b32.xlu1 %v4269_v1, %s4639_s6  ;;  %v4279_v45 = vpop.eup %4278  ;;  %v1700_v19 = vadd.f32 1.0, %v4277_v39 }
 0x9d5   :  { %1775 = vrot.lane.b32.xlu0 %v4271_v61, %s4639_s6  ;;  %v4281_v56 = vpop.eup %4280  ;;  %v1702_v27 = vadd.f32 1.0, %v4279_v45  ;;  %v1743_v45 = vrot.slane %v5166_v20, 7 }
 0x9d6   :  { %v4283_v23 = vpop.eup %4282  ;;  %4292 = vrcp.f32 %v1700_v19  ;;  %v1703_v25 = vadd.f32 1.0, %v4281_v56 }
 0x9d7   :  { %v4285_v26 = vpop.eup %4284  ;;  %4294 = vrcp.f32 %v1702_v27  ;;  %v1699_v3 = vadd.f32 1.0, %v4283_v23  ;;  %v1739_v23 = vrot.slane %v5144_v62, 7 }
 0x9d8   :  { %1785 = vrot.lane.b32.xlu1 %v4273_v6, %s4639_s6  ;;  %v4287_v29 = vpop.eup %4286  ;;  %4296 = vrcp.f32 %v1703_v25  ;;  %v1704_v38 = vadd.f32 1.0, %v4285_v26 }
 0x9d9   :  { %1783 = vrot.lane.b32.xlu0 %v4275_v50, %s4639_s6  ;;  %v4289_v52 = vpop.eup %4288  ;;  %4298 = vrcp.f32 %v1699_v3  ;;  %v1701_v14 = vadd.f32 1.0, %v4287_v29 }
 0x9da   :  { %v4291_v11 = vpop.eup %4290  ;;  %4300 = vrcp.f32 %v1704_v38  ;;  %v1706_v36 = vadd.f32 1.0, %v4289_v52  ;;  %v1741_v38 = vrot.slane %v5152_v7, 7 }
 0x9db   :  { %4302 = vrcp.f32 %v1701_v14  ;;  %v1705_v21 = vadd.f32 1.0, %v4291_v11  ;;  %v1746_v11 = vrot.slane %v5180_v33, 7 }
 0x9dc   :  { %4304 = vrcp.f32 %v1706_v36 }
 0x9dd   :  { %4306 = vrcp.f32 %v1705_v21  ;;  %v1745_v21 = vrot.slane %v5175_v30, 7 }
 0x9e0   :  { %v5229_v37 = vpop.eup %4292 }
 0x9e1   :  { %v5232_v58 = vpop.eup %4294  ;;  %v1756_v39 = vmul.f32 %v5229_v37, %v1740_v32 }
 0x9e2   :  { %v5236_v46 = vpop.eup %4296  ;;  %v1758_v19 = vmul.f32 %v5232_v58, %v1742_v12 }
 0x9e3   :  { %v5240_v22 = vpop.eup %4298  ;;  %v1759_v17 = vmul.f32 %v5236_v46, %v1743_v45 }
 0x9e4   :  { %v5244_v8 = vpop.eup %4300  ;;  %v1755_v20 = vmul.f32 %v5240_v22, %v1739_v23 }
 0x9e5   :  { %v5248_v1 = vpop.eup %4302  ;;  %v1760_v62 = vmul.f32 %v5244_v8, %v1744_v28 }
 0x9e6   :  { %v5252_v50 = vpop.eup %4304  ;;  %v1757_v34 = vmul.f32 %v5248_v1, %v1741_v38 }
 0x9e7   :  { %v5256_v0 = vpop.eup %4306  ;;  %v1762_v7 = vmul.f32 %v5252_v50, %v1746_v11 }
 0x9e8   :  { %v1761_v33 = vmul.f32 %v5256_v0, %v1745_v21 }
 0xa3e   :  { %v1774_v40 = vpop.permute.xlu1 %1773 }
 0xa3f   :  { %v1796_v41 = vmul.f32 %v5229_v37, %v1774_v40  ;;  %v1778_v42 = vpop.permute.xlu0 %1777 }
 0xa40   :  { %v1798_v59 = vmul.f32 %v5232_v58, %v1778_v42 }
 0xa41   :  { %1813 = vrot.lane.b32.xlu1 %v1796_v41, %s4641_s10 }
 0xa42   :  { %v1780_v15 = vpop.permute.xlu1 %1779  ;;  %1817 = vrot.lane.b32.xlu0 %v1798_v59, %s4641_s10 }
 0xa43   :  { %v1799_v44 = vmul.f32 %v5236_v46, %v1780_v15  ;;  %v1772_v54 = vpop.permute.xlu0 %1771 }
 0xa44   :  { %v1795_v48 = vmul.f32 %v5240_v22, %v1772_v54 }
 0xa45   :  { %1819 = vrot.lane.b32.xlu1 %v1799_v44, %s4641_s10 }
 0xa46   :  { %v1782_v18 = vpop.permute.xlu1 %1781  ;;  %1811 = vrot.lane.b32.xlu0 %v1795_v48, %s4641_s10 }
 0xa47   :  { %v1800_v24 = vmul.f32 %v5244_v8, %v1782_v18  ;;  %v1776_v61 = vpop.permute.xlu0 %1775 }
 0xa48   :  { %v1797_v6 = vmul.f32 %v5248_v1, %v1776_v61 }
 0xa49   :  { %1821 = vrot.lane.b32.xlu1 %v1800_v24, %s4641_s10 }
 0xa4a   :  { %v1786_v31 = vpop.permute.xlu1 %1785  ;;  %1815 = vrot.lane.b32.xlu0 %v1797_v6, %s4641_s10 }
 0xa4b   :  { %v1802_v35 = vmul.f32 %v5252_v50, %v1786_v31  ;;  %v1784_v5 = vpop.permute.xlu0 %1783 }
 0xa4c   :  { %v1801_v10 = vmul.f32 %v5256_v0, %v1784_v5 }
 0xa4d   :  { %1825 = vrot.lane.b32.xlu1 %v1802_v35, %s4641_s10 }
 0xa4e   :  { %1823 = vrot.lane.b32.xlu0 %v1801_v10, %s4641_s10 }
 0xab3   :  { %v1814_v43 = vpop.permute.xlu1 %1813 }
 0xab4   :  { %v5266_v56 = vadd.f32 %v1814_v43, %v1756_v39  ;;  %v1818_v27 = vpop.permute.xlu0 %1817 }
 0xab5   :  { %v5269_v25 = vadd.f32 %v1818_v27, %v1758_v19 }
 0xab6   :  { %4308 = vtanh.f32 %v5266_v56 }
 0xab7   :  { %v1820_v26 = vpop.permute.xlu1 %1819  ;;  %4310 = vtanh.f32 %v5269_v25 }
 0xab8   :  { %v5276_v3 = vadd.f32 %v1820_v26, %v1759_v17  ;;  %v1812_v29 = vpop.permute.xlu0 %1811 }
 0xab9   :  { %v5279_v52 = vadd.f32 %v1812_v29, %v1755_v20 }
 0xaba   :  { %4312 = vtanh.f32 %v5276_v3 }
 0xabb   :  { %v1822_v14 = vpop.permute.xlu1 %1821  ;;  %4314 = vtanh.f32 %v5279_v52 }
 0xabc   :  { %v5286_v36 = vadd.f32 %v1822_v14, %v1760_v62  ;;  %v1816_v40 = vpop.permute.xlu0 %1815 }
 0xabd   :  { %v5289_v41 = vadd.f32 %v1816_v40, %v1757_v34 }
 0xabe   :  { %4316 = vtanh.f32 %v5286_v36 }
 0xabf   :  { %v1826_v42 = vpop.permute.xlu1 %1825  ;;  %4318 = vtanh.f32 %v5289_v41 }
 0xac0   :  { %v4309_v59 = vpop.eup %4308  ;;  %v5295_v15 = vadd.f32 %v1826_v42, %v1762_v7  ;;  %v1824_v44 = vpop.permute.xlu0 %1823 }
 0xac1   :  { %1861 = vrot.lane.b32.xlu1 %v4309_v59, %s4639_s6  ;;  %v4311_v54 = vpop.eup %4310  ;;  %v5298_v48 = vadd.f32 %v1824_v44, %v1761_v33 }
 0xac2   :  { %4320 = vtanh.f32 %v5295_v15  ;;  %1865 = vrot.lane.b32.xlu0 %v4311_v54, %s4639_s6 }
 0xac3   :  { %4322 = vtanh.f32 %v5298_v48 }
 0xac4   :  { %v4313_v30 = vpop.eup %4312 }
 0xac5   :  { %1867 = vrot.lane.b32.xlu1 %v4313_v30, %s4639_s6  ;;  %v4315_v18 = vpop.eup %4314 }
 0xac6   :  { %1859 = vrot.lane.b32.xlu0 %v4315_v18, %s4639_s6 }
 0xac8   :  { %v4317_v24 = vpop.eup %4316 }
 0xac9   :  { %1869 = vrot.lane.b32.xlu1 %v4317_v24, %s4639_s6  ;;  %v4319_v61 = vpop.eup %4318 }
 0xaca   :  { %1863 = vrot.lane.b32.xlu0 %v4319_v61, %s4639_s6 }
 0xacc   :  { %v4321_v6 = vpop.eup %4320 }
 0xacd   :  { %1873 = vrot.lane.b32.xlu1 %v4321_v6, %s4639_s6  ;;  %v4323_v31 = vpop.eup %4322 }
 0xace   :  { %1871 = vrot.lane.b32.xlu0 %v4323_v31, %s4639_s6 }
 0xb33   :  { %v1862_v35 = vpop.permute.xlu1 %1861 }
 0xb34   :  { %v1866_v5 = vpop.permute.xlu0 %1865  ;;  %v1884_v39 = vmul.f32 %v5229_v37, %v1862_v35 }
 0xb35   :  { %v1886_v38 = vmul.f32 %v5232_v58, %v1866_v5 }
 0xb36   :  { %v1900_v26 = vrot.slane %v1884_v39, 2 }
 0xb37   :  { %v1868_v10 = vpop.permute.xlu1 %1867 }
 0xb38   :  { %v1860_v32 = vpop.permute.xlu0 %1859  ;;  %v1887_v23 = vmul.f32 %v5236_v46, %v1868_v10 }
 0xb39   :  { %v1883_v12 = vmul.f32 %v5240_v22, %v1860_v32 }
 0xb3a   :  { %v1905_v14 = vrot.slane %v1887_v23, 7 }
 0xb3b   :  { %v1870_v43 = vpop.permute.xlu1 %1869  ;;  %v1899_v45 = vrot.slane %v1883_v12, 3 }
 0xb3c   :  { %v1864_v19 = vpop.permute.xlu0 %1863  ;;  %v1888_v27 = vmul.f32 %v5244_v8, %v1870_v43 }
 0xb3d   :  { %v1885_v17 = vmul.f32 %v5248_v1, %v1864_v19  ;;  %v1901_v22 = vsel %vm869_vm4, %v1900_v26, %v1899_v45 }
 0xb3e   :  { %v1907_v62 = vrot.slane %v1888_v27, 6 }
 0xb3f   :  { %v1874_v28 = vpop.permute.xlu1 %1873  ;;  %v1902_v20 = vrot.slane %v1885_v17, 1 }
 0xb40   :  { %v1890_v29 = vmul.f32 %v5252_v50, %v1874_v28  ;;  %v1872_v37 = vpop.permute.xlu0 %1871 }
 0xb41   :  { %v1903_v11 = vsel %vm872_vm5, %v1902_v20, %v1901_v22  ;;  %v1889_v8 = vmul.f32 %v5256_v0, %v1872_v37 }
 0xb42   :  { %v1904_v46 = vsel %vm875_vm6, %v1886_v38, %v1903_v11  ;;  %v1911_v34 = vrot.slane %v1890_v29, 4 }
 0xb43   :  { %v1906_v1 = vsel %vm878_vm7, %v1905_v14, %v1904_v46  ;;  %v1909_v40 = vrot.slane %v1889_v8, 5 }
 0xb44   :  { %v1908_v21 = vsel %vm881_vm8, %v1907_v62, %v1906_v1 }
 0xb45   :  { %v1910_v50 = vsel %vm884_vm9, %v1909_v40, %v1908_v21 }
 0xb46   :  { %v1912_v58 = vsel %vm887_vm10, %v1911_v34, %v1910_v50 }
 0xb47   :  { %1913 = vrot.lane.b32.xlu0 %v1912_v58, %s4641_s10 }
 0xbb9   :  { %v1914_v7 = vpop.permute.xlu0 %1913 }
 0xbba   :  { %3944 = vmatmul.mubr.msk.f32.vlgmr.msra.gmra.mrb[8].mxu0 %vm151_vm2, %v1914_v7 }
 0xbbb   :  { %4042 = vmatpush3.bf16.msra.mxu0 %v4921_v9  ;;  %3965 = vmatprep.mubr.msk.f32.mxu0 %vm4637_vm0, %v4638_v4 }
 0xbbc   :  { %4043 = vmatprep.subr.bf16.mxu0 %v4636_v2 }
 0xbbf   :  { %4045 = vmatpush3.bf16.msra.mxu0 %v4932_v13 }
 0xbc0   :  { %4052 = vmatprep.subr.bf16.mxu0 %v4636_v2 }
 0xc8d   :  { %v1983_v0 = vpop.f32.mrb[8].mxu0 }
 0xc8e   :  { %v1988_v42 = vrot.slane %v1983_v0, 4  ;;  %v3945_v59 = vpop.f32.mrb[9].mxu0  ;;  %v1990_v44 = vrot.slane %v1983_v0, 6  ;;  %v1992_v54 = vrot.slane %v1983_v0, 1  ;;  %v1989_v18 = vrot.slane %v1983_v0, 5 }
 0xc8f   :  { %v2007_v24 = vadd.f32 %v1983_v0, %v4839_v57  ;;  %v1993_v6 = vrot.slane %v1983_v0, 2  ;;  %v1991_v35 = vrot.slane %v1983_v0, 7  ;;  %v1994_v32 = vrot.slane %v1983_v0, 3 }
 0xc90   :  { %v2003_v33 = vadd.f32 %v1988_v42, %v4826_v49  ;;  %v2005_v30 = vadd.f32 %v1990_v44, %v4835_v53  ;;  %v2008_v31 = vadd.f32 %v1992_v54, %v4837_v55  ;;  %v2004_v5 = vadd.f32 %v1989_v18, %v4823_v47 }
 0xc91   :  { %v2009_v10 = vadd.f32 %v1993_v6, %v4846_v63  ;;  %v2006_v12 = vadd.f32 %v1991_v35, %v4832_v51  ;;  %v2010_v43 = vadd.f32 %v1994_v32, %v4843_v60  ;;  %v3760_v29 = vmul.f32 -1.442695, %v2007_v24 }
 0xc92   :  { %4324 = vtanh.f32 %v2003_v33  ;;  %v3756_v28 = vmul.f32 -1.442695, %v2003_v33  ;;  %v3758_v20 = vmul.f32 -1.442695, %v2005_v30  ;;  %v3761_v22 = vmul.f32 -1.442695, %v2008_v31 }
 0xc93   :  { %4326 = vtanh.f32 %v2005_v30  ;;  %v3757_v62 = vmul.f32 -1.442695, %v2004_v5  ;;  %v3762_v14 = vmul.f32 -1.442695, %v2009_v10  ;;  %v3759_v11 = vmul.f32 -1.442695, %v2006_v12 }
 0xc94   :  { %4328 = vtanh.f32 %v2007_v24  ;;  %v3763_v46 = vmul.f32 -1.442695, %v2010_v43 }
 0xc95   :  { %4330 = vtanh.f32 %v2008_v31 }
 0xc96   :  { %4332 = vtanh.f32 %v2004_v5 }
 0xc97   :  { %4334 = vtanh.f32 %v2009_v10 }
 0xc98   :  { %4336 = vtanh.f32 %v2006_v12 }
 0xc99   :  { %4338 = vtanh.f32 %v2010_v43 }
 0xc9a   :  { %4340 = vpow2.f32 %v3756_v28 }
 0xc9b   :  { %4342 = vpow2.f32 %v3758_v20 }
 0xc9c   :  { %v4325_v61 = vpop.eup %4324  ;;  %4344 = vpow2.f32 %v3760_v29 }
 0xc9d   :  { %2107 = vrot.lane.b32.xlu1 %v4325_v61, %s4639_s6  ;;  %v4327_v39 = vpop.eup %4326  ;;  %4346 = vpow2.f32 %v3761_v22 }
 0xc9e   :  { %v4329_v45 = vpop.eup %4328  ;;  %4348 = vpow2.f32 %v3757_v62  ;;  %v2075_v62 = vrot.slane %v5279_v52, 7 }
 0xc9f   :  { %2115 = vrot.lane.b32.xlu0 %v4329_v45, %s4639_s6  ;;  %v4331_v19 = vpop.eup %4330 }
 0xca0   :  { %v4333_v27 = vpop.eup %4332 }
 0xca1   :  { %2111 = vrot.lane.b32.xlu1 %v4327_v39, %s4639_s6  ;;  %v4335_v23 = vpop.eup %4334 }
 0xca2   :  { %v4337_v17 = vpop.eup %4336 }
 0xca3   :  { %2109 = vrot.lane.b32.xlu0 %v4333_v27, %s4639_s6  ;;  %v4339_v26 = vpop.eup %4338 }
 0xca4   :  { %v4341_v38 = vpop.eup %4340 }
 0xca5   :  { %2117 = vrot.lane.b32.xlu1 %v4331_v19, %s4639_s6  ;;  %v2035_v37 = vadd.f32 1.0, %v4341_v38  ;;  %v4343_v8 = vpop.eup %4342 }
 0xca6   :  { %v4345_v34 = vpop.eup %4344  ;;  %v2037_v1 = vadd.f32 1.0, %v4343_v8  ;;  %v2077_v8 = vrot.slane %v5289_v41, 7 }
 0xca7   :  { %2113 = vrot.lane.b32.xlu0 %v4337_v17, %s4639_s6  ;;  %4350 = vrcp.f32 %v2035_v37  ;;  %v4347_v40 = vpop.eup %4346  ;;  %v2039_v21 = vadd.f32 1.0, %v4345_v34 }
 0xca8   :  { %4352 = vpow2.f32 %v3762_v14  ;;  %v4349_v50 = vpop.eup %4348  ;;  %v2040_v0 = vadd.f32 1.0, %v4347_v40  ;;  %v2080_v40 = vrot.slane %v5286_v36, 7 }
 0xca9   :  { %2119 = vrot.lane.b32.xlu1 %v4335_v23, %s4639_s6  ;;  %4354 = vpow2.f32 %v3759_v11  ;;  %v2036_v33 = vadd.f32 1.0, %v4349_v50 }
 0xcaa   :  { %4356 = vpow2.f32 %v3763_v46  ;;  %v2079_v46 = vrot.slane %v5276_v3, 7 }
 0xcab   :  { %2121 = vrot.lane.b32.xlu0 %v4339_v26, %s4639_s6  ;;  %4358 = vrcp.f32 %v2037_v1 }
 0xcac   :  { %4360 = vrcp.f32 %v2039_v21 }
 0xcad   :  { %4362 = vrcp.f32 %v2040_v0  ;;  %v2076_v0 = vrot.slane %v5266_v56, 7  ;;  %v2078_v56 = vrot.slane %v5269_v25, 7 }
 0xcae   :  { %4364 = vrcp.f32 %v2036_v33 }
 0xcb1   :  { %v5348_v58 = vpop.eup %4350 }
 0xcb2   :  { %v4353_v42 = vpop.eup %4352  ;;  %v2091_v37 = vmul.f32 %v5348_v58, %v2075_v62 }
 0xcb3   :  { %v4355_v44 = vpop.eup %4354  ;;  %v2041_v54 = vadd.f32 1.0, %v4353_v42 }
 0xcb4   :  { %v2038_v30 = vadd.f32 1.0, %v4355_v44  ;;  %v4357_v18 = vpop.eup %4356 }
 0xcb5   :  { %4366 = vrcp.f32 %v2041_v54  ;;  %v5352_v24 = vpop.eup %4358  ;;  %v2042_v6 = vadd.f32 1.0, %v4357_v18 }
 0xcb6   :  { %4368 = vrcp.f32 %v2038_v30  ;;  %v5355_v35 = vpop.eup %4360  ;;  %v2093_v34 = vmul.f32 %v5352_v24, %v2077_v8 }
 0xcb7   :  { %v5359_v32 = vpop.eup %4362  ;;  %4370 = vrcp.f32 %v2042_v6  ;;  %v2095_v21 = vmul.f32 %v5355_v35, %v2079_v46 }
 0xcb8   :  { %v5363_v43 = vpop.eup %4364  ;;  %v2096_v41 = vmul.f32 %v5359_v32, %v2080_v40 }
 0xcb9   :  { %v2092_v36 = vmul.f32 %v5363_v43, %v2076_v0 }
 0xcbf   :  { %v5367_v27 = vpop.eup %4366 }
 0xcc0   :  { %v5371_v26 = vpop.eup %4368 }
 0xcc1   :  { %v5376_v29 = vpop.eup %4370 }
 0xd0f   :  { %v2108_v7 = vpop.permute.xlu1 %2107 }
 0xd10   :  { %v2131_v59 = vmul.f32 %v5348_v58, %v2108_v7 }
 0xd11   :  { %v2116_v5 = vpop.permute.xlu0 %2115 }
 0xd12   :  { %2147 = vrot.lane.b32.xlu1 %v2131_v59, %s4641_s10  ;;  %v2135_v10 = vmul.f32 %v5355_v35, %v2116_v5  ;;  %v2081_v59 = vrot.slane %v5298_v48, 7  ;;  %v2094_v48 = vmul.f32 %v5371_v26, %v2078_v56 }
 0xd13   :  { %v2112_v61 = vpop.permute.xlu1 %2111 }
 0xd14   :  { %v2133_v31 = vmul.f32 %v5352_v24, %v2112_v61  ;;  %2155 = vrot.lane.b32.xlu0 %v2135_v10, %s4641_s10  ;;  %v2097_v30 = vmul.f32 %v5367_v27, %v2081_v59 }
 0xd15   :  { %v2110_v45 = vpop.permute.xlu0 %2109 }
 0xd16   :  { %2151 = vrot.lane.b32.xlu1 %v2133_v31, %s4641_s10  ;;  %v2132_v19 = vmul.f32 %v5363_v43, %v2110_v45  ;;  %v2082_v31 = vrot.slane %v5295_v15, 7 }
 0xd17   :  { %v2118_v12 = vpop.permute.xlu1 %2117 }
 0xd18   :  { %v2136_v39 = vmul.f32 %v5359_v32, %v2118_v12  ;;  %2149 = vrot.lane.b32.xlu0 %v2132_v19, %s4641_s10  ;;  %v2098_v10 = vmul.f32 %v5376_v29, %v2082_v31 }
 0xd19   :  { %v2114_v28 = vpop.permute.xlu0 %2113 }
 0xd1a   :  { %2157 = vrot.lane.b32.xlu1 %v2136_v39, %s4641_s10  ;;  %v2134_v20 = vmul.f32 %v5371_v26, %v2114_v28 }
 0xd1b   :  { %v2120_v23 = vpop.permute.xlu1 %2119 }
 0xd1c   :  { %v2137_v17 = vmul.f32 %v5367_v27, %v2120_v23  ;;  %2153 = vrot.lane.b32.xlu0 %v2134_v20, %s4641_s10 }
 0xd1d   :  { %v2122_v38 = vpop.permute.xlu0 %2121 }
 0xd1e   :  { %2159 = vrot.lane.b32.xlu1 %v2137_v17, %s4641_s10  ;;  %v2138_v22 = vmul.f32 %v5376_v29, %v2122_v38 }
 0xd20   :  { %2161 = vrot.lane.b32.xlu0 %v2138_v22, %s4641_s10 }
 0xd84   :  { %v2148_v14 = vpop.permute.xlu1 %2147 }
 0xd85   :  { %v5382_v11 = vadd.f32 %v2148_v14, %v2091_v37 }
 0xd86   :  { %v2156_v52 = vpop.permute.xlu0 %2155 }
 0xd87   :  { %4372 = vtanh.f32 %v5382_v11  ;;  %v5393_v42 = vadd.f32 %v2156_v52, %v2095_v21 }
 0xd88   :  { %v2152_v1 = vpop.permute.xlu1 %2151 }
 0xd89   :  { %v5390_v50 = vadd.f32 %v2152_v1, %v2093_v34 }
 0xd8a   :  { %v2150_v44 = vpop.permute.xlu0 %2149 }
 0xd8b   :  { %4374 = vtanh.f32 %v5390_v50  ;;  %v5404_v54 = vadd.f32 %v2150_v44, %v2092_v36 }
 0xd8c   :  { %v2158_v3 = vpop.permute.xlu1 %2157  ;;  %4376 = vtanh.f32 %v5393_v42 }
 0xd8d   :  { %v5401_v33 = vadd.f32 %v2158_v3, %v2096_v41 }
 0xd8e   :  { %v2154_v6 = vpop.permute.xlu0 %2153 }
 0xd8f   :  { %4378 = vtanh.f32 %v5401_v33  ;;  %v5413_v5 = vadd.f32 %v2154_v6, %v2094_v48 }
 0xd90   :  { %v2160_v18 = vpop.permute.xlu1 %2159  ;;  %4380 = vtanh.f32 %v5404_v54 }
 0xd91   :  { %v4373_v7 = vpop.eup %4372  ;;  %v5410_v61 = vadd.f32 %v2160_v18, %v2097_v30 }
 0xd92   :  { %2195 = vrot.lane.b32.xlu1 %v4373_v7, %s4639_s6  ;;  %v2162_v12 = vpop.permute.xlu0 %2161 }
 0xd93   :  { %4382 = vtanh.f32 %v5410_v61  ;;  %v5419_v45 = vadd.f32 %v2162_v12, %v2098_v10 }
 0xd94   :  { %4384 = vtanh.f32 %v5413_v5 }
 0xd95   :  { %v4375_v25 = vpop.eup %4374  ;;  %4386 = vtanh.f32 %v5419_v45 }
 0xd96   :  { %2199 = vrot.lane.b32.xlu1 %v4375_v25, %s4639_s6  ;;  %v4377_v39 = vpop.eup %4376 }
 0xd97   :  { %2203 = vrot.lane.b32.xlu0 %v4377_v39, %s4639_s6 }
 0xd99   :  { %v4379_v19 = vpop.eup %4378 }
 0xd9a   :  { %2205 = vrot.lane.b32.xlu1 %v4379_v19, %s4639_s6  ;;  %v4381_v15 = vpop.eup %4380 }
 0xd9b   :  { %2197 = vrot.lane.b32.xlu0 %v4381_v15, %s4639_s6 }
 0xd9d   :  { %v4383_v23 = vpop.eup %4382 }
 0xd9e   :  { %2207 = vrot.lane.b32.xlu1 %v4383_v23, %s4639_s6  ;;  %v4385_v17 = vpop.eup %4384 }
 0xd9f   :  { %2201 = vrot.lane.b32.xlu0 %v4385_v17, %s4639_s6  ;;  %v4387_v28 = vpop.eup %4386 }
 0xda3   :  { %2209 = vrot.lane.b32.xlu0 %v4387_v28, %s4639_s6 }
 0xe04   :  { %v2196_v20 = vpop.permute.xlu1 %2195 }
 0xe05   :  { %v2219_v14 = vmul.f32 %v5348_v58, %v2196_v20 }
 0xe07   :  { %v2235_v40 = vrot.slane %v2219_v14, 4 }
 0xe08   :  { %v2200_v38 = vpop.permute.xlu1 %2199 }
 0xe09   :  { %v2204_v22 = vpop.permute.xlu0 %2203  ;;  %v2221_v62 = vmul.f32 %v5352_v24, %v2200_v38 }
 0xe0a   :  { %v2223_v36 = vmul.f32 %v5355_v35, %v2204_v22 }
 0xe0b   :  { %v2238_v34 = vrot.slane %v2221_v62, 2 }
 0xe0c   :  { %v2206_v37 = vpop.permute.xlu1 %2205 }
 0xe0d   :  { %v2198_v8 = vpop.permute.xlu0 %2197  ;;  %v2224_v52 = vmul.f32 %v5359_v32, %v2206_v37 }
 0xe0e   :  { %v2220_v46 = vmul.f32 %v5363_v43, %v2198_v8 }
 0xe0f   :  { %v2243_v58 = vrot.slane %v2224_v52, 7 }
 0xe10   :  { %v2208_v1 = vpop.permute.xlu1 %2207  ;;  %v2236_v21 = vrot.slane %v2220_v46, 3 }
 0xe11   :  { %v2202_v7 = vpop.permute.xlu0 %2201  ;;  %v2225_v0 = vmul.f32 %v5367_v27, %v2208_v1 }
 0xe12   :  { %v2237_v41 = vsel %vm869_vm4, %v2236_v21, %v2235_v40  ;;  %v2222_v3 = vmul.f32 %v5371_v26, %v2202_v7 }
 0xe13   :  { %v2239_v24 = vsel %vm872_vm5, %v2238_v34, %v2237_v41  ;;  %v2245_v44 = vrot.slane %v2225_v0, 6 }
 0xe14   :  { %v2240_v59 = vrot.slane %v2222_v3, 1 }
 0xe15   :  { %v2210_v43 = vpop.permute.xlu0 %2209 }
 0xe16   :  { %v2241_v56 = vsel %vm875_vm6, %v2240_v59, %v2239_v24  ;;  %v2226_v30 = vmul.f32 %v5376_v29, %v2210_v43 }
 0xe17   :  { %v2242_v32 = vsel %vm878_vm7, %v2223_v36, %v2241_v56 }
 0xe18   :  { %v2244_v27 = vsel %vm881_vm8, %v2243_v58, %v2242_v32  ;;  %v2247_v18 = vrot.slane %v2226_v30, 5 }
 0xe19   :  { %v2246_v48 = vsel %vm884_vm9, %v2245_v44, %v2244_v27 }
 0xe1a   :  { %v2248_v26 = vsel %vm887_vm10, %v2247_v18, %v2246_v48 }
 0xe1b   :  { %2249 = vrot.lane.b32.xlu1 %v2248_v26, %s4641_s10 }
 0xe8d   :  { %v2250_v6 = vpop.permute.xlu1 %2249 }
 0xe8e   :  { %3955 = vmatmul.mubr.msk.f32.vlgmr.msra.gmra.mrb[12].mxu1 %vm151_vm2, %v2250_v6 }
 0xe8f   :  { %4048 = vmatpush3.bf16.msra.mxu1 %v4921_v9  ;;  %3976 = vmatprep.mubr.msk.f32.mxu1 %vm4637_vm0, %v4638_v4 }
 0xe90   :  { %4049 = vmatprep.subr.bf16.mxu1 %v4636_v2 }
 0xe93   :  { %4051 = vmatpush3.bf16.msra.mxu1 %v4932_v13 }
 0xe94   :  { %3990 = vmatprep.subr.mxu1 %v4638_v4 }
 0xf61   :  { %v2319_v35 = vpop.f32.mrb[12].mxu1 }
 0xf62   :  { %v2324_v29 = vrot.slane %v2319_v35, 3  ;;  %v3956_v31 = vpop.f32.mrb[13].mxu1  ;;  %v2325_v10 = vrot.slane %v2319_v35, 4  ;;  %v2326_v12 = vrot.slane %v2319_v35, 5  ;;  %v2327_v39 = vrot.slane %v2319_v35, 6 }
 0xf63   :  { %v2328_v19 = vrot.slane %v2319_v35, 7  ;;  %v2329_v23 = vrot.slane %v2319_v35, 1  ;;  %v2330_v20 = vrot.slane %v2319_v35, 2  ;;  %v2344_v22 = vadd.f32 %v2319_v35, %v4837_v55 }
 0xf64   :  { %v2339_v25 = vadd.f32 %v2324_v29, %v4826_v49  ;;  %v2340_v9 = vadd.f32 %v2325_v10, %v4823_v47  ;;  %v2341_v15 = vadd.f32 %v2326_v12, %v4835_v53  ;;  %v2342_v17 = vadd.f32 %v2327_v39, %v4832_v51 }
 0xf65   :  { %v2343_v28 = vadd.f32 %v2328_v19, %v4839_v57  ;;  %v2345_v38 = vadd.f32 %v2329_v23, %v4846_v63  ;;  %v2346_v62 = vadd.f32 %v2330_v20, %v4843_v60  ;;  %v3770_v58 = vmul.f32 -1.442695, %v2344_v22 }
 0xf66   :  { %4388 = vtanh.f32 %v2339_v25  ;;  %v3765_v21 = vmul.f32 -1.442695, %v2339_v25  ;;  %v3766_v52 = vmul.f32 -1.442695, %v2340_v9  ;;  %v3767_v7 = vmul.f32 -1.442695, %v2341_v15 }
 0xf67   :  { %4390 = vtanh.f32 %v2340_v9  ;;  %v3768_v0 = vmul.f32 -1.442695, %v2342_v17  ;;  %v3769_v3 = vmul.f32 -1.442695, %v2343_v28  ;;  %v3771_v24 = vmul.f32 -1.442695, %v2345_v38 }
 0xf68   :  { %4392 = vtanh.f32 %v2341_v15  ;;  %v3772_v36 = vmul.f32 -1.442695, %v2346_v62 }
 0xf69   :  { %4394 = vtanh.f32 %v2342_v17 }
 0xf6a   :  { %4396 = vtanh.f32 %v2343_v28 }
 0xf6b   :  { %4398 = vtanh.f32 %v2345_v38 }
 0xf6c   :  { %4400 = vtanh.f32 %v2344_v22 }
 0xf6d   :  { %4402 = vtanh.f32 %v2346_v62 }
 0xf6e   :  { %4404 = vpow2.f32 %v3765_v21 }
 0xf6f   :  { %4406 = vpow2.f32 %v3766_v52 }
 0xf70   :  { %v4389_v13 = vpop.eup %4388  ;;  %4408 = vpow2.f32 %v3767_v7 }
 0xf71   :  { %2443 = vrot.lane.b32.xlu0 %v4389_v13, %s4639_s6  ;;  %v4391_v37 = vpop.eup %4390  ;;  %4410 = vpow2.f32 %v3768_v0  ;;  %v2411_v0 = vrot.slane %v5382_v11, 7 }
 0xf72   :  { %v4393_v14 = vpop.eup %4392  ;;  %2445 = vrot.lane.b32.xlu1 %v4391_v37, %s4639_s6  ;;  %4412 = vpow2.f32 %v3769_v3 }
 0xf73   :  { %v4395_v8 = vpop.eup %4394  ;;  %4414 = vpow2.f32 %v3771_v24 }
 0xf74   :  { %v4397_v46 = vpop.eup %4396 }
 0xf75   :  { %2447 = vrot.lane.b32.xlu0 %v4393_v14, %s4639_s6  ;;  %v4399_v34 = vpop.eup %4398 }
 0xf76   :  { %2449 = vrot.lane.b32.xlu1 %v4395_v8, %s4639_s6  ;;  %v4401_v1 = vpop.eup %4400 }
 0xf77   :  { %v4403_v40 = vpop.eup %4402 }
 0xf78   :  { %v4405_v41 = vpop.eup %4404 }
 0xf79   :  { %2451 = vrot.lane.b32.xlu0 %v4397_v46, %s4639_s6  ;;  %v2371_v59 = vadd.f32 1.0, %v4405_v41  ;;  %v4407_v43 = vpop.eup %4406 }
 0xf7a   :  { %2455 = vrot.lane.b32.xlu1 %v4399_v34, %s4639_s6  ;;  %v4409_v44 = vpop.eup %4408  ;;  %v2372_v56 = vadd.f32 1.0, %v4407_v43 }
 0xf7b   :  { %4416 = vrcp.f32 %v2371_v59  ;;  %v4411_v30 = vpop.eup %4410  ;;  %v2373_v32 = vadd.f32 1.0, %v4409_v44  ;;  %v2412_v59 = vrot.slane %v5404_v54, 7 }
 0xf7c   :  { %4418 = vpow2.f32 %v3770_v58  ;;  %v4413_v27 = vpop.eup %4412  ;;  %v2374_v48 = vadd.f32 1.0, %v4411_v30  ;;  %v2413_v58 = vrot.slane %v5390_v50, 7 }
 0xf7d   :  { %2453 = vrot.lane.b32.xlu0 %v4401_v1, %s4639_s6  ;;  %4420 = vpow2.f32 %v3772_v36  ;;  %v4415_v18 = vpop.eup %4414  ;;  %v2375_v35 = vadd.f32 1.0, %v4413_v27 }
 0xf7e   :  { %2457 = vrot.lane.b32.xlu1 %v4403_v40, %s4639_s6  ;;  %4422 = vrcp.f32 %v2372_v56  ;;  %v2377_v25 = vadd.f32 1.0, %v4415_v18  ;;  %v2414_v56 = vrot.slane %v5413_v5, 7 }
 0xf7f   :  { %4424 = vrcp.f32 %v2373_v32  ;;  %v2415_v32 = vrot.slane %v5393_v42, 7  ;;  %v2416_v42 = vrot.slane %v5401_v33, 7 }
 0xf80   :  { %4426 = vrcp.f32 %v2374_v48 }
 0xf81   :  { %4428 = vrcp.f32 %v2375_v35 }
 0xf82   :  { %4430 = vrcp.f32 %v2377_v25 }
 0xf85   :  { %v5467_v26 = vpop.eup %4416 }
 0xf86   :  { %v4419_v29 = vpop.eup %4418  ;;  %v2427_v41 = vmul.f32 %v5467_v26, %v2411_v0 }
 0xf87   :  { %v4421_v10 = vpop.eup %4420  ;;  %v2376_v12 = vadd.f32 1.0, %v4419_v29 }
 0xf88   :  { %v2378_v39 = vadd.f32 1.0, %v4421_v10  ;;  %v5471_v9 = vpop.eup %4422 }
 0xf89   :  { %4432 = vrcp.f32 %v2376_v12  ;;  %v5473_v15 = vpop.eup %4424  ;;  %v2428_v36 = vmul.f32 %v5471_v9, %v2412_v59 }
 0xf8a   :  { %4434 = vrcp.f32 %v2378_v39  ;;  %v5478_v28 = vpop.eup %4426  ;;  %v2429_v44 = vmul.f32 %v5473_v15, %v2413_v58 }
 0xf8b   :  { %v5481_v38 = vpop.eup %4428  ;;  %v2430_v54 = vmul.f32 %v5478_v28, %v2414_v56 }
 0xf8c   :  { %v5486_v14 = vpop.eup %4430  ;;  %v2431_v48 = vmul.f32 %v5481_v38, %v2415_v32 }
 0xf93   :  { %v5489_v46 = vpop.eup %4432 }
 0xf94   :  { %v5494_v21 = vpop.eup %4434  ;;  %v2432_v10 = vmul.f32 %v5489_v46, %v2416_v42 }
 0xfe3   :  { %v2444_v6 = vpop.permute.xlu0 %2443 }
 0xfe4   :  { %v2467_v31 = vmul.f32 %v5467_v26, %v2444_v6  ;;  %v2446_v19 = vpop.permute.xlu1 %2445  ;;  %v2417_v6 = vrot.slane %v5410_v61, 7  ;;  %v2418_v61 = vrot.slane %v5419_v45, 7 }
 0xfe5   :  { %v2468_v23 = vmul.f32 %v5471_v9, %v2446_v19 }
 0xfe6   :  { %2483 = vrot.lane.b32.xlu0 %v2467_v31, %s4641_s10  ;;  %v2433_v31 = vmul.f32 %v5486_v14, %v2417_v6  ;;  %v2434_v33 = vmul.f32 %v5494_v21, %v2418_v61 }
 0xfe7   :  { %v2448_v17 = vpop.permute.xlu0 %2447  ;;  %2485 = vrot.lane.b32.xlu1 %v2468_v23, %s4641_s10 }
 0xfe8   :  { %v2469_v13 = vmul.f32 %v5473_v15, %v2448_v17  ;;  %v2450_v20 = vpop.permute.xlu1 %2449 }
 0xfe9   :  { %v2470_v22 = vmul.f32 %v5478_v28, %v2450_v20 }
 0xfea   :  { %2487 = vrot.lane.b32.xlu0 %v2469_v13, %s4641_s10 }
 0xfeb   :  { %v2452_v62 = vpop.permute.xlu0 %2451  ;;  %2489 = vrot.lane.b32.xlu1 %v2470_v22, %s4641_s10 }
 0xfec   :  { %v2471_v37 = vmul.f32 %v5481_v38, %v2452_v62  ;;  %v2456_v8 = vpop.permute.xlu1 %2455 }
 0xfed   :  { %v2473_v34 = vmul.f32 %v5486_v14, %v2456_v8 }
 0xfee   :  { %2491 = vrot.lane.b32.xlu0 %v2471_v37, %s4641_s10 }
 0xfef   :  { %v2454_v1 = vpop.permute.xlu0 %2453  ;;  %2495 = vrot.lane.b32.xlu1 %v2473_v34, %s4641_s10 }
 0xff0   :  { %v2472_v40 = vmul.f32 %v5489_v46, %v2454_v1  ;;  %v2458_v52 = vpop.permute.xlu1 %2457 }
 0xff1   :  { %v2474_v7 = vmul.f32 %v5494_v21, %v2458_v52 }
 0xff2   :  { %2493 = vrot.lane.b32.xlu0 %v2472_v40, %s4641_s10 }
 0xff3   :  { %2497 = vrot.lane.b32.xlu1 %v2474_v7, %s4641_s10 }
0x1058   :  { %v2484_v3 = vpop.permute.xlu0 %2483 }
0x1059   :  { %v5501_v24 = vadd.f32 %v2484_v3, %v2427_v41  ;;  %v2486_v43 = vpop.permute.xlu1 %2485 }
0x105a   :  { %v5509_v30 = vadd.f32 %v2486_v43, %v2428_v36 }
0x105b   :  { %4436 = vtanh.f32 %v5501_v24 }
0x105c   :  { %v2488_v11 = vpop.permute.xlu0 %2487  ;;  %4438 = vtanh.f32 %v5509_v30 }
0x105d   :  { %v5512_v27 = vadd.f32 %v2488_v11, %v2429_v44  ;;  %v2490_v50 = vpop.permute.xlu1 %2489 }
0x105e   :  { %v5519_v5 = vadd.f32 %v2490_v50, %v2430_v54 }
0x105f   :  { %4440 = vtanh.f32 %v5512_v27 }
0x1060   :  { %v2492_v35 = vpop.permute.xlu0 %2491  ;;  %4442 = vtanh.f32 %v5519_v5 }
0x1061   :  { %v5523_v29 = vadd.f32 %v2492_v35, %v2431_v48  ;;  %v2496_v25 = vpop.permute.xlu1 %2495 }
0x1062   :  { %v5530_v12 = vadd.f32 %v2496_v25, %v2433_v31 }
0x1063   :  { %4444 = vtanh.f32 %v5523_v29 }
0x1064   :  { %v2494_v39 = vpop.permute.xlu0 %2493  ;;  %4446 = vtanh.f32 %v5530_v12 }
0x1065   :  { %v4437_v18 = vpop.eup %4436  ;;  %v5532_v19 = vadd.f32 %v2494_v39, %v2432_v10  ;;  %v2498_v23 = vpop.permute.xlu1 %2497 }
0x1066   :  { %2531 = vrot.lane.b32.xlu0 %v4437_v18, %s4639_s6  ;;  %v4439_v17 = vpop.eup %4438  ;;  %v5537_v13 = vadd.f32 %v2498_v23, %v2434_v33 }
0x1067   :  { %4448 = vtanh.f32 %v5532_v19  ;;  %2533 = vrot.lane.b32.xlu1 %v4439_v17, %s4639_s6 }
0x1068   :  { %4450 = vtanh.f32 %v5537_v13 }
0x1069   :  { %v4441_v20 = vpop.eup %4440 }
0x106a   :  { %2535 = vrot.lane.b32.xlu0 %v4441_v20, %s4639_s6  ;;  %v4443_v45 = vpop.eup %4442 }
0x106b   :  { %2537 = vrot.lane.b32.xlu1 %v4443_v45, %s4639_s6 }
0x106d   :  { %v4445_v22 = vpop.eup %4444 }
0x106e   :  { %2539 = vrot.lane.b32.xlu0 %v4445_v22, %s4639_s6  ;;  %v4447_v62 = vpop.eup %4446 }
0x106f   :  { %2543 = vrot.lane.b32.xlu1 %v4447_v62, %s4639_s6 }
0x1071   :  { %v4449_v37 = vpop.eup %4448 }
0x1072   :  { %2541 = vrot.lane.b32.xlu0 %v4449_v37, %s4639_s6  ;;  %v4451_v8 = vpop.eup %4450 }
0x1073   :  { %2545 = vrot.lane.b32.xlu1 %v4451_v8, %s4639_s6 }
0x10d8   :  { %v2532_v34 = vpop.permute.xlu0 %2531 }
0x10d9   :  { %v2555_v1 = vmul.f32 %v5467_v26, %v2532_v34  ;;  %v2534_v40 = vpop.permute.xlu1 %2533 }
0x10da   :  { %v2556_v52 = vmul.f32 %v5471_v9, %v2534_v40 }
0x10db   :  { %v2571_v7 = vrot.slane %v2555_v1, 5 }
0x10dc   :  { %v2536_v0 = vpop.permute.xlu0 %2535  ;;  %v2572_v3 = vrot.slane %v2556_v52, 4 }
0x10dd   :  { %v2557_v41 = vmul.f32 %v5473_v15, %v2536_v0  ;;  %v2538_v59 = vpop.permute.xlu1 %2537 }
0x10de   :  { %v2573_v36 = vsel %vm869_vm4, %v2572_v3, %v2571_v7  ;;  %v2558_v43 = vmul.f32 %v5478_v28, %v2538_v59 }
0x10df   :  { %v2574_v58 = vrot.slane %v2557_v41, 3 }
0x10e0   :  { %v2540_v44 = vpop.permute.xlu0 %2539  ;;  %v2576_v26 = vrot.slane %v2558_v43, 2 }
0x10e1   :  { %v2575_v56 = vsel %vm872_vm5, %v2574_v58, %v2573_v36  ;;  %v2559_v11 = vmul.f32 %v5481_v38, %v2540_v44  ;;  %v2544_v32 = vpop.permute.xlu1 %2543 }
0x10e2   :  { %v2561_v9 = vmul.f32 %v5486_v14, %v2544_v32  ;;  %v2577_v18 = vsel %vm875_vm6, %v2576_v26, %v2575_v56 }
0x10e3   :  { %v2578_v54 = vrot.slane %v2559_v11, 1 }
0x10e4   :  { %v2542_v15 = vpop.permute.xlu0 %2541  ;;  %v2581_v6 = vrot.slane %v2561_v9, 7 }
0x10e5   :  { %v2579_v50 = vsel %vm878_vm7, %v2578_v54, %v2577_v18  ;;  %v2560_v48 = vmul.f32 %v5489_v46, %v2542_v15  ;;  %v2546_v35 = vpop.permute.xlu1 %2545 }
0x10e6   :  { %v2562_v42 = vmul.f32 %v5494_v21, %v2546_v35 }
0x10e7   :  { %v2580_v28 = vsel %vm881_vm8, %v2560_v48, %v2579_v50 }
0x10e8   :  { %v2582_v38 = vsel %vm884_vm9, %v2581_v6, %v2580_v28  ;;  %v2583_v31 = vrot.slane %v2562_v42, 6 }
0x10ea   :  { %v2584_v25 = vsel %vm887_vm10, %v2583_v31, %v2582_v38 }
0x10eb   :  { %2585 = vrot.lane.b32.xlu0 %v2584_v25, %s4641_s10 }
0x115d   :  { %v2586_v14 = vpop.permute.xlu0 %2585 }
0x115e   :  { %3966 = vmatmul.mubr.msk.f32.vlgmr.msra.gmra.mrb[10].mxu0 %vm151_vm2, %v2586_v14 }
0x115f   :  { %3987 = vmatprep.mubr.msk.f32.mxu0 %vm4637_vm0, %v4638_v4 }
0x1231   :  { %v2655_v46 = vpop.f32.mrb[10].mxu0 }
0x1232   :  { %v2660_v10 = vrot.slane %v2655_v46, 2  ;;  %v3967_v61 = vpop.f32.mrb[11].mxu0  ;;  %v2661_v21 = vrot.slane %v2655_v46, 3  ;;  %v2662_v33 = vrot.slane %v2655_v46, 4  ;;  %v2663_v23 = vrot.slane %v2655_v46, 5 }
0x1233   :  { %v2664_v20 = vrot.slane %v2655_v46, 6  ;;  %v2665_v22 = vrot.slane %v2655_v46, 7  ;;  %v2666_v8 = vrot.slane %v2655_v46, 1  ;;  %v2681_v52 = vadd.f32 %v2655_v46, %v4846_v63 }
0x1234   :  { %v2675_v39 = vadd.f32 %v2660_v10, %v4826_v49  ;;  %v2676_v17 = vadd.f32 %v2661_v21, %v4823_v47  ;;  %v2677_v45 = vadd.f32 %v2662_v33, %v4835_v53  ;;  %v2678_v62 = vadd.f32 %v2663_v23, %v4832_v51 }
0x1235   :  { %v2679_v34 = vadd.f32 %v2664_v20, %v4839_v57  ;;  %v2680_v1 = vadd.f32 %v2665_v22, %v4837_v55  ;;  %v2682_v40 = vadd.f32 %v2666_v8, %v4843_v60  ;;  %v3780_v15 = vmul.f32 -1.442695, %v2681_v52 }
0x1236   :  { %4452 = vtanh.f32 %v2675_v39  ;;  %v3774_v43 = vmul.f32 -1.442695, %v2675_v39  ;;  %v3775_v44 = vmul.f32 -1.442695, %v2676_v17  ;;  %v3776_v56 = vmul.f32 -1.442695, %v2677_v45 }
0x1237   :  { %4454 = vtanh.f32 %v2676_v17  ;;  %v3777_v11 = vmul.f32 -1.442695, %v2678_v62  ;;  %v3778_v32 = vmul.f32 -1.442695, %v2679_v34  ;;  %v3779_v54 = vmul.f32 -1.442695, %v2680_v1 }
0x1238   :  { %4456 = vtanh.f32 %v2677_v45  ;;  %v3781_v18 = vmul.f32 -1.442695, %v2682_v40 }
0x1239   :  { %4458 = vtanh.f32 %v2678_v62 }
0x123a   :  { %4460 = vtanh.f32 %v2679_v34 }
0x123b   :  { %4462 = vtanh.f32 %v2680_v1 }
0x123c   :  { %4464 = vtanh.f32 %v2682_v40 }
0x123d   :  { %4466 = vtanh.f32 %v2681_v52 }
0x123e   :  { %4468 = vpow2.f32 %v3774_v43 }
0x123f   :  { %4470 = vpow2.f32 %v3775_v44 }
0x1240   :  { %v4453_v37 = vpop.eup %4452  ;;  %4472 = vpow2.f32 %v3776_v56 }
0x1241   :  { %2779 = vrot.lane.b32.xlu1 %v4453_v37, %s4639_s6  ;;  %v4455_v7 = vpop.eup %4454  ;;  %4474 = vpow2.f32 %v3777_v11  ;;  %v2747_v11 = vrot.slane %v5501_v24, 7 }
0x1242   :  { %v4457_v0 = vpop.eup %4456  ;;  %2781 = vrot.lane.b32.xlu0 %v4455_v7, %s4639_s6  ;;  %4476 = vpow2.f32 %v3778_v32 }
0x1243   :  { %v4459_v41 = vpop.eup %4458  ;;  %4478 = vpow2.f32 %v3779_v54 }
0x1244   :  { %v4461_v3 = vpop.eup %4460 }
0x1245   :  { %2783 = vrot.lane.b32.xlu1 %v4457_v0, %s4639_s6  ;;  %v4463_v59 = vpop.eup %4462 }
0x1246   :  { %2785 = vrot.lane.b32.xlu0 %v4459_v41, %s4639_s6  ;;  %v4465_v58 = vpop.eup %4464 }
0x1247   :  { %v4467_v36 = vpop.eup %4466 }
0x1248   :  { %v4469_v26 = vpop.eup %4468 }
0x1249   :  { %2787 = vrot.lane.b32.xlu1 %v4461_v3, %s4639_s6  ;;  %v2707_v9 = vadd.f32 1.0, %v4469_v26  ;;  %v4471_v50 = vpop.eup %4470 }
0x124a   :  { %2789 = vrot.lane.b32.xlu0 %v4463_v59, %s4639_s6  ;;  %v4473_v48 = vpop.eup %4472  ;;  %v2708_v6 = vadd.f32 1.0, %v4471_v50 }
0x124b   :  { %4480 = vrcp.f32 %v2707_v9  ;;  %v4475_v35 = vpop.eup %4474  ;;  %v2709_v28 = vadd.f32 1.0, %v4473_v48  ;;  %v2748_v9 = vrot.slane %v5509_v30, 7 }
0x124c   :  { %4482 = vpow2.f32 %v3781_v18  ;;  %v4477_v42 = vpop.eup %4476  ;;  %v2710_v31 = vadd.f32 1.0, %v4475_v35  ;;  %v2749_v18 = vrot.slane %v5512_v27, 7 }
0x124d   :  { %2793 = vrot.lane.b32.xlu1 %v4465_v58, %s4639_s6  ;;  %4484 = vpow2.f32 %v3780_v15  ;;  %v4479_v38 = vpop.eup %4478  ;;  %v2711_v46 = vadd.f32 1.0, %v4477_v42 }
0x124e   :  { %2791 = vrot.lane.b32.xlu0 %v4467_v36, %s4639_s6  ;;  %4486 = vrcp.f32 %v2708_v6  ;;  %v2712_v39 = vadd.f32 1.0, %v4479_v38  ;;  %v2750_v6 = vrot.slane %v5519_v5, 7 }
0x124f   :  { %4488 = vrcp.f32 %v2709_v28  ;;  %v2751_v28 = vrot.slane %v5523_v29, 7  ;;  %v2754_v29 = vrot.slane %v5537_v13, 7 }
0x1250   :  { %4490 = vrcp.f32 %v2710_v31 }
0x1251   :  { %4492 = vrcp.f32 %v2711_v46 }
0x1252   :  { %4494 = vrcp.f32 %v2712_v39 }
0x1255   :  { %v5582_v25 = vpop.eup %4480 }
0x1256   :  { %v4483_v10 = vpop.eup %4482  ;;  %v2763_v26 = vmul.f32 %v5582_v25, %v2747_v11 }
0x1257   :  { %v4485_v21 = vpop.eup %4484  ;;  %v2714_v33 = vadd.f32 1.0, %v4483_v10 }
0x1258   :  { %v2713_v23 = vadd.f32 1.0, %v4485_v21  ;;  %v5586_v17 = vpop.eup %4486 }
0x1259   :  { %4496 = vrcp.f32 %v2714_v33  ;;  %v5588_v45 = vpop.eup %4488  ;;  %v2764_v15 = vmul.f32 %v5586_v17, %v2748_v9 }
0x125a   :  { %4498 = vrcp.f32 %v2713_v23  ;;  %v5593_v8 = vpop.eup %4490  ;;  %v2765_v48 = vmul.f32 %v5588_v45, %v2749_v18 }
0x125b   :  { %v5596_v1 = vpop.eup %4492  ;;  %v2766_v30 = vmul.f32 %v5593_v8, %v2750_v6 }
0x125c   :  { %v5601_v0 = vpop.eup %4494  ;;  %v2767_v31 = vmul.f32 %v5596_v1, %v2751_v28 }
0x1263   :  { %v5604_v3 = vpop.eup %4496 }
0x1264   :  { %v5609_v43 = vpop.eup %4498  ;;  %v2770_v21 = vmul.f32 %v5604_v3, %v2754_v29 }
0x12b3   :  { %v2780_v14 = vpop.permute.xlu1 %2779 }
0x12b4   :  { %v2803_v61 = vmul.f32 %v5582_v25, %v2780_v14  ;;  %v2782_v20 = vpop.permute.xlu0 %2781  ;;  %v2752_v14 = vrot.slane %v5532_v19, 7  ;;  %v2753_v19 = vrot.slane %v5530_v12, 7 }
0x12b5   :  { %v2804_v22 = vmul.f32 %v5586_v17, %v2782_v20 }
0x12b6   :  { %2819 = vrot.lane.b32.xlu1 %v2803_v61, %s4641_s10  ;;  %v2768_v61 = vmul.f32 %v5601_v0, %v2752_v14  ;;  %v2769_v13 = vmul.f32 %v5609_v43, %v2753_v19 }
0x12b7   :  { %v2784_v62 = vpop.permute.xlu1 %2783  ;;  %2821 = vrot.lane.b32.xlu0 %v2804_v22, %s4641_s10 }
0x12b8   :  { %v2805_v37 = vmul.f32 %v5588_v45, %v2784_v62  ;;  %v2786_v34 = vpop.permute.xlu0 %2785 }
0x12b9   :  { %v2806_v40 = vmul.f32 %v5593_v8, %v2786_v34 }
0x12ba   :  { %2823 = vrot.lane.b32.xlu1 %v2805_v37, %s4641_s10 }
0x12bb   :  { %v2788_v52 = vpop.permute.xlu1 %2787  ;;  %2825 = vrot.lane.b32.xlu0 %v2806_v40, %s4641_s10 }
0x12bc   :  { %v2807_v7 = vmul.f32 %v5596_v1, %v2788_v52  ;;  %v2790_v41 = vpop.permute.xlu0 %2789 }
0x12bd   :  { %v2808_v59 = vmul.f32 %v5601_v0, %v2790_v41 }
0x12be   :  { %2827 = vrot.lane.b32.xlu1 %v2807_v7, %s4641_s10 }
0x12bf   :  { %v2794_v58 = vpop.permute.xlu1 %2793  ;;  %2829 = vrot.lane.b32.xlu0 %v2808_v59, %s4641_s10 }
0x12c0   :  { %v2810_v36 = vmul.f32 %v5604_v3, %v2794_v58  ;;  %v2792_v44 = vpop.permute.xlu0 %2791 }
0x12c1   :  { %v2809_v56 = vmul.f32 %v5609_v43, %v2792_v44 }
0x12c2   :  { %2833 = vrot.lane.b32.xlu1 %v2810_v36, %s4641_s10 }
0x12c3   :  { %2831 = vrot.lane.b32.xlu0 %v2809_v56, %s4641_s10 }
0x1328   :  { %v2820_v32 = vpop.permute.xlu1 %2819 }
0x1329   :  { %v5616_v54 = vadd.f32 %v2820_v32, %v2763_v26  ;;  %v2822_v50 = vpop.permute.xlu0 %2821 }
0x132a   :  { %v5624_v35 = vadd.f32 %v2822_v50, %v2764_v15 }
0x132b   :  { %4500 = vtanh.f32 %v5616_v54 }
0x132c   :  { %v2824_v24 = vpop.permute.xlu1 %2823  ;;  %4502 = vtanh.f32 %v5624_v35 }
0x132d   :  { %v5627_v42 = vadd.f32 %v2824_v24, %v2765_v48  ;;  %v2826_v27 = vpop.permute.xlu0 %2825 }
0x132e   :  { %v5634_v5 = vadd.f32 %v2826_v27, %v2766_v30 }
0x132f   :  { %4504 = vtanh.f32 %v5627_v42 }
0x1330   :  { %v2828_v46 = vpop.permute.xlu1 %2827  ;;  %4506 = vtanh.f32 %v5634_v5 }
0x1331   :  { %v5638_v10 = vadd.f32 %v2828_v46, %v2767_v31  ;;  %v2830_v39 = vpop.permute.xlu0 %2829 }
0x1332   :  { %v5645_v33 = vadd.f32 %v2830_v39, %v2768_v61 }
0x1333   :  { %4508 = vtanh.f32 %v5638_v10 }
0x1334   :  { %v2834_v23 = vpop.permute.xlu1 %2833  ;;  %4510 = vtanh.f32 %v5645_v33 }
0x1335   :  { %v4501_v38 = vpop.eup %4500  ;;  %v5647_v20 = vadd.f32 %v2834_v23, %v2770_v21  ;;  %v2832_v22 = vpop.permute.xlu0 %2831 }
0x1336   :  { %2867 = vrot.lane.b32.xlu1 %v4501_v38, %s4639_s6  ;;  %v4503_v62 = vpop.eup %4502  ;;  %v5652_v37 = vadd.f32 %v2832_v22, %v2769_v13 }
0x1337   :  { %4512 = vtanh.f32 %v5647_v20  ;;  %2869 = vrot.lane.b32.xlu0 %v4503_v62, %s4639_s6 }
0x1338   :  { %4514 = vtanh.f32 %v5652_v37 }
0x1339   :  { %v4505_v34 = vpop.eup %4504 }
0x133a   :  { %2871 = vrot.lane.b32.xlu1 %v4505_v34, %s4639_s6  ;;  %v4507_v12 = vpop.eup %4506 }
0x133b   :  { %2873 = vrot.lane.b32.xlu0 %v4507_v12, %s4639_s6 }
0x133d   :  { %v4509_v40 = vpop.eup %4508 }
0x133e   :  { %2875 = vrot.lane.b32.xlu1 %v4509_v40, %s4639_s6  ;;  %v4511_v52 = vpop.eup %4510 }
0x133f   :  { %2877 = vrot.lane.b32.xlu0 %v4511_v52, %s4639_s6 }
0x1341   :  { %v4513_v7 = vpop.eup %4512 }
0x1342   :  { %2881 = vrot.lane.b32.xlu1 %v4513_v7, %s4639_s6  ;;  %v4515_v41 = vpop.eup %4514 }
0x1343   :  { %2879 = vrot.lane.b32.xlu0 %v4515_v41, %s4639_s6 }
0x13a8   :  { %v2868_v59 = vpop.permute.xlu1 %2867 }
0x13a9   :  { %v2891_v58 = vmul.f32 %v5582_v25, %v2868_v59  ;;  %v2870_v36 = vpop.permute.xlu0 %2869 }
0x13aa   :  { %v2892_v44 = vmul.f32 %v5586_v17, %v2870_v36 }
0x13ab   :  { %v2907_v56 = vrot.slane %v2891_v58, 6 }
0x13ac   :  { %v2872_v11 = vpop.permute.xlu1 %2871  ;;  %v2908_v32 = vrot.slane %v2892_v44, 5 }
0x13ad   :  { %v2893_v26 = vmul.f32 %v5588_v45, %v2872_v11  ;;  %v2874_v9 = vpop.permute.xlu0 %2873 }
0x13ae   :  { %v2909_v15 = vsel %vm869_vm4, %v2908_v32, %v2907_v56  ;;  %v2894_v50 = vmul.f32 %v5593_v8, %v2874_v9 }
0x13af   :  { %v2910_v18 = vrot.slane %v2893_v26, 4 }
0x13b0   :  { %v2876_v48 = vpop.permute.xlu1 %2875  ;;  %v2912_v25 = vrot.slane %v2894_v50, 3 }
0x13b1   :  { %v2911_v6 = vsel %vm872_vm5, %v2910_v18, %v2909_v15  ;;  %v2895_v24 = vmul.f32 %v5596_v1, %v2876_v48  ;;  %v2878_v28 = vpop.permute.xlu0 %2877 }
0x13b2   :  { %v2896_v17 = vmul.f32 %v5601_v0, %v2878_v28  ;;  %v2913_v38 = vsel %vm875_vm6, %v2912_v25, %v2911_v6 }
0x13b3   :  { %v2914_v30 = vrot.slane %v2895_v24, 2 }
0x13b4   :  { %v2882_v45 = vpop.permute.xlu1 %2881  ;;  %v2916_v14 = vrot.slane %v2896_v17, 1 }
0x13b5   :  { %v2915_v27 = vsel %vm878_vm7, %v2914_v30, %v2913_v38  ;;  %v2898_v31 = vmul.f32 %v5604_v3, %v2882_v45  ;;  %v2880_v46 = vpop.permute.xlu0 %2879 }
0x13b6   :  { %v2897_v29 = vmul.f32 %v5609_v43, %v2880_v46  ;;  %v2917_v61 = vsel %vm881_vm8, %v2916_v14, %v2915_v27 }
0x13b7   :  { %v2919_v8 = vrot.slane %v2898_v31, 7 }
0x13b8   :  { %v2918_v1 = vsel %vm884_vm9, %v2897_v29, %v2917_v61 }
0x13b9   :  { %v2920_v39 = vsel %vm887_vm10, %v2919_v8, %v2918_v1 }
0x13ba   :  { %2921 = vrot.lane.b32.xlu1 %v2920_v39, %s4641_s10 }
0x142c   :  { %v2922_v0 = vpop.permute.xlu1 %2921 }
0x142d   :  { %3977 = vmatmul.mubr.msk.f32.vlgmr.msra.gmra.mrb[14].mxu1 %vm151_vm2, %v2922_v0 }
0x142e   :  { %3992 = vmatprep.mubr.msk.f32.mxu1 %vm4637_vm0, %v4638_v4 }
0x1500   :  { %v2991_v3 = vpop.f32.mrb[14].mxu1 }
0x1501   :  { %v2996_v21 = vrot.slane %v2991_v3, 1  ;;  %v3978_v19 = vpop.f32.mrb[15].mxu1  ;;  %v2997_v43 = vrot.slane %v2991_v3, 2  ;;  %v2998_v13 = vrot.slane %v2991_v3, 3  ;;  %v2999_v22 = vrot.slane %v2991_v3, 4 }
0x1502   :  { %v3000_v34 = vrot.slane %v2991_v3, 5  ;;  %v3001_v40 = vrot.slane %v2991_v3, 6  ;;  %v3002_v4 = vrot.slane %v2991_v3, 7 }
0x1503   :  { %v3011_v23 = vadd.f32 %v2996_v21, %v4826_v49  ;;  %v3012_v62 = vadd.f32 %v2997_v43, %v4823_v47  ;;  %v3013_v12 = vadd.f32 %v2998_v13, %v4835_v53  ;;  %v3014_v52 = vadd.f32 %v2999_v22, %v4832_v51 }
0x1504   :  { %v3015_v41 = vadd.f32 %v3000_v34, %v4839_v57  ;;  %v3016_v49 = vadd.f32 %v3001_v40, %v4837_v55  ;;  %v3017_v59 = vadd.f32 %v3002_v4, %v4846_v63  ;;  %v3018_v47 = vadd.f32 %v2991_v3, %v4843_v60 }
0x1505   :  { %4516 = vtanh.f32 %v3011_v23  ;;  %v3783_v36 = vmul.f32 -1.442695, %v3011_v23  ;;  %v3784_v44 = vmul.f32 -1.442695, %v3012_v62  ;;  %v3785_v56 = vmul.f32 -1.442695, %v3013_v12 }
0x1506   :  { %4518 = vtanh.f32 %v3012_v62  ;;  %v3786_v11 = vmul.f32 -1.442695, %v3014_v52  ;;  %v3787_v32 = vmul.f32 -1.442695, %v3015_v41  ;;  %v3788_v9 = vmul.f32 -1.442695, %v3016_v49 }
0x1507   :  { %4520 = vtanh.f32 %v3013_v12  ;;  %v3789_v15 = vmul.f32 -1.442695, %v3017_v59  ;;  %v3790_v50 = vmul.f32 -1.442695, %v3018_v47 }
0x1508   :  { %4522 = vtanh.f32 %v3014_v52 }
0x1509   :  { %4524 = vtanh.f32 %v3015_v41 }
0x150a   :  { %4526 = vtanh.f32 %v3016_v49 }
0x150b   :  { %4528 = vtanh.f32 %v3017_v59 }
0x150c   :  { %4530 = vtanh.f32 %v3018_v47 }
0x150d   :  { %4532 = vpow2.f32 %v3783_v36 }
0x150e   :  { %4534 = vpow2.f32 %v3784_v44 }
0x150f   :  { %v4517_v7 = vpop.eup %4516  ;;  %4536 = vpow2.f32 %v3785_v56 }
0x1510   :  { %3115 = vrot.lane.b32.xlu0 %v4517_v7, %s4639_s6  ;;  %v4519_v53 = vpop.eup %4518  ;;  %4538 = vpow2.f32 %v3786_v11  ;;  %v3086_v11 = vrot.slane %v5634_v5, 7  ;;  %v3089_v5 = vrot.slane %v5652_v37, 7 }
0x1511   :  { %v4521_v51 = vpop.eup %4520  ;;  %3117 = vrot.lane.b32.xlu1 %v4519_v53, %s4639_s6  ;;  %4540 = vpow2.f32 %v3787_v32 }
0x1512   :  { %v4523_v57 = vpop.eup %4522  ;;  %4542 = vpow2.f32 %v3788_v9 }
0x1513   :  { %v4525_v58 = vpop.eup %4524 }
0x1514   :  { %3119 = vrot.lane.b32.xlu0 %v4521_v51, %s4639_s6  ;;  %v4527_v55 = vpop.eup %4526  ;;  %v3083_v51 = vrot.slane %v5616_v54, 7  ;;  %v3087_v54 = vrot.slane %v5638_v10, 7 }
0x1515   :  { %3121 = vrot.lane.b32.xlu1 %v4523_v57, %s4639_s6  ;;  %v4529_v63 = vpop.eup %4528 }
0x1516   :  { %v4531_v60 = vpop.eup %4530 }
0x1517   :  { %v4533_v26 = vpop.eup %4532 }
0x1518   :  { %3123 = vrot.lane.b32.xlu0 %v4525_v58, %s4639_s6  ;;  %v3043_v18 = vadd.f32 1.0, %v4533_v26  ;;  %v4535_v48 = vpop.eup %4534 }
0x1519   :  { %3125 = vrot.lane.b32.xlu1 %v4527_v55, %s4639_s6  ;;  %v4537_v6 = vpop.eup %4536  ;;  %v3044_v24 = vadd.f32 1.0, %v4535_v48 }
0x151a   :  { %4544 = vrcp.f32 %v3043_v18  ;;  %v4539_v25 = vpop.eup %4538  ;;  %v3045_v28 = vadd.f32 1.0, %v4537_v6 }
0x151b   :  { %4546 = vpow2.f32 %v3789_v15  ;;  %v4541_v30 = vpop.eup %4540  ;;  %v3046_v38 = vadd.f32 1.0, %v4539_v25 }
0x151c   :  { %3127 = vrot.lane.b32.xlu0 %v4529_v63, %s4639_s6  ;;  %4548 = vpow2.f32 %v3790_v50  ;;  %v4543_v17 = vpop.eup %4542  ;;  %v3047_v31 = vadd.f32 1.0, %v4541_v30  ;;  %v3084_v63 = vrot.slane %v5624_v35, 7  ;;  %v3090_v30 = vrot.slane %v5647_v20, 7 }
0x151d   :  { %3129 = vrot.lane.b32.xlu1 %v4531_v60, %s4639_s6  ;;  %4550 = vrcp.f32 %v3044_v24  ;;  %v3048_v8 = vadd.f32 1.0, %v4543_v17  ;;  %v3085_v60 = vrot.slane %v5627_v42, 7  ;;  %v3088_v42 = vrot.slane %v5645_v33, 7 }
0x151e   :  { %4552 = vrcp.f32 %v3045_v28 }
0x151f   :  { %4554 = vrcp.f32 %v3046_v38 }
0x1520   :  { %4556 = vrcp.f32 %v3047_v31 }
0x1521   :  { %4558 = vrcp.f32 %v3048_v8 }
0x1524   :  { %v5697_v45 = vpop.eup %4544 }
0x1525   :  { %v4547_v14 = vpop.eup %4546  ;;  %v3099_v57 = vmul.f32 %v5697_v45, %v3083_v51 }
0x1526   :  { %v4549_v29 = vpop.eup %4548  ;;  %v3049_v61 = vadd.f32 1.0, %v4547_v14 }
0x1527   :  { %v3050_v1 = vadd.f32 1.0, %v4549_v29  ;;  %v5701_v39 = vpop.eup %4550 }
0x1528   :  { %4560 = vrcp.f32 %v3049_v61  ;;  %v5703_v3 = vpop.eup %4552  ;;  %v3100_v36 = vmul.f32 %v5701_v39, %v3084_v63 }
0x1529   :  { %4562 = vrcp.f32 %v3050_v1  ;;  %v5708_v43 = vpop.eup %4554  ;;  %v3101_v56 = vmul.f32 %v5703_v3, %v3085_v60 }
0x152a   :  { %v5711_v22 = vpop.eup %4556  ;;  %v3102_v18 = vmul.f32 %v5708_v43, %v3086_v11 }
0x152b   :  { %v5716_v40 = vpop.eup %4558  ;;  %v3103_v35 = vmul.f32 %v5711_v22, %v3087_v54 }
0x152c   :  { %v3104_v10 = vmul.f32 %v5716_v40, %v3088_v42 }
0x1532   :  { %v5719_v7 = vpop.eup %4560 }
0x1533   :  { %v5724_v59 = vpop.eup %4562  ;;  %v3105_v28 = vmul.f32 %v5719_v7, %v3089_v5 }
0x1534   :  { %v3106_v33 = vmul.f32 %v5724_v59, %v3090_v30 }
0x1582   :  { %v3116_v27 = vpop.permute.xlu0 %3115 }
0x1583   :  { %v3139_v46 = vmul.f32 %v5697_v45, %v3116_v27  ;;  %v3118_v0 = vpop.permute.xlu1 %3117 }
0x1584   :  { %v3140_v21 = vmul.f32 %v5701_v39, %v3118_v0  ;;  %v3235_v0 = vld [vmem:[%s5891_s12] sm:$0xff] }
0x1585   :  { %3155 = vrot.lane.b32.xlu0 %v3139_v46, %s4641_s10 }
0x1586   :  { %v3120_v19 = vpop.permute.xlu0 %3119  ;;  %3157 = vrot.lane.b32.xlu1 %v3140_v21, %s4641_s10  ;;  %v3236_v21 = vld [vmem:[%s5891_s12 + $0x8] sm:$0xff] }
0x1587   :  { %v3141_v23 = vmul.f32 %v5703_v3, %v3120_v19  ;;  %v3122_v13 = vpop.permute.xlu1 %3121  ;;  %v3237_v19 = vld [vmem:[%s5891_s12 + $0x10] sm:$0xff] }
0x1588   :  { %v3142_v62 = vmul.f32 %v5708_v43, %v3122_v13  ;;  %v3238_v13 = vld [vmem:[%s5891_s12 + $0x18] sm:$0xff] }
0x1589   :  { %3159 = vrot.lane.b32.xlu0 %v3141_v23, %s4641_s10  ;;  %v4053_v23 = vpack.c.bf16 %v3236_v21, %v3235_v0 }
0x158a   :  { %v3124_v34 = vpop.permute.xlu0 %3123  ;;  %3161 = vrot.lane.b32.xlu1 %v3142_v62, %s4641_s10  ;;  %v4056_v62 = vpack.c.bf16 %v3238_v13, %v3237_v19 }
0x158b   :  { %v3143_v12 = vmul.f32 %v5711_v22, %v3124_v34  ;;  %v3126_v52 = vpop.permute.xlu1 %3125  ;;  %4054 = vmatpush3.bf16.msra.mxu0 %v4053_v23 }
0x158c   :  { %v3144_v4 = vmul.f32 %v5716_v40, %v3126_v52  ;;  %4055 = vmatprep.subr.bf16.mxu0 %v4636_v2 }
0x158d   :  { %3163 = vrot.lane.b32.xlu0 %v3143_v12, %s4641_s10 }
0x158e   :  { %v3128_v41 = vpop.permute.xlu0 %3127  ;;  %3165 = vrot.lane.b32.xlu1 %v3144_v4, %s4641_s10 }
0x158f   :  { %v3145_v49 = vmul.f32 %v5719_v7, %v3128_v41  ;;  %v3130_v47 = vpop.permute.xlu1 %3129  ;;  %4057 = vmatpush3.bf16.msra.mxu0 %v4056_v62 }
0x1590   :  { %v3146_v53 = vmul.f32 %v5724_v59, %v3130_v47 }
0x1591   :  { %3167 = vrot.lane.b32.xlu0 %v3145_v49, %s4641_s10 }
0x1592   :  { %3169 = vrot.lane.b32.xlu1 %v3146_v53, %s4641_s10 }
0x15f7   :  { %v3156_v58 = vpop.permute.xlu0 %3155 }
0x15f8   :  { %v3179_v55 = vadd.f32 %v3156_v58, %v3099_v57  ;;  %v3158_v44 = vpop.permute.xlu1 %3157 }
0x15f9   :  { %v3180_v26 = vadd.f32 %v3158_v44, %v3100_v36 }
0x15fa   :  { %4564 = vtanh.f32 %v3179_v55 }
0x15fb   :  { %v3160_v32 = vpop.permute.xlu0 %3159  ;;  %4566 = vtanh.f32 %v3180_v26 }
0x15fc   :  { %v3181_v9 = vadd.f32 %v3160_v32, %v3101_v56  ;;  %v3162_v50 = vpop.permute.xlu1 %3161 }
0x15fd   :  { %v3182_v48 = vadd.f32 %v3162_v50, %v3102_v18 }
0x15fe   :  { %4568 = vtanh.f32 %v3181_v9 }
0x15ff   :  { %v3164_v6 = vpop.permute.xlu0 %3163  ;;  %4570 = vtanh.f32 %v3182_v48 }
0x1600   :  { %v3183_v24 = vadd.f32 %v3164_v6, %v3103_v35  ;;  %v3166_v25 = vpop.permute.xlu1 %3165 }
0x1601   :  { %v3184_v17 = vadd.f32 %v3166_v25, %v3104_v10 }
0x1602   :  { %4572 = vtanh.f32 %v3183_v24 }
0x1603   :  { %v3168_v38 = vpop.permute.xlu0 %3167  ;;  %4574 = vtanh.f32 %v3184_v17 }
0x1604   :  { %v4565_v15 = vpop.eup %4564  ;;  %v3185_v27 = vadd.f32 %v3168_v38, %v3105_v28  ;;  %v3170_v31 = vpop.permute.xlu1 %3169 }
0x1605   :  { %3203 = vrot.lane.b32.xlu0 %v4565_v15, %s4639_s6  ;;  %v4567_v14 = vpop.eup %4566  ;;  %v3186_v37 = vadd.f32 %v3170_v31, %v3106_v33 }
0x1606   :  { %4576 = vtanh.f32 %v3185_v27  ;;  %3205 = vrot.lane.b32.xlu1 %v4567_v14, %s4639_s6  ;;  %v3361_v14 = vlaneseq }
0x1607   :  { %4578 = vtanh.f32 %v3186_v37 }
0x1608   :  { %v4569_v46 = vpop.eup %4568  ;;  %v3653_v37 = vand.u32 127, %v3361_v14 }
0x1609   :  { %3207 = vrot.lane.b32.xlu0 %v4569_v46, %s4639_s6  ;;  %v4571_v8 = vpop.eup %4570  ;;  %v3362_v46 = vshrl.u32 %v3361_v14, 7 }
0x160a   :  { %3209 = vrot.lane.b32.xlu1 %v4571_v8, %s4639_s6 }
0x160b   :  { %vm3654_vm11 = vcmp.eq.s32.totalorder %v3362_v46, %v3653_v37  ;;  %v3363_v19 = vsub.s32 0, %v3362_v46  ;;  %v3374_v13 = vsub.s32 1, %v3362_v46  ;;  %v3352_v37 = vld [vmem:[%s5881_s2 + $0x38] sm:$0xff] }
0x160c   :  { %v4573_v29 = vpop.eup %4572 }
0x160d   :  { %3211 = vrot.lane.b32.xlu0 %v4573_v29, %s4639_s6  ;;  %v4575_v20 = vpop.eup %4574 }
0x160e   :  { %3213 = vrot.lane.b32.xlu1 %v4575_v20, %s4639_s6 }
0x1610   :  { %v4577_v61 = vpop.eup %4576 }
0x1611   :  { %3215 = vrot.lane.b32.xlu0 %v4577_v61, %s4639_s6  ;;  %v4579_v1 = vpop.eup %4578 }
0x1612   :  { %3217 = vrot.lane.b32.xlu1 %v4579_v1, %s4639_s6 }
0x1677   :  { %v3204_v34 = vpop.permute.xlu0 %3203 }
0x1678   :  { %v3227_v12 = vmul.f32 %v5697_v45, %v3204_v34  ;;  %v3206_v52 = vpop.permute.xlu1 %3205  ;;  %v3385_v34 = vsub.s32 2, %v3362_v46 }
0x1679   :  { %v3228_v4 = vmul.f32 %v5701_v39, %v3206_v52  ;;  %v3396_v52 = vsub.s32 3, %v3362_v46 }
0x167a   :  { %v3254_v41 = vrot.slane %v3227_v12, 7 }
0x167b   :  { %v3208_v49 = vpop.permute.xlu0 %3207  ;;  %v3255_v53 = vrot.slane %v3228_v4, 6 }
0x167c   :  { %v3229_v47 = vmul.f32 %v5703_v3, %v3208_v49  ;;  %v3210_v51 = vpop.permute.xlu1 %3209 }
0x167d   :  { %v3256_v58 = vsel %vm869_vm4, %v3255_v53, %v3254_v41  ;;  %v3230_v55 = vmul.f32 %v5708_v43, %v3210_v51  ;;  %v3407_v41 = vsub.s32 4, %v3362_v46  ;;  %v3429_v51 = vsub.s32 6, %v3362_v46 }
0x167e   :  { %v3257_v57 = vrot.slane %v3229_v47, 5  ;;  %v3418_v47 = vsub.s32 5, %v3362_v46 }
0x167f   :  { %v3212_v63 = vpop.permute.xlu0 %3211  ;;  %v3259_v45 = vrot.slane %v3230_v55, 4 }
0x1680   :  { %v3258_v2 = vsel %vm872_vm5, %v3257_v57, %v3256_v58  ;;  %v3231_v60 = vmul.f32 %v5711_v22, %v3212_v63  ;;  %v3214_v36 = vpop.permute.xlu1 %3213  ;;  %v3440_v58 = vsub.s32 7, %v3362_v46  ;;  %v3351_v46 = vld [vmem:[%s5881_s2 + $0x30] sm:$0xff] }
0x1681   :  { %v3232_v39 = vmul.f32 %v5716_v40, %v3214_v36  ;;  %v3260_v56 = vsel %vm875_vm6, %v3259_v45, %v3258_v2  ;;  %v3709_v40 = vld [vmem:[%s5887_s8] ss:$0 sm:$0xff] }
0x1682   :  { %v3261_v44 = vrot.slane %v3231_v60, 3  ;;  %v307_v50 = vadd.f32 %v3709_v40, %v4943_v16 }
0x1683   :  { %v3216_v3 = vpop.permute.xlu0 %3215  ;;  %v3263_v32 = vrot.slane %v3232_v39, 2 }
0x1684   :  { %v3262_v11 = vsel %vm878_vm7, %v3261_v44, %v3260_v56  ;;  %v3233_v26 = vmul.f32 %v5719_v7, %v3216_v3  ;;  %v3218_v54 = vpop.permute.xlu1 %3217  ;;  %v3547_v7 = vmul.f32 %v307_v50, %v307_v50 }
0x1685   :  { %v3234_v9 = vmul.f32 %v5724_v59, %v3218_v54  ;;  %v3264_v18 = vsel %vm881_vm8, %v3263_v32, %v3262_v11  ;;  %v3791_v59 = vld [vmem:[%s5892_s13] ss:$0 sm:$0xff] }
0x1686   :  { %v3265_v43 = vrot.slane %v3233_v26, 1  ;;  %v3548_v35 = vsel %vm65_vm1, %v3547_v7, 0.0 }
0x1688   :  { %v3266_v22 = vsel %vm884_vm9, %v3265_v43, %v3264_v18 }
0x1689   :  { %v3267_v15 = vsel %vm887_vm10, %v3234_v9, %v3266_v22 }
0x168a   :  { %3268 = vrot.lane.b32.xlu0 %v3267_v15, %s4641_s10 }
0x16a9   :  { %3549 = vadd.xlane.f32.xlu0 %v3548_v35  ;;  %v3348_v35 = vld [vmem:[%s5881_s2 + $0x18] sm:$0xff] }
0x16fc   :  { %v3269_v42 = vpop.permute.xlu0 %3268 }
0x16fd   :  { %3988 = vmatmul.mubr.msk.f32.vlgmr.msra.gmra.mrb[12].mxu0 %vm151_vm2, %v3269_v42  ;;  %v3346_v42 = vld [vmem:[%s5881_s2 + $0x8] sm:$0xff] }
0x1736   :  { %v3550_v16 = vpop.xlane.xlu0 %3549 }
0x1737   :  { %v3551_v28 = vmax.f32 %v3550_v16, 1e-24 }
0x17d0   :  { %v3338_v48 = vpop.f32.mrb[12].mxu0 }
0x17d1   :  { %v3339_v6 = vadd.f32 %v3791_v59, %v3338_v48  ;;  %v3989_v5 = vpop.f32.mrb[13].mxu0  ;;  %v3345_v48 = vld [vmem:[%s5881_s2] sm:$0xff] }
0x17d3   :  { %v3342_v24 = vmax.f32 %v3339_v6, 0.0 }
0x17d5   :  { %v3553_v10 = vmul.f32 %v3342_v24, %v3342_v24  ;;  %v3343_v21 = vadd.f32 %v3342_v24, %v307_v50 }
0x17d7   :  { %v3554_v25 = vsel %vm65_vm1, %v3553_v10, 0.0  ;;  %v3364_v23 = vrot.slane %v3343_v21, %v3363_v19  ;;  %v3375_v62 = vrot.slane %v3343_v21, %v3374_v13  ;;  %v3386_v12 = vrot.slane %v3343_v21, %v3385_v34  ;;  %v3349_v10 = vld [vmem:[%s5881_s2 + $0x20] sm:$0xff]  ;;  %v3354_v19 = vld [vmem:[%s5881_s2 + $0x48] sm:$0xff] }
0x17d8   :  { %3555 = vadd.xlane.f32.xlu1 %v3554_v25  ;;  %v3397_v4 = vrot.slane %v3343_v21, %v3396_v52  ;;  %v3408_v49 = vrot.slane %v3343_v21, %v3407_v41  ;;  %v3419_v53 = vrot.slane %v3343_v21, %v3418_v47  ;;  %v3430_v57 = vrot.slane %v3343_v21, %v3429_v51  ;;  %v3356_v51 = vld [vmem:[%s5881_s2 + $0x58] sm:$0xff] }
0x17d9   :  { %v3441_v55 = vrot.slane %v3343_v21, %v3440_v58 }
0x1865   :  { %v3556_v30 = vpop.xlane.xlu1 %3555 }
0x1866   :  { %v3557_v17 = vmax.f32 %v3556_v30, 1e-24 }
0x1868   :  { %4580 = vrsqrt.f32 %v3557_v17 }
0x1869   :  { %4582 = vrsqrt.f32 %v3551_v28 }
0x1872   :  { %v4581_v38 = vpop.eup %4580 }
0x1873   :  { %v4583_v27 = vpop.eup %4582  ;;  %v3560_v33 = vmul.f32 %v4581_v38, %v3342_v24  ;;  %v3350_v24 = vld [vmem:[%s5881_s2 + $0x28] sm:$0xff] }
0x1874   :  { %v3559_v31 = vmul.f32 %v4583_v27, %v307_v50  ;;  %v3347_v50 = vld [vmem:[%s5881_s2 + $0x10] sm:$0xff] }
0x1875   :  { %3991 = vmatpush3.xpose.msk.msra.mxu1 %vm65_vm1, %v3560_v33 }
0x1878   :  { %3993 = vmatmul.mubr.msk.f32.vlgmr.msra.gmra.mrb[16].mxu1 %vm65_vm1, %v3559_v31 }
0x194b   :  { %v3633_v8 = vpop.f32.mrb[16].mxu1 }
0x194c   :  { %v3637_v29 = vmul.f32 14.285714, %v3633_v8  ;;  %v3994_v20 = vpop.f32.mrb[17].mxu1 }
0x194e   :  { %v3638_v61 = vsel %vm582_vm3, %v3637_v29, -inf  ;;  %v3655_v1 = vsel %vm3654_vm11, %v3637_v29, 0.0 }
0x194f   :  { %3639 = vmax.xlane.f32.xlu0 %v3638_v61  ;;  %v3656_v0 = vsel %vm582_vm3, %v3655_v1, 0.0 }
0x1953   :  { %3657 = vadd.xlane.f32.xlu0 %v3656_v0 }
0x1969   :  { %3366 = vbcast.lane.b32.xlu0 %v3364_v23, 256 }
0x196d   :  { %3381 = vbcast.lane.b32.xlu0 %v3375_v62, 264 }
0x1971   :  { %3392 = vbcast.lane.b32.xlu0 %v3386_v12, 264 }
0x1975   :  { %3403 = vbcast.lane.b32.xlu0 %v3397_v4, 264 }
0x1979   :  { %3414 = vbcast.lane.b32.xlu0 %v3408_v49, 264 }
0x197d   :  { %3425 = vbcast.lane.b32.xlu0 %v3419_v53, 264 }
0x1981   :  { %3436 = vbcast.lane.b32.xlu0 %v3430_v57, 264 }
0x1985   :  { %3447 = vbcast.lane.b32.xlu0 %v3441_v55, 264 }
0x19dc   :  { %v3640_v63 = vpop.xlane.xlu0 %3639 }
0x19dd   :  { %v3641_v2 = vsub.f32 %v3637_v29, %v3640_v63 }
0x19df   :  { %v3642_v60 = vmul.f32 1.442695, %v3641_v2 }
0x19e0   :  { %v3658_v11 = vpop.xlane.xlu0 %3657 }
0x19e1   :  { %4584 = vpow2.f32 %v3642_v60 }
0x19e4   :  { %v3367_v54 = vpop.permute.xlu0 %3366 }
0x19e5   :  { %v3449_v30 = vmul.f32 %v3367_v54, %v3345_v48 }
0x19e8   :  { %v3382_v43 = vpop.permute.xlu0 %3381 }
0x19e9   :  { %v3452_v25 = vmul.f32 %v3382_v43, %v3348_v35 }
0x19eb   :  { %v4585_v45 = vpop.eup %4584 }
0x19ec   :  { %v3644_v36 = vsel %vm582_vm3, %v4585_v45, 0.0  ;;  %v3393_v9 = vpop.permute.xlu0 %3392 }
0x19ed   :  { %3645 = vadd.xlane.f32.xlu1 %v3644_v36  ;;  %v3454_v27 = vmul.f32 %v3393_v9, %v3350_v24 }
0x19f0   :  { %v3404_v40 = vpop.permute.xlu0 %3403 }
0x19f1   :  { %v3456_v1 = vmul.f32 %v3404_v40, %v3352_v37 }
0x19f4   :  { %v3415_v17 = vpop.permute.xlu0 %3414 }
0x19fe   :  { %3370 = vbcast.lane.b32.xlu1 %v3364_v23, 264  ;;  %v3426_v23 = vpop.permute.xlu0 %3425 }
0x1a02   :  { %v3437_v2 = vpop.permute.xlu0 %3436 }
0x1a7a   :  { %v3646_v44 = vpop.xlane.xlu1 %3645 }
0x1a7b   :  { %4586 = vlog2.f32 %v3646_v44  ;;  %v3460_v44 = vmul.f32 %v3426_v23, %v3356_v51 }
0x1a7e   :  { %v3371_v18 = vpop.permute.xlu1 %3370 }
0x1a7f   :  { %v3450_v16 = vmul.f32 %v3371_v18, %v3346_v42 }
0x1a81   :  { %v3465_v8 = vadd.f32 %v3450_v16, %v3449_v30 }
0x1a83   :  { %v3466_v34 = vrot.slane %v3465_v8, 4 }
0x1a85   :  { %v4587_v39 = vpop.eup %4586 }
0x1a86   :  { %v3648_v56 = vmul.f32 0.6931472, %v4587_v39  ;;  %v3358_v39 = vld [vmem:[%s5881_s2 + $0x68] sm:$0xff] }
0x1a87   :  { %v3462_v18 = vmul.f32 %v3437_v2, %v3358_v39 }
0x1a88   :  { %v3649_v3 = vadd.f32 %v3648_v56, %v3640_v63  ;;  %v3355_v63 = vld [vmem:[%s5881_s2 + $0x50] sm:$0xff] }
0x1a8a   :  { %v3659_v26 = vsub.f32 %v3649_v3, %v3658_v11  ;;  %v3357_v11 = vld [vmem:[%s5881_s2 + $0x60] sm:$0xff] }
0x1a8c   :  { %v3661_v32 = vsel %vm3660_vm12, %v3659_v26, 0.0 }
0x1a8d   :  { %3662 = vadd.xlane.f32.xlu1 %v3661_v32 }
0x1a9e   :  { %3377 = vbcast.lane.b32.xlu1 %v3375_v62, 256  ;;  %v3353_v62 = vld [vmem:[%s5881_s2 + $0x40] sm:$0xff] }
0x1aa2   :  { %3388 = vbcast.lane.b32.xlu1 %v3386_v12, 256 }
0x1aa6   :  { %3399 = vbcast.lane.b32.xlu1 %v3397_v4, 256  ;;  %v3458_v4 = vmul.f32 %v3415_v17, %v3354_v19 }
0x1aaa   :  { %3410 = vbcast.lane.b32.xlu1 %v3408_v49, 256 }
0x1aae   :  { %3421 = vbcast.lane.b32.xlu1 %v3419_v53, 256 }
0x1ab2   :  { %3432 = vbcast.lane.b32.xlu1 %v3430_v57, 256  ;;  %v3467_v57 = vadd.f32 %v3466_v34, %v3465_v8 }
0x1ab4   :  { %v3468_v26 = vrot.slane %v3467_v57, 2 }
0x1ab6   :  { %3443 = vbcast.lane.b32.xlu1 %v3441_v55, 256  ;;  %v3469_v48 = vadd.f32 %v3468_v26, %v3467_v57 }
0x1b1a   :  { %v3663_v22 = vpop.xlane.xlu1 %3662 }
0x1b1b   :  { %v3664_v15 = vrot.slane %v3663_v22, 4 }
0x1b1d   :  { %v3665_v7 = vadd.f32 %v3664_v15, %v3663_v22 }
0x1b1e   :  { %v3378_v59 = vpop.permute.xlu1 %3377 }
0x1b1f   :  { %v3666_v6 = vrot.slane %v3665_v7, 2  ;;  %v3451_v5 = vmul.f32 %v3378_v59, %v3347_v50  ;;  %v3360_v50 = vld [vmem:[%s5881_s2 + $0x78] sm:$0xff]  ;;  %v3359_v59 = vld [vmem:[%s5881_s2 + $0x70] sm:$0xff] }
0x1b21   :  { %v3667_v28 = vadd.f32 %v3666_v6, %v3665_v7  ;;  %v3472_v33 = vadd.f32 %v3452_v25, %v3451_v5  ;;  %v3448_v7 = vpop.permute.xlu0 %3447 }
0x1b22   :  { %v3389_v38 = vpop.permute.xlu1 %3388  ;;  %v3464_v16 = vmul.f32 %v3448_v7, %v3360_v50 }
0x1b23   :  { %v3453_v31 = vmul.f32 %v3389_v38, %v3349_v10  ;;  %v3668_v14 = vrot.slane %v3667_v28, 1  ;;  %v3473_v0 = vrot.slane %v3472_v33, 4 }
0x1b25   :  { %v3479_v29 = vadd.f32 %v3454_v27, %v3453_v31  ;;  %v3669_v20 = vadd.f32 %v3668_v14, %v3667_v28  ;;  %v3474_v41 = vadd.f32 %v3473_v0, %v3472_v33  ;;  %v3470_v33 = vrot.slane %v3469_v48, 1 }
0x1b26   :  { %v3400_v61 = vpop.permute.xlu1 %3399 }
0x1b27   :  { %v3455_v21 = vmul.f32 %v3400_v61, %v3351_v46  ;;  %4058 = vpush %v3669_v20  ;;  %v3480_v13 = vrot.slane %v3479_v29, 4  ;;  %v3475_v45 = vrot.slane %v3474_v41, 2 }
0x1b29   :  { %v3486_v12 = vadd.f32 %v3456_v1, %v3455_v21  ;;  %v3481_v53 = vadd.f32 %v3480_v13, %v3479_v29  ;;  %v3476_v22 = vadd.f32 %v3475_v45, %v3474_v41  ;;  %v3471_v21 = vadd.f32 %v3470_v33, %v3469_v48 }
0x1b2a   :  { %v3411_v52 = vpop.permute.xlu1 %3410 }
0x1b2b   :  { %v3487_v49 = vrot.slane %v3486_v12, 4  ;;  %v3457_v47 = vmul.f32 %v3411_v52, %v3353_v62  ;;  %v3482_v56 = vrot.slane %v3481_v53, 2  ;;  %v3477_v28 = vrot.slane %v3476_v22, 1 }
0x1b2c   :  { %v3521_v62 = vstv %s5893_s14  ;;  %s4642_s14 = smov [#allocation3]  }
0x1b2d   :  { %v3488_v58 = vadd.f32 %v3487_v49, %v3486_v12  ;;  %v3493_v55 = vadd.f32 %v3458_v4, %v3457_v47  ;;  %v3483_v35 = vadd.f32 %v3482_v56, %v3481_v53  ;;  %v3478_v29 = vadd.f32 %v3477_v28, %v3476_v22  ;;  %s3683_s11 = sshll.u32 %s4642_s14, 4  ;;  %s3684_s11 = int_to_ptr.vmem [resolvable:$true] %s3683_s11 }
0x1b2e   :  { %v3422_v60 = vpop.permute.xlu1 %3421  ;;  %v3522_v47 = vadd.f32 %v3521_v62, %v3471_v21  ;;  %s4588_s0 = scalar_lea.vmem %s3684_s11, 128  ;;  %p4593_p1 = scmp.lt.s32.totalorder %s3684_s11, %s3684_s11 }
0x1b2f   :  { %v3494_v36 = vrot.slane %v3493_v55, 4  ;;  %v3459_v3 = vmul.f32 %v3422_v60, %v3355_v63  ;;  %v3489_v32 = vrot.slane %v3488_v58, 2  ;;  %v3484_v38 = vrot.slane %v3483_v35, 1  ;;  %p4589_p0 = scmp.ne.s32.totalorder %s3684_s11, %s4588_s0  ;;  %p4594_p2 = scmp.lt.s32.totalorder %s4588_s0, %s4588_s0 }
0x1b30   :  { %v3523_v12 = vadd.f32 %v3521_v62, %v3478_v29 }
0x1b31   :  { %v3495_v54 = vadd.f32 %v3494_v36, %v3493_v55  ;;  %v3500_v43 = vadd.f32 %v3460_v44, %v3459_v3  ;;  %v3490_v6 = vadd.f32 %v3489_v32, %v3488_v58  ;;  %v3485_v1 = vadd.f32 %v3484_v38, %v3483_v35  ;;  %p4595_p3 = por %p4594_p2, %p4593_p1 }
0x1b32   :  { %v3433_v9 = vpop.permute.xlu1 %3432  ;;  %v3538_v2 = vsel %vm869_vm4, %v3523_v12, %v3522_v47 }
0x1b33   :  { %v3496_v15 = vrot.slane %v3495_v54, 2  ;;  %v3461_v40 = vmul.f32 %v3433_v9, %v3357_v11  ;;  %v3501_v42 = vrot.slane %v3500_v43, 4  ;;  %v3491_v31 = vrot.slane %v3490_v6, 1  ;;  %p4596_p4 = pnand %p4595_p3, %p4589_p0 }
0x1b34   :  { %v3524_v49 = vadd.f32 %v3521_v62, %v3485_v1 }
0x1b35   :  { %v3507_v5 = vadd.f32 %v3462_v18, %v3461_v40  ;;  %v3497_v24 = vadd.f32 %v3496_v15, %v3495_v54  ;;  %v3502_v10 = vadd.f32 %v3501_v42, %v3500_v43  ;;  %v3492_v19 = vadd.f32 %v3491_v31, %v3490_v6 }
0x1b36   :  { %v3444_v25 = vpop.permute.xlu1 %3443  ;;  %v3539_v45 = vsel %vm872_vm5, %v3524_v49, %v3538_v2 }
0x1b37   :  { %v3508_v30 = vrot.slane %v3507_v5, 4  ;;  %v3463_v17 = vmul.f32 %v3444_v25, %v3359_v59  ;;  %v3503_v27 = vrot.slane %v3502_v10, 2  ;;  %v3498_v46 = vrot.slane %v3497_v24, 1 }
0x1b38   :  { %v3525_v53 = vadd.f32 %v3521_v62, %v3492_v19 }
0x1b39   :  { %v3509_v14 = vadd.f32 %v3508_v30, %v3507_v5  ;;  %v3514_v37 = vadd.f32 %v3464_v16, %v3463_v17  ;;  %v3504_v8 = vadd.f32 %v3503_v27, %v3502_v10  ;;  %v3499_v34 = vadd.f32 %v3498_v46, %v3497_v24 }
0x1b3a   :  { %v3540_v44 = vsel %vm875_vm6, %v3525_v53, %v3539_v45 }
0x1b3b   :  { %v3510_v20 = vrot.slane %v3509_v14, 2  ;;  %v3515_v61 = vrot.slane %v3514_v37, 4  ;;  %v3505_v0 = vrot.slane %v3504_v8, 1  ;;  %v3526_v58 = vadd.f32 %v3521_v62, %v3499_v34 }
0x1b3d   :  { %v3511_v23 = vadd.f32 %v3510_v20, %v3509_v14  ;;  %v3516_v13 = vadd.f32 %v3515_v61, %v3514_v37  ;;  %v3506_v52 = vadd.f32 %v3505_v0, %v3504_v8  ;;  %v3541_v39 = vsel %vm878_vm7, %v3526_v58, %v3540_v44 }
0x1b3f   :  { %v3512_v4 = vrot.slane %v3511_v23, 1  ;;  %v3517_v41 = vrot.slane %v3516_v13, 2  ;;  %v3527_v63 = vadd.f32 %v3521_v62, %v3506_v52 }
0x1b41   :  { %v3513_v51 = vadd.f32 %v3512_v4, %v3511_v23  ;;  %v3518_v57 = vadd.f32 %v3517_v41, %v3516_v13  ;;  %v3542_v3 = vsel %vm881_vm8, %v3527_v63, %v3541_v39 }
0x1b43   :  { %v3519_v55 = vrot.slane %v3518_v57, 1  ;;  %v3528_v60 = vadd.f32 %v3521_v62, %v3513_v51 }
0x1b45   :  { %v3520_v36 = vadd.f32 %v3519_v55, %v3518_v57  ;;  %v3543_v11 = vsel %vm884_vm9, %v3528_v60, %v3542_v3 }
0x1b47   :  { %v3529_v56 = vadd.f32 %v3521_v62, %v3520_v36 }
0x1b49   :  { %v3544_v26 = vsel %vm887_vm10, %v3529_v56, %v3543_v11 }
0x1b4a   :  { %3546 = vst [vmem:[#allocation3] sm:$0xff] %v3544_v26 }
0x1b4b   :  { %4599 = shalt.err (!%p4596_p4)
}
0x1b4c   :  { %s4600_s19 = scalar_lea.hbm %s5894_s15, 128 }
0x1b4d   :  { %p4601_p5 = scmp.ne.s32.totalorder %s5894_s15, %s4600_s19  ;;  %p4604_p6 = scmp.lt.u32.totalorder %s4600_s19, %s5894_s15 }
0x1b4f   :  { %p4606_p7 = pnand %p4604_p6, %p4601_p5 }
0x1b51   :  { %4609 = shalt.err (!%p4606_p7)
}
0x1b52   :  { %3686 = dma.vmem_to_hbm [thread:$0]  %s3684_s11, 128, %s5894_s15, [#allocation4]   ;;  %vm3675_vm13 = vcmask 0  }
0x1b53   :  { %s4643_s24 = smov [#allocation5]  }
0x1b54   :  { %s3693_s5 = sshll.u32 %s4643_s24, 4  ;;  %s3694_s5 = int_to_ptr.vmem [resolvable:$true] %s3693_s5 }
0x1b55   :  { %s4610_s9 = scalar_lea.vmem %s3694_s5, 16  ;;  %s4614_s26 = scalar_lea.vmem %s3694_s5, 32 }
0x1b56   :  { %p4611_p8 = scmp.ne.s32.totalorder %s3694_s5, %s4610_s9  ;;  %p4615_p9 = scmp.lt.s32.totalorder %s3694_s5, %s3694_s5 }
0x1b57   :  { %p4616_p10 = scmp.lt.s32.totalorder %s4614_s26, %s4610_s9 }
0x1b58   :  { %s4059_s25 = spop %4058 }
0x1b59   :  { %s3673_s4 = smul.f32 0.125, %s4059_s25  ;;  %p4617_p11 = por %p4616_p10, %p4615_p9 }
0x1b5b   :  { %v3674_v32 = vstv %s3673_s4  ;;  %p4618_p12 = pnand %p4617_p11, %p4611_p8 }
0x1b5c   :  { %3676 = vst.msk [vmem:[#allocation5] sm:$0x1] %vm3675_vm13, %v3674_v32 }
0x1b5d   :  { %4621 = shalt.err (!%p4618_p12)
}
0x1b5e   :  { %s4622_s15 = scalar_lea.hbm %s5895_s16, 16 }
0x1b5f   :  { %p4623_p13 = scmp.ne.s32.totalorder %s5895_s16, %s4622_s15  ;;  %p4626_p0 = scmp.lt.u32.totalorder %s4622_s15, %s5895_s16 }
0x1b61   :  { %p4628_p1 = pnand %p4626_p0, %p4623_p13 }
0x1b63   :  { %4631 = shalt.err (!%p4628_p1)
}
0x1b64   :  { %3696 = dma.vmem_to_hbm [thread:$0]  %s3694_s5, 16, %s5895_s16, [#allocation6]  }
0x1b65   :  { %4632 = dma.done.wait [#allocation4], 128  }
0x1b66   :  { %4633 = vsyncadd [#allocation4], 4294967168 }
0x1b67   :  { %4634 = dma.done.wait [#allocation6], 16  }
0x1b68   :  { %4635 = vsyncadd [#allocation6], 4294967280 }
0x1b69   :  { %3703 = vsyncpa [#allocation4], 1 }
0x1b6a   :  { %3704 = vsyncpa [#allocation6], 1 }

</bundles_post_ra>
